<compile_context>
chip_gen: v6e
topology: v6e:2x2x1
jax: 0.10.0
libtpu: 0.0.40
codegen_flags: <defaults>
</compile_context>

<pallas_src>
import functools
import math

import jax
import jax.numpy as jnp
from jax.experimental import pallas as pl
from jax.experimental.pallas import tpu as pltpu

# ----------------------------- tiny synthetic BERT config -----------------------------
VOCAB = 128
TYPE_VOCAB = 2
MAX_POS = 64
HIDDEN = 32
HEADS = 2
HEAD_DIM = HIDDEN // HEADS
INTER = 64
LAYERS = 2
NUM_LABELS = 2
LN_EPS = 1e-12
NEG_INF = -1e9


# ----------------------------- in-kernel helpers -----------------------------
def _layernorm(x, gamma, beta):
    mu = jnp.mean(x, axis=-1, keepdims=True)
    var = jnp.mean((x - mu) ** 2, axis=-1, keepdims=True)
    return (x - mu) * jax.lax.rsqrt(var + LN_EPS) * gamma + beta


def _gelu(x):
    # TODO(synk): HF BERT's default "gelu" is erf-based; tanh approximation (gelu_new) used here.
    c = 0.7978845608028654  # sqrt(2/pi)
    return 0.5 * x * (1.0 + jnp.tanh(c * (x + 0.044715 * x * x * x)))


def _bf16(x):
    return x.astype(jnp.bfloat16)


# ----------------------------- the fused kernel -----------------------------
def bert_ranker_kernel(
    word_ref, type_ref, pos_ref, mask_ref,
    emb_g_ref, emb_b_ref,
    wq_ref, bq_ref, wk_ref, bk_ref, wv_ref, bv_ref, wo_ref, bo_ref,
    ln1_g_ref, ln1_b_ref,
    w1_ref, b1_ref, w2_ref, b2_ref, ln2_g_ref, ln2_b_ref,
    wp_ref, bp_ref, wc_ref, bc_ref,
    pos_logit_ref, loss_ref,
    *, batch, seq, subset_num):
    B, S, H = batch, seq, HIDDEN
    BS = B * S

    # ---- embeddings: word + position (broadcast (S,H)) + token-type, then LayerNorm (f32) ----
    emb = word_ref[...] + type_ref[...] + pos_ref[...]                  # (B,S,H)
    x = _layernorm(emb.reshape(BS, H), emb_g_ref[...], emb_b_ref[...])  # (BS,H) f32

    # additive mask, kept in f32 and applied after the QK^T f32 accumulation
    neg = (1.0 - mask_ref[...]) * NEG_INF                               # (B,1,S)
    scale = 1.0 / math.sqrt(HEAD_DIM)

    # ---- transformer encoder: static python loop over layers (weights VMEM-resident) ----
    for l in range(LAYERS):
        xb = _bf16(x)
        q = jnp.dot(xb, wq_ref[l], preferred_element_type=jnp.float32) + bq_ref[l]
        k = jnp.dot(xb, wk_ref[l], preferred_element_type=jnp.float32) + bk_ref[l]
        v = jnp.dot(xb, wv_ref[l], preferred_element_type=jnp.float32) + bv_ref[l]
        q3 = q.reshape(B, S, H)
        k3 = k.reshape(B, S, H)
        v3 = v.reshape(B, S, H)

        wo_l = wo_ref[l]                                                # (H,H) bf16
        attn = jnp.zeros((BS, H), jnp.float32)
        for h in range(HEADS):                                          # static, HEADS=2
            sl = slice(h * HEAD_DIM, (h + 1) * HEAD_DIM)
            s = jnp.einsum('bqd,bkd->bqk',
                           _bf16(q3[:, :, sl]), _bf16(k3[:, :, sl]),
                           preferred_element_type=jnp.float32) * scale + neg   # (B,S,S) f32
            s = s - jnp.max(s, axis=-1, keepdims=True)
            p = jnp.exp(s)
            p = p * pl.reciprocal(jnp.sum(p, axis=-1, keepdims=True), approx=True)
            ctx = jnp.einsum('bqk,bkd->bqd', _bf16(p), _bf16(v3[:, :, sl]),
                             preferred_element_type=jnp.float32)        # (B,S,hd)
            # accumulate ctx_h @ Wo[rows of head h] instead of lane-concatenating heads
            attn = attn + jnp.dot(_bf16(ctx.reshape(BS, HEAD_DIM)), wo_l[sl, :],
                                  preferred_element_type=jnp.float32)
        attn = attn + bo_ref[l]
        x = _layernorm(attn + x, ln1_g_ref[l], ln1_b_ref[l])

        # feed-forward
        hmid = _gelu(jnp.dot(_bf16(x), w1_ref[l],
                             preferred_element_type=jnp.float32) + b1_ref[l])
        y = jnp.dot(_bf16(hmid), w2_ref[l],
                    preferred_element_type=jnp.float32) + b2_ref[l]
        x = _layernorm(y + x, ln2_g_ref[l], ln2_b_ref[l])

    # ---- pooler + classifier head on the [CLS] token ----
    cls = x.reshape(B, S, H)[:, 0:1, :].reshape(B, H)
    pooled = jnp.tanh(jnp.dot(_bf16(cls), wp_ref[...],
                              preferred_element_type=jnp.float32) + bp_ref[...])
    logits = jnp.dot(_bf16(pooled), wc_ref[...],
                     preferred_element_type=jnp.float32) + bc_ref[...]  # (B, NUM_LABELS)

    # positive logits = logits[:, 1]  (extracted via an iota mask + lane reduction)
    lbl_idx = jax.lax.broadcasted_iota(jnp.int32, (B, NUM_LABELS), 1)
    positive = jnp.sum(jnp.where(lbl_idx == 1, logits, 0.0),
                       axis=-1, keepdims=True)                          # (B, 1)
    pos_logit_ref[...] = positive

    # ---- pairwise CrossEntropyLoss(ignore_index=-1) with all-zero pairwise labels ----
    # The reference constructs pairwise labels as zeros, so ignore_index=-1 never triggers:
    #   loss_i = logsumexp(pair_i) - pair_i[0]
    P = B // subset_num
    pair_idx = jax.lax.broadcasted_iota(jnp.int32, (P, B), 0)
    batch_idx = jax.lax.broadcasted_iota(jnp.int32, (P, B), 1)
    cols = []
    for j in range(subset_num):                                         # static, small
        sel = (batch_idx == pair_idx * subset_num + j).astype(jnp.float32)   # (P,B)
        cols.append(jnp.dot(sel, positive, preferred_element_type=jnp.float32))  # (P,1)
    mx = cols[0]
    for c in cols[1:]:
        mx = jnp.maximum(mx, c)
    expsum = jnp.zeros_like(mx)
    for c in cols:
        expsum = expsum + jnp.exp(c - mx)
    per_pair = jnp.log(expsum) + mx - cols[0]                           # (P,1)
    loss_ref[...] = jnp.mean(per_pair, axis=0, keepdims=True)           # (1,1)


# ----------------------------- pallas_call wrapper -----------------------------
def _stack_layer_params(layers):
    def st(name, dtype=jnp.float32):
        return jnp.stack([lp[name] for lp in layers]).astype(dtype)
    bf = jnp.bfloat16
    return {
        "wq": st("wq", bf), "bq": st("bq"),
        "wk": st("wk", bf), "bk": st("bk"),
        "wv": st("wv", bf), "bv": st("bv"),
        "wo": st("wo", bf), "bo": st("bo"),
        "ln1_g": st("ln1_g"), "ln1_b": st("ln1_b"),
        "w1": st("w1", bf), "b1": st("b1"),
        "w2": st("w2", bf), "b2": st("b2"),
        "ln2_g": st("ln2_g"), "ln2_b": st("ln2_b"),
    }


def _bert_ranker_fused(params, word3d, type3d, pos2d, mask3d, subset_num):
    B, S, _ = word3d.shape
    stacked = _stack_layer_params(params["layers"])
    kernel = functools.partial(bert_ranker_kernel, batch=B, seq=S, subset_num=subset_num)
    # TODO(synk): at real BERT sizes (H=768), stream layer weights with manual double-buffered
    # DMA instead of keeping all layers VMEM-resident (v7x has only 64 MiB VMEM).
    pos_logits, loss = pl.pallas_call(
        kernel,
        out_shape=(jax.ShapeDtypeStruct((B, 1), jnp.float32),
                   jax.ShapeDtypeStruct((1, 1), jnp.float32)),
        compiler_params=pltpu.CompilerParams(vmem_limit_bytes=32 * 1024 * 1024),
    )(word3d, type3d, pos2d, mask3d,
      params["emb_ln_g"], params["emb_ln_b"],
      stacked["wq"], stacked["bq"], stacked["wk"], stacked["bk"],
      stacked["wv"], stacked["bv"], stacked["wo"], stacked["bo"],
      stacked["ln1_g"], stacked["ln1_b"],
      stacked["w1"], stacked["b1"], stacked["w2"], stacked["b2"],
      stacked["ln2_g"], stacked["ln2_b"],
      params["wp"].astype(jnp.bfloat16), params["bp"],
      params["wc"].astype(jnp.bfloat16), params["bc"])
    return pos_logits, loss


# ----------------------------- BertRanker forward -----------------------------
def bert_ranker_forward(params, input_ids, token_type_ids, input_mask,
                        labels=None, subset_num=2):
    B, S = input_ids.shape
    assert B % subset_num == 0, "batch must be divisible by subset_num"

    # Embedding gathers are plain-JAX glue (data-dependent gather); everything else is fused.
    word = params["word_emb"][input_ids]                     # (B, S, H)
    type_e = params["type_emb"][token_type_ids]              # (B, S, H)
    pos = params["pos_emb"][:S]                              # (S, H) — broadcast in-kernel
    mask3d = input_mask.astype(jnp.float32).reshape(B, 1, S)

    pos_logits, loss = _bert_ranker_fused(params, word, type_e, pos, mask3d, subset_num)

    if labels is None:
        return pos_logits[:, 0]                              # (B,)
    # Pairwise labels are always zeros in the reference, so only the "labels is not None"
    # flag matters; ignore_index=-1 never triggers.
    return loss[0, 0]


# ----------------------------- deterministic parameter init -----------------------------
def init_params(key):
    keys = iter(jax.random.split(key, 16 * LAYERS + 16))

    def dense(shape):
        return jax.random.normal(next(keys), shape, jnp.float32) * 0.02

    params = {
        "word_emb": dense((VOCAB, HIDDEN)),
        "pos_emb": dense((MAX_POS, HIDDEN)),
        "type_emb": dense((TYPE_VOCAB, HIDDEN)),
        "emb_ln_g": jnp.ones((1, HIDDEN), jnp.float32),
        "emb_ln_b": jnp.zeros((1, HIDDEN), jnp.float32),
        "wp": dense((HIDDEN, HIDDEN)),
        "bp": jnp.zeros((1, HIDDEN), jnp.float32),
        "wc": dense((HIDDEN, NUM_LABELS)),
        "bc": jnp.zeros((1, NUM_LABELS), jnp.float32),
        "layers": [],
    }
    for _ in range(LAYERS):
        params["layers"].append({
            "wq": dense((HIDDEN, HIDDEN)), "bq": jnp.zeros((1, HIDDEN), jnp.float32),
            "wk": dense((HIDDEN, HIDDEN)), "bk": jnp.zeros((1, HIDDEN), jnp.float32),
            "wv": dense((HIDDEN, HIDDEN)), "bv": jnp.zeros((1, HIDDEN), jnp.float32),
            "wo": dense((HIDDEN, HIDDEN)), "bo": jnp.zeros((1, HIDDEN), jnp.float32),
            "ln1_g": jnp.ones((1, HIDDEN), jnp.float32),
            "ln1_b": jnp.zeros((1, HIDDEN), jnp.float32),
            "w1": dense((HIDDEN, INTER)), "b1": jnp.zeros((1, INTER), jnp.float32),
            "w2": dense((INTER, HIDDEN)), "b2": jnp.zeros((1, HIDDEN), jnp.float32),
            "ln2_g": jnp.ones((1, HIDDEN), jnp.float32),
            "ln2_b": jnp.zeros((1, HIDDEN), jnp.float32),
        })
    return params


# ----------------------------- main -----------------------------
if __name__ == "__main__":
    key = jax.random.PRNGKey(0)
    pkey, ikey = jax.random.split(key)
    params = init_params(pkey)

    B, S = 4, 8  # batch must be divisible by subset_num=2
    input_ids = jax.random.randint(ikey, (B, S), 0, VOCAB, dtype=jnp.int32)
    token_type_ids = jnp.zeros((B, S), jnp.int32).at[:, S // 2:].set(1)
    input_mask = jnp.ones((B, S), jnp.int32).at[:, -1].set(0)  # last token padded

    # Inference branch (labels is None): returns positive logits (B,)
    positive_logits = bert_ranker_forward(params, input_ids, token_type_ids, input_mask)

    # Training branch: pairwise CrossEntropyLoss over (B // subset_num, subset_num), labels = 0
    labels = jnp.zeros((B,), jnp.int32)
    loss = bert_ranker_forward(params, input_ids, token_type_ids, input_mask,
                               labels=labels, subset_num=2)

    jax.block_until_ready((positive_logits, loss))
    print("KERNEL_OK")
</pallas_src>

<mosaic_0001>
module attributes {stable_mosaic.version = 11 : i64} {
  func.func @bert_ranker_kernel(%arg0: memref<4x8x32xf32, #tpu.memory_space<vmem>>, %arg1: memref<4x8x32xf32, #tpu.memory_space<vmem>>, %arg2: memref<8x32xf32, #tpu.memory_space<vmem>>, %arg3: memref<4x1x8xf32, #tpu.memory_space<vmem>>, %arg4: memref<1x32xf32, #tpu.memory_space<vmem>>, %arg5: memref<1x32xf32, #tpu.memory_space<vmem>>, %arg6: memref<2x32x32xbf16, #tpu.memory_space<vmem>>, %arg7: memref<2x1x32xf32, #tpu.memory_space<vmem>>, %arg8: memref<2x32x32xbf16, #tpu.memory_space<vmem>>, %arg9: memref<2x1x32xf32, #tpu.memory_space<vmem>>, %arg10: memref<2x32x32xbf16, #tpu.memory_space<vmem>>, %arg11: memref<2x1x32xf32, #tpu.memory_space<vmem>>, %arg12: memref<2x32x32xbf16, #tpu.memory_space<vmem>>, %arg13: memref<2x1x32xf32, #tpu.memory_space<vmem>>, %arg14: memref<2x1x32xf32, #tpu.memory_space<vmem>>, %arg15: memref<2x1x32xf32, #tpu.memory_space<vmem>>, %arg16: memref<2x32x64xbf16, #tpu.memory_space<vmem>>, %arg17: memref<2x1x64xf32, #tpu.memory_space<vmem>>, %arg18: memref<2x64x32xbf16, #tpu.memory_space<vmem>>, %arg19: memref<2x1x32xf32, #tpu.memory_space<vmem>>, %arg20: memref<2x1x32xf32, #tpu.memory_space<vmem>>, %arg21: memref<2x1x32xf32, #tpu.memory_space<vmem>>, %arg22: memref<32x32xbf16, #tpu.memory_space<vmem>>, %arg23: memref<1x32xf32, #tpu.memory_space<vmem>>, %arg24: memref<32x2xbf16, #tpu.memory_space<vmem>>, %arg25: memref<1x2xf32, #tpu.memory_space<vmem>>, %arg26: memref<4x1xf32, #tpu.memory_space<vmem>>, %arg27: memref<1x1xf32, #tpu.memory_space<vmem>>) attributes {dimension_semantics = [], scalar_prefetch = 0 : i64, scratch_operands = 0 : i64, tpu.core_type = #tpu.core_type<tc>} {
    %c0 = arith.constant 0 : index
    %c0_0 = arith.constant 0 : index
    %c0_1 = arith.constant 0 : index
    %0 = vector.load %arg0[%c0, %c0_0, %c0_1] : memref<4x8x32xf32, #tpu.memory_space<vmem>>, vector<4x8x32xf32>
    %c0_2 = arith.constant 0 : index
    %c0_3 = arith.constant 0 : index
    %c0_4 = arith.constant 0 : index
    %1 = vector.load %arg1[%c0_2, %c0_3, %c0_4] : memref<4x8x32xf32, #tpu.memory_space<vmem>>, vector<4x8x32xf32>
    %2 = arith.addf %0, %1 : vector<4x8x32xf32>
    %c0_5 = arith.constant 0 : index
    %c0_6 = arith.constant 0 : index
    %3 = vector.load %arg2[%c0_5, %c0_6] : memref<8x32xf32, #tpu.memory_space<vmem>>, vector<8x32xf32>
    %4 = vector.shape_cast %3 : vector<8x32xf32> to vector<1x8x32xf32>
    %5 = vector.broadcast %4 : vector<1x8x32xf32> to vector<4x8x32xf32>
    %6 = arith.addf %2, %5 : vector<4x8x32xf32>
    %7 = vector.shape_cast %6 : vector<4x8x32xf32> to vector<32x32xf32>
    %c0_7 = arith.constant 0 : index
    %c0_8 = arith.constant 0 : index
    %8 = vector.load %arg4[%c0_7, %c0_8] : memref<1x32xf32, #tpu.memory_space<vmem>>, vector<1x32xf32>
    %c0_9 = arith.constant 0 : index
    %c0_10 = arith.constant 0 : index
    %9 = vector.load %arg5[%c0_9, %c0_10] : memref<1x32xf32, #tpu.memory_space<vmem>>, vector<1x32xf32>
    %cst = arith.constant dense<0.000000e+00> : vector<32xf32>
    %10 = vector.multi_reduction <add>, %7, %cst [1] : vector<32x32xf32> to vector<32xf32>
    %11 = vector.shape_cast %10 : vector<32xf32> to vector<32x1xf32>
    %cst_11 = arith.constant 3.200000e+01 : f32
    %12 = vector.broadcast %cst_11 : f32 to vector<32x1xf32>
    %13 = arith.divf %11, %12 : vector<32x1xf32>
    %14 = vector.broadcast %13 : vector<32x1xf32> to vector<32x32xf32>
    %15 = arith.subf %7, %14 : vector<32x32xf32>
    %16 = arith.mulf %15, %15 : vector<32x32xf32>
    %cst_12 = arith.constant dense<0.000000e+00> : vector<32xf32>
    %17 = vector.multi_reduction <add>, %16, %cst_12 [1] : vector<32x32xf32> to vector<32xf32>
    %18 = vector.shape_cast %17 : vector<32xf32> to vector<32x1xf32>
    %cst_13 = arith.constant 3.200000e+01 : f32
    %19 = vector.broadcast %cst_13 : f32 to vector<32x1xf32>
    %20 = arith.divf %18, %19 : vector<32x1xf32>
    %21 = vector.broadcast %13 : vector<32x1xf32> to vector<32x32xf32>
    %22 = arith.subf %7, %21 : vector<32x32xf32>
    %cst_14 = arith.constant 9.99999996E-13 : f32
    %23 = vector.broadcast %cst_14 : f32 to vector<32x1xf32>
    %24 = arith.addf %20, %23 : vector<32x1xf32>
    %25 = math.rsqrt %24 : vector<32x1xf32>
    %26 = vector.broadcast %25 : vector<32x1xf32> to vector<32x32xf32>
    %27 = arith.mulf %22, %26 : vector<32x32xf32>
    %28 = vector.broadcast %8 : vector<1x32xf32> to vector<32x32xf32>
    %29 = arith.mulf %27, %28 : vector<32x32xf32>
    %30 = vector.broadcast %9 : vector<1x32xf32> to vector<32x32xf32>
    %31 = arith.addf %29, %30 : vector<32x32xf32>
    %c0_15 = arith.constant 0 : index
    %c0_16 = arith.constant 0 : index
    %c0_17 = arith.constant 0 : index
    %32 = vector.load %arg3[%c0_15, %c0_16, %c0_17] : memref<4x1x8xf32, #tpu.memory_space<vmem>>, vector<4x1x8xf32>
    %cst_18 = arith.constant 1.000000e+00 : f32
    %33 = vector.broadcast %cst_18 : f32 to vector<4x1x8xf32>
    %34 = arith.subf %33, %32 : vector<4x1x8xf32>
    %cst_19 = arith.constant -1.000000e+09 : f32
    %35 = vector.broadcast %cst_19 : f32 to vector<4x1x8xf32>
    %36 = arith.mulf %34, %35 : vector<4x1x8xf32>
    %37 = arith.truncf %31 : vector<32x32xf32> to vector<32x32xbf16>
    %c0_20 = arith.constant 0 : index
    %c0_21 = arith.constant 0 : index
    %c0_22 = arith.constant 0 : index
    %38 = vector.load %arg6[%c0_20, %c0_21, %c0_22] : memref<2x32x32xbf16, #tpu.memory_space<vmem>>, vector<1x32x32xbf16>
    %39 = vector.shape_cast %38 : vector<1x32x32xbf16> to vector<32x32xbf16>
    %cst_23 = arith.constant dense<0.000000e+00> : vector<32x32xf32>
    %40 = tpu.matmul %37, %39, %cst_23 {dimension_numbers = #tpu.dot_dimension_numbers<[1], [0], [0], [1], [0, 0, 1, 1], [], []>} : vector<32x32xbf16>, vector<32x32xbf16>, vector<32x32xf32> -> vector<32x32xf32>
    %c0_24 = arith.constant 0 : index
    %c0_25 = arith.constant 0 : index
    %c0_26 = arith.constant 0 : index
    %41 = vector.load %arg7[%c0_24, %c0_25, %c0_26] : memref<2x1x32xf32, #tpu.memory_space<vmem>>, vector<1x1x32xf32>
    %42 = vector.shape_cast %41 : vector<1x1x32xf32> to vector<1x32xf32>
    %43 = vector.broadcast %42 : vector<1x32xf32> to vector<32x32xf32>
    %44 = arith.addf %40, %43 : vector<32x32xf32>
    %c0_27 = arith.constant 0 : index
    %c0_28 = arith.constant 0 : index
    %c0_29 = arith.constant 0 : index
    %45 = vector.load %arg8[%c0_27, %c0_28, %c0_29] : memref<2x32x32xbf16, #tpu.memory_space<vmem>>, vector<1x32x32xbf16>
    %46 = vector.shape_cast %45 : vector<1x32x32xbf16> to vector<32x32xbf16>
    %cst_30 = arith.constant dense<0.000000e+00> : vector<32x32xf32>
    %47 = tpu.matmul %37, %46, %cst_30 {dimension_numbers = #tpu.dot_dimension_numbers<[1], [0], [0], [1], [0, 0, 1, 1], [], []>} : vector<32x32xbf16>, vector<32x32xbf16>, vector<32x32xf32> -> vector<32x32xf32>
    %c0_31 = arith.constant 0 : index
    %c0_32 = arith.constant 0 : index
    %c0_33 = arith.constant 0 : index
    %48 = vector.load %arg9[%c0_31, %c0_32, %c0_33] : memref<2x1x32xf32, #tpu.memory_space<vmem>>, vector<1x1x32xf32>
    %49 = vector.shape_cast %48 : vector<1x1x32xf32> to vector<1x32xf32>
    %50 = vector.broadcast %49 : vector<1x32xf32> to vector<32x32xf32>
    %51 = arith.addf %47, %50 : vector<32x32xf32>
    %c0_34 = arith.constant 0 : index
    %c0_35 = arith.constant 0 : index
    %c0_36 = arith.constant 0 : index
    %52 = vector.load %arg10[%c0_34, %c0_35, %c0_36] : memref<2x32x32xbf16, #tpu.memory_space<vmem>>, vector<1x32x32xbf16>
    %53 = vector.shape_cast %52 : vector<1x32x32xbf16> to vector<32x32xbf16>
    %cst_37 = arith.constant dense<0.000000e+00> : vector<32x32xf32>
    %54 = tpu.matmul %37, %53, %cst_37 {dimension_numbers = #tpu.dot_dimension_numbers<[1], [0], [0], [1], [0, 0, 1, 1], [], []>} : vector<32x32xbf16>, vector<32x32xbf16>, vector<32x32xf32> -> vector<32x32xf32>
    %c0_38 = arith.constant 0 : index
    %c0_39 = arith.constant 0 : index
    %c0_40 = arith.constant 0 : index
    %55 = vector.load %arg11[%c0_38, %c0_39, %c0_40] : memref<2x1x32xf32, #tpu.memory_space<vmem>>, vector<1x1x32xf32>
    %56 = vector.shape_cast %55 : vector<1x1x32xf32> to vector<1x32xf32>
    %57 = vector.broadcast %56 : vector<1x32xf32> to vector<32x32xf32>
    %58 = arith.addf %54, %57 : vector<32x32xf32>
    %59 = vector.shape_cast %44 : vector<32x32xf32> to vector<4x8x32xf32>
    %60 = vector.shape_cast %51 : vector<32x32xf32> to vector<4x8x32xf32>
    %61 = vector.shape_cast %58 : vector<32x32xf32> to vector<4x8x32xf32>
    %c0_41 = arith.constant 0 : index
    %c0_42 = arith.constant 0 : index
    %c0_43 = arith.constant 0 : index
    %62 = vector.load %arg12[%c0_41, %c0_42, %c0_43] : memref<2x32x32xbf16, #tpu.memory_space<vmem>>, vector<1x32x32xbf16>
    %63 = vector.shape_cast %62 : vector<1x32x32xbf16> to vector<32x32xbf16>
    %cst_44 = arith.constant 0.000000e+00 : f32
    %64 = vector.broadcast %cst_44 : f32 to vector<32x32xf32>
    %65 = vector.extract_strided_slice %59 {offsets = [0, 0, 0], sizes = [4, 8, 16], strides = [1, 1, 1]} : vector<4x8x32xf32> to vector<4x8x16xf32>
    %66 = arith.truncf %65 : vector<4x8x16xf32> to vector<4x8x16xbf16>
    %67 = vector.extract_strided_slice %60 {offsets = [0, 0, 0], sizes = [4, 8, 16], strides = [1, 1, 1]} : vector<4x8x32xf32> to vector<4x8x16xf32>
    %68 = arith.truncf %67 : vector<4x8x16xf32> to vector<4x8x16xbf16>
    "tpu.trace_start"() <{level = 10 : i32, message = "bqd,bkd->bqk"}> : () -> ()
    %cst_45 = arith.constant dense<0.000000e+00> : vector<4x8x8xf32>
    %69 = tpu.matmul %66, %68, %cst_45 {dimension_numbers = #tpu.dot_dimension_numbers<[2], [2], [1], [1], [0, 0, 0, 1, 1, 1], [0], [0]>} : vector<4x8x16xbf16>, vector<4x8x16xbf16>, vector<4x8x8xf32> -> vector<4x8x8xf32>
    "tpu.trace_stop"() : () -> ()
    %cst_46 = arith.constant 2.500000e-01 : f32
    %70 = vector.broadcast %cst_46 : f32 to vector<4x8x8xf32>
    %71 = arith.mulf %69, %70 : vector<4x8x8xf32>
    %72 = vector.broadcast %36 : vector<4x1x8xf32> to vector<4x8x8xf32>
    %73 = arith.addf %71, %72 : vector<4x8x8xf32>
    %cst_47 = arith.constant dense<0xFF800000> : vector<4x8xf32>
    %74 = vector.multi_reduction <maximumf>, %73, %cst_47 [2] : vector<4x8x8xf32> to vector<4x8xf32>
    %75 = vector.shape_cast %74 : vector<4x8xf32> to vector<4x8x1xf32>
    %76 = vector.broadcast %75 : vector<4x8x1xf32> to vector<4x8x8xf32>
    %77 = arith.subf %73, %76 : vector<4x8x8xf32>
    %78 = math.exp %77 : vector<4x8x8xf32>
    %cst_48 = arith.constant dense<0.000000e+00> : vector<4x8xf32>
    %79 = vector.multi_reduction <add>, %78, %cst_48 [2] : vector<4x8x8xf32> to vector<4x8xf32>
    %80 = vector.shape_cast %79 : vector<4x8xf32> to vector<4x8x1xf32>
    %81 = tpu.reciprocal %80 {approx = true} : vector<4x8x1xf32> -> vector<4x8x1xf32>
    %82 = vector.broadcast %81 : vector<4x8x1xf32> to vector<4x8x8xf32>
    %83 = arith.mulf %78, %82 : vector<4x8x8xf32>
    %84 = arith.truncf %83 : vector<4x8x8xf32> to vector<4x8x8xbf16>
    %85 = vector.extract_strided_slice %61 {offsets = [0, 0, 0], sizes = [4, 8, 16], strides = [1, 1, 1]} : vector<4x8x32xf32> to vector<4x8x16xf32>
    %86 = arith.truncf %85 : vector<4x8x16xf32> to vector<4x8x16xbf16>
    "tpu.trace_start"() <{level = 10 : i32, message = "bqk,bkd->bqd"}> : () -> ()
    %cst_49 = arith.constant dense<0.000000e+00> : vector<4x8x16xf32>
    %87 = tpu.matmul %84, %86, %cst_49 {dimension_numbers = #tpu.dot_dimension_numbers<[2], [1], [1], [2], [0, 0, 0, 1, 1, 2], [0], [0]>} : vector<4x8x8xbf16>, vector<4x8x16xbf16>, vector<4x8x16xf32> -> vector<4x8x16xf32>
    "tpu.trace_stop"() : () -> ()
    %88 = vector.shape_cast %87 : vector<4x8x16xf32> to vector<32x16xf32>
    %89 = arith.truncf %88 : vector<32x16xf32> to vector<32x16xbf16>
    %90 = vector.extract_strided_slice %63 {offsets = [0, 0], sizes = [16, 32], strides = [1, 1]} : vector<32x32xbf16> to vector<16x32xbf16>
    %cst_50 = arith.constant dense<0.000000e+00> : vector<32x32xf32>
    %91 = tpu.matmul %89, %90, %cst_50 {dimension_numbers = #tpu.dot_dimension_numbers<[1], [0], [0], [1], [0, 0, 1, 1], [], []>} : vector<32x16xbf16>, vector<16x32xbf16>, vector<32x32xf32> -> vector<32x32xf32>
    %92 = arith.addf %64, %91 : vector<32x32xf32>
    %93 = vector.extract_strided_slice %59 {offsets = [0, 0, 16], sizes = [4, 8, 16], strides = [1, 1, 1]} : vector<4x8x32xf32> to vector<4x8x16xf32>
    %94 = arith.truncf %93 : vector<4x8x16xf32> to vector<4x8x16xbf16>
    %95 = vector.extract_strided_slice %60 {offsets = [0, 0, 16], sizes = [4, 8, 16], strides = [1, 1, 1]} : vector<4x8x32xf32> to vector<4x8x16xf32>
    %96 = arith.truncf %95 : vector<4x8x16xf32> to vector<4x8x16xbf16>
    "tpu.trace_start"() <{level = 10 : i32, message = "bqd,bkd->bqk"}> : () -> ()
    %cst_51 = arith.constant dense<0.000000e+00> : vector<4x8x8xf32>
    %97 = tpu.matmul %94, %96, %cst_51 {dimension_numbers = #tpu.dot_dimension_numbers<[2], [2], [1], [1], [0, 0, 0, 1, 1, 1], [0], [0]>} : vector<4x8x16xbf16>, vector<4x8x16xbf16>, vector<4x8x8xf32> -> vector<4x8x8xf32>
    "tpu.trace_stop"() : () -> ()
    %cst_52 = arith.constant 2.500000e-01 : f32
    %98 = vector.broadcast %cst_52 : f32 to vector<4x8x8xf32>
    %99 = arith.mulf %97, %98 : vector<4x8x8xf32>
    %100 = vector.broadcast %36 : vector<4x1x8xf32> to vector<4x8x8xf32>
    %101 = arith.addf %99, %100 : vector<4x8x8xf32>
    %cst_53 = arith.constant dense<0xFF800000> : vector<4x8xf32>
    %102 = vector.multi_reduction <maximumf>, %101, %cst_53 [2] : vector<4x8x8xf32> to vector<4x8xf32>
    %103 = vector.shape_cast %102 : vector<4x8xf32> to vector<4x8x1xf32>
    %104 = vector.broadcast %103 : vector<4x8x1xf32> to vector<4x8x8xf32>
    %105 = arith.subf %101, %104 : vector<4x8x8xf32>
    %106 = math.exp %105 : vector<4x8x8xf32>
    %cst_54 = arith.constant dense<0.000000e+00> : vector<4x8xf32>
    %107 = vector.multi_reduction <add>, %106, %cst_54 [2] : vector<4x8x8xf32> to vector<4x8xf32>
    %108 = vector.shape_cast %107 : vector<4x8xf32> to vector<4x8x1xf32>
    %109 = tpu.reciprocal %108 {approx = true} : vector<4x8x1xf32> -> vector<4x8x1xf32>
    %110 = vector.broadcast %109 : vector<4x8x1xf32> to vector<4x8x8xf32>
    %111 = arith.mulf %106, %110 : vector<4x8x8xf32>
    %112 = arith.truncf %111 : vector<4x8x8xf32> to vector<4x8x8xbf16>
    %113 = vector.extract_strided_slice %61 {offsets = [0, 0, 16], sizes = [4, 8, 16], strides = [1, 1, 1]} : vector<4x8x32xf32> to vector<4x8x16xf32>
    %114 = arith.truncf %113 : vector<4x8x16xf32> to vector<4x8x16xbf16>
    "tpu.trace_start"() <{level = 10 : i32, message = "bqk,bkd->bqd"}> : () -> ()
    %cst_55 = arith.constant dense<0.000000e+00> : vector<4x8x16xf32>
    %115 = tpu.matmul %112, %114, %cst_55 {dimension_numbers = #tpu.dot_dimension_numbers<[2], [1], [1], [2], [0, 0, 0, 1, 1, 2], [0], [0]>} : vector<4x8x8xbf16>, vector<4x8x16xbf16>, vector<4x8x16xf32> -> vector<4x8x16xf32>
    "tpu.trace_stop"() : () -> ()
    %116 = vector.shape_cast %115 : vector<4x8x16xf32> to vector<32x16xf32>
    %117 = arith.truncf %116 : vector<32x16xf32> to vector<32x16xbf16>
    %118 = vector.extract_strided_slice %63 {offsets = [16, 0], sizes = [16, 32], strides = [1, 1]} : vector<32x32xbf16> to vector<16x32xbf16>
    %cst_56 = arith.constant dense<0.000000e+00> : vector<32x32xf32>
    %119 = tpu.matmul %117, %118, %cst_56 {dimension_numbers = #tpu.dot_dimension_numbers<[1], [0], [0], [1], [0, 0, 1, 1], [], []>} : vector<32x16xbf16>, vector<16x32xbf16>, vector<32x32xf32> -> vector<32x32xf32>
    %120 = arith.addf %92, %119 : vector<32x32xf32>
    %c0_57 = arith.constant 0 : index
    %c0_58 = arith.constant 0 : index
    %c0_59 = arith.constant 0 : index
    %121 = vector.load %arg13[%c0_57, %c0_58, %c0_59] : memref<2x1x32xf32, #tpu.memory_space<vmem>>, vector<1x1x32xf32>
    %122 = vector.shape_cast %121 : vector<1x1x32xf32> to vector<1x32xf32>
    %123 = vector.broadcast %122 : vector<1x32xf32> to vector<32x32xf32>
    %124 = arith.addf %120, %123 : vector<32x32xf32>
    %125 = arith.addf %124, %31 : vector<32x32xf32>
    %c0_60 = arith.constant 0 : index
    %c0_61 = arith.constant 0 : index
    %c0_62 = arith.constant 0 : index
    %126 = vector.load %arg14[%c0_60, %c0_61, %c0_62] : memref<2x1x32xf32, #tpu.memory_space<vmem>>, vector<1x1x32xf32>
    %127 = vector.shape_cast %126 : vector<1x1x32xf32> to vector<1x32xf32>
    %c0_63 = arith.constant 0 : index
    %c0_64 = arith.constant 0 : index
    %c0_65 = arith.constant 0 : index
    %128 = vector.load %arg15[%c0_63, %c0_64, %c0_65] : memref<2x1x32xf32, #tpu.memory_space<vmem>>, vector<1x1x32xf32>
    %129 = vector.shape_cast %128 : vector<1x1x32xf32> to vector<1x32xf32>
    %cst_66 = arith.constant dense<0.000000e+00> : vector<32xf32>
    %130 = vector.multi_reduction <add>, %125, %cst_66 [1] : vector<32x32xf32> to vector<32xf32>
    %131 = vector.shape_cast %130 : vector<32xf32> to vector<32x1xf32>
    %cst_67 = arith.constant 3.200000e+01 : f32
    %132 = vector.broadcast %cst_67 : f32 to vector<32x1xf32>
    %133 = arith.divf %131, %132 : vector<32x1xf32>
    %134 = vector.broadcast %133 : vector<32x1xf32> to vector<32x32xf32>
    %135 = arith.subf %125, %134 : vector<32x32xf32>
    %136 = arith.mulf %135, %135 : vector<32x32xf32>
    %cst_68 = arith.constant dense<0.000000e+00> : vector<32xf32>
    %137 = vector.multi_reduction <add>, %136, %cst_68 [1] : vector<32x32xf32> to vector<32xf32>
    %138 = vector.shape_cast %137 : vector<32xf32> to vector<32x1xf32>
    %cst_69 = arith.constant 3.200000e+01 : f32
    %139 = vector.broadcast %cst_69 : f32 to vector<32x1xf32>
    %140 = arith.divf %138, %139 : vector<32x1xf32>
    %141 = vector.broadcast %133 : vector<32x1xf32> to vector<32x32xf32>
    %142 = arith.subf %125, %141 : vector<32x32xf32>
    %cst_70 = arith.constant 9.99999996E-13 : f32
    %143 = vector.broadcast %cst_70 : f32 to vector<32x1xf32>
    %144 = arith.addf %140, %143 : vector<32x1xf32>
    %145 = math.rsqrt %144 : vector<32x1xf32>
    %146 = vector.broadcast %145 : vector<32x1xf32> to vector<32x32xf32>
    %147 = arith.mulf %142, %146 : vector<32x32xf32>
    %148 = vector.broadcast %127 : vector<1x32xf32> to vector<32x32xf32>
    %149 = arith.mulf %147, %148 : vector<32x32xf32>
    %150 = vector.broadcast %129 : vector<1x32xf32> to vector<32x32xf32>
    %151 = arith.addf %149, %150 : vector<32x32xf32>
    %152 = arith.truncf %151 : vector<32x32xf32> to vector<32x32xbf16>
    %c0_71 = arith.constant 0 : index
    %c0_72 = arith.constant 0 : index
    %c0_73 = arith.constant 0 : index
    %153 = vector.load %arg16[%c0_71, %c0_72, %c0_73] : memref<2x32x64xbf16, #tpu.memory_space<vmem>>, vector<1x32x64xbf16>
    %154 = vector.shape_cast %153 : vector<1x32x64xbf16> to vector<32x64xbf16>
    %cst_74 = arith.constant dense<0.000000e+00> : vector<32x64xf32>
    %155 = tpu.matmul %152, %154, %cst_74 {dimension_numbers = #tpu.dot_dimension_numbers<[1], [0], [0], [1], [0, 0, 1, 1], [], []>} : vector<32x32xbf16>, vector<32x64xbf16>, vector<32x64xf32> -> vector<32x64xf32>
    %c0_75 = arith.constant 0 : index
    %c0_76 = arith.constant 0 : index
    %c0_77 = arith.constant 0 : index
    %156 = vector.load %arg17[%c0_75, %c0_76, %c0_77] : memref<2x1x64xf32, #tpu.memory_space<vmem>>, vector<1x1x64xf32>
    %157 = vector.shape_cast %156 : vector<1x1x64xf32> to vector<1x64xf32>
    %158 = vector.broadcast %157 : vector<1x64xf32> to vector<32x64xf32>
    %159 = arith.addf %155, %158 : vector<32x64xf32>
    %cst_78 = arith.constant 5.000000e-01 : f32
    %160 = vector.broadcast %cst_78 : f32 to vector<32x64xf32>
    %161 = arith.mulf %160, %159 : vector<32x64xf32>
    %cst_79 = arith.constant 4.471500e-02 : f32
    %162 = vector.broadcast %cst_79 : f32 to vector<32x64xf32>
    %163 = arith.mulf %162, %159 : vector<32x64xf32>
    %164 = arith.mulf %163, %159 : vector<32x64xf32>
    %165 = arith.mulf %164, %159 : vector<32x64xf32>
    %166 = arith.addf %159, %165 : vector<32x64xf32>
    %cst_80 = arith.constant 0.797884583 : f32
    %167 = vector.broadcast %cst_80 : f32 to vector<32x64xf32>
    %168 = arith.mulf %167, %166 : vector<32x64xf32>
    %169 = math.tanh %168 : vector<32x64xf32>
    %cst_81 = arith.constant 1.000000e+00 : f32
    %170 = vector.broadcast %cst_81 : f32 to vector<32x64xf32>
    %171 = arith.addf %170, %169 : vector<32x64xf32>
    %172 = arith.mulf %161, %171 : vector<32x64xf32>
    %173 = arith.truncf %172 : vector<32x64xf32> to vector<32x64xbf16>
    %c0_82 = arith.constant 0 : index
    %c0_83 = arith.constant 0 : index
    %c0_84 = arith.constant 0 : index
    %174 = vector.load %arg18[%c0_82, %c0_83, %c0_84] : memref<2x64x32xbf16, #tpu.memory_space<vmem>>, vector<1x64x32xbf16>
    %175 = vector.shape_cast %174 : vector<1x64x32xbf16> to vector<64x32xbf16>
    %cst_85 = arith.constant dense<0.000000e+00> : vector<32x32xf32>
    %176 = tpu.matmul %173, %175, %cst_85 {dimension_numbers = #tpu.dot_dimension_numbers<[1], [0], [0], [1], [0, 0, 1, 1], [], []>} : vector<32x64xbf16>, vector<64x32xbf16>, vector<32x32xf32> -> vector<32x32xf32>
    %c0_86 = arith.constant 0 : index
    %c0_87 = arith.constant 0 : index
    %c0_88 = arith.constant 0 : index
    %177 = vector.load %arg19[%c0_86, %c0_87, %c0_88] : memref<2x1x32xf32, #tpu.memory_space<vmem>>, vector<1x1x32xf32>
    %178 = vector.shape_cast %177 : vector<1x1x32xf32> to vector<1x32xf32>
    %179 = vector.broadcast %178 : vector<1x32xf32> to vector<32x32xf32>
    %180 = arith.addf %176, %179 : vector<32x32xf32>
    %181 = arith.addf %180, %151 : vector<32x32xf32>
    %c0_89 = arith.constant 0 : index
    %c0_90 = arith.constant 0 : index
    %c0_91 = arith.constant 0 : index
    %182 = vector.load %arg20[%c0_89, %c0_90, %c0_91] : memref<2x1x32xf32, #tpu.memory_space<vmem>>, vector<1x1x32xf32>
    %183 = vector.shape_cast %182 : vector<1x1x32xf32> to vector<1x32xf32>
    %c0_92 = arith.constant 0 : index
    %c0_93 = arith.constant 0 : index
    %c0_94 = arith.constant 0 : index
    %184 = vector.load %arg21[%c0_92, %c0_93, %c0_94] : memref<2x1x32xf32, #tpu.memory_space<vmem>>, vector<1x1x32xf32>
    %185 = vector.shape_cast %184 : vector<1x1x32xf32> to vector<1x32xf32>
    %cst_95 = arith.constant dense<0.000000e+00> : vector<32xf32>
    %186 = vector.multi_reduction <add>, %181, %cst_95 [1] : vector<32x32xf32> to vector<32xf32>
    %187 = vector.shape_cast %186 : vector<32xf32> to vector<32x1xf32>
    %cst_96 = arith.constant 3.200000e+01 : f32
    %188 = vector.broadcast %cst_96 : f32 to vector<32x1xf32>
    %189 = arith.divf %187, %188 : vector<32x1xf32>
    %190 = vector.broadcast %189 : vector<32x1xf32> to vector<32x32xf32>
    %191 = arith.subf %181, %190 : vector<32x32xf32>
    %192 = arith.mulf %191, %191 : vector<32x32xf32>
    %cst_97 = arith.constant dense<0.000000e+00> : vector<32xf32>
    %193 = vector.multi_reduction <add>, %192, %cst_97 [1] : vector<32x32xf32> to vector<32xf32>
    %194 = vector.shape_cast %193 : vector<32xf32> to vector<32x1xf32>
    %cst_98 = arith.constant 3.200000e+01 : f32
    %195 = vector.broadcast %cst_98 : f32 to vector<32x1xf32>
    %196 = arith.divf %194, %195 : vector<32x1xf32>
    %197 = vector.broadcast %189 : vector<32x1xf32> to vector<32x32xf32>
    %198 = arith.subf %181, %197 : vector<32x32xf32>
    %cst_99 = arith.constant 9.99999996E-13 : f32
    %199 = vector.broadcast %cst_99 : f32 to vector<32x1xf32>
    %200 = arith.addf %196, %199 : vector<32x1xf32>
    %201 = math.rsqrt %200 : vector<32x1xf32>
    %202 = vector.broadcast %201 : vector<32x1xf32> to vector<32x32xf32>
    %203 = arith.mulf %198, %202 : vector<32x32xf32>
    %204 = vector.broadcast %183 : vector<1x32xf32> to vector<32x32xf32>
    %205 = arith.mulf %203, %204 : vector<32x32xf32>
    %206 = vector.broadcast %185 : vector<1x32xf32> to vector<32x32xf32>
    %207 = arith.addf %205, %206 : vector<32x32xf32>
    %208 = arith.truncf %207 : vector<32x32xf32> to vector<32x32xbf16>
    %c1 = arith.constant 1 : index
    %c0_100 = arith.constant 0 : index
    %c0_101 = arith.constant 0 : index
    %209 = vector.load %arg6[%c1, %c0_100, %c0_101] : memref<2x32x32xbf16, #tpu.memory_space<vmem>>, vector<1x32x32xbf16>
    %210 = vector.shape_cast %209 : vector<1x32x32xbf16> to vector<32x32xbf16>
    %cst_102 = arith.constant dense<0.000000e+00> : vector<32x32xf32>
    %211 = tpu.matmul %208, %210, %cst_102 {dimension_numbers = #tpu.dot_dimension_numbers<[1], [0], [0], [1], [0, 0, 1, 1], [], []>} : vector<32x32xbf16>, vector<32x32xbf16>, vector<32x32xf32> -> vector<32x32xf32>
    %c1_103 = arith.constant 1 : index
    %c0_104 = arith.constant 0 : index
    %c0_105 = arith.constant 0 : index
    %212 = vector.load %arg7[%c1_103, %c0_104, %c0_105] : memref<2x1x32xf32, #tpu.memory_space<vmem>>, vector<1x1x32xf32>
    %213 = vector.shape_cast %212 : vector<1x1x32xf32> to vector<1x32xf32>
    %214 = vector.broadcast %213 : vector<1x32xf32> to vector<32x32xf32>
    %215 = arith.addf %211, %214 : vector<32x32xf32>
    %c1_106 = arith.constant 1 : index
    %c0_107 = arith.constant 0 : index
    %c0_108 = arith.constant 0 : index
    %216 = vector.load %arg8[%c1_106, %c0_107, %c0_108] : memref<2x32x32xbf16, #tpu.memory_space<vmem>>, vector<1x32x32xbf16>
    %217 = vector.shape_cast %216 : vector<1x32x32xbf16> to vector<32x32xbf16>
    %cst_109 = arith.constant dense<0.000000e+00> : vector<32x32xf32>
    %218 = tpu.matmul %208, %217, %cst_109 {dimension_numbers = #tpu.dot_dimension_numbers<[1], [0], [0], [1], [0, 0, 1, 1], [], []>} : vector<32x32xbf16>, vector<32x32xbf16>, vector<32x32xf32> -> vector<32x32xf32>
    %c1_110 = arith.constant 1 : index
    %c0_111 = arith.constant 0 : index
    %c0_112 = arith.constant 0 : index
    %219 = vector.load %arg9[%c1_110, %c0_111, %c0_112] : memref<2x1x32xf32, #tpu.memory_space<vmem>>, vector<1x1x32xf32>
    %220 = vector.shape_cast %219 : vector<1x1x32xf32> to vector<1x32xf32>
    %221 = vector.broadcast %220 : vector<1x32xf32> to vector<32x32xf32>
    %222 = arith.addf %218, %221 : vector<32x32xf32>
    %c1_113 = arith.constant 1 : index
    %c0_114 = arith.constant 0 : index
    %c0_115 = arith.constant 0 : index
    %223 = vector.load %arg10[%c1_113, %c0_114, %c0_115] : memref<2x32x32xbf16, #tpu.memory_space<vmem>>, vector<1x32x32xbf16>
    %224 = vector.shape_cast %223 : vector<1x32x32xbf16> to vector<32x32xbf16>
    %cst_116 = arith.constant dense<0.000000e+00> : vector<32x32xf32>
    %225 = tpu.matmul %208, %224, %cst_116 {dimension_numbers = #tpu.dot_dimension_numbers<[1], [0], [0], [1], [0, 0, 1, 1], [], []>} : vector<32x32xbf16>, vector<32x32xbf16>, vector<32x32xf32> -> vector<32x32xf32>
    %c1_117 = arith.constant 1 : index
    %c0_118 = arith.constant 0 : index
    %c0_119 = arith.constant 0 : index
    %226 = vector.load %arg11[%c1_117, %c0_118, %c0_119] : memref<2x1x32xf32, #tpu.memory_space<vmem>>, vector<1x1x32xf32>
    %227 = vector.shape_cast %226 : vector<1x1x32xf32> to vector<1x32xf32>
    %228 = vector.broadcast %227 : vector<1x32xf32> to vector<32x32xf32>
    %229 = arith.addf %225, %228 : vector<32x32xf32>
    %230 = vector.shape_cast %215 : vector<32x32xf32> to vector<4x8x32xf32>
    %231 = vector.shape_cast %222 : vector<32x32xf32> to vector<4x8x32xf32>
    %232 = vector.shape_cast %229 : vector<32x32xf32> to vector<4x8x32xf32>
    %c1_120 = arith.constant 1 : index
    %c0_121 = arith.constant 0 : index
    %c0_122 = arith.constant 0 : index
    %233 = vector.load %arg12[%c1_120, %c0_121, %c0_122] : memref<2x32x32xbf16, #tpu.memory_space<vmem>>, vector<1x32x32xbf16>
    %234 = vector.shape_cast %233 : vector<1x32x32xbf16> to vector<32x32xbf16>
    %cst_123 = arith.constant 0.000000e+00 : f32
    %235 = vector.broadcast %cst_123 : f32 to vector<32x32xf32>
    %236 = vector.extract_strided_slice %230 {offsets = [0, 0, 0], sizes = [4, 8, 16], strides = [1, 1, 1]} : vector<4x8x32xf32> to vector<4x8x16xf32>
    %237 = arith.truncf %236 : vector<4x8x16xf32> to vector<4x8x16xbf16>
    %238 = vector.extract_strided_slice %231 {offsets = [0, 0, 0], sizes = [4, 8, 16], strides = [1, 1, 1]} : vector<4x8x32xf32> to vector<4x8x16xf32>
    %239 = arith.truncf %238 : vector<4x8x16xf32> to vector<4x8x16xbf16>
    "tpu.trace_start"() <{level = 10 : i32, message = "bqd,bkd->bqk"}> : () -> ()
    %cst_124 = arith.constant dense<0.000000e+00> : vector<4x8x8xf32>
    %240 = tpu.matmul %237, %239, %cst_124 {dimension_numbers = #tpu.dot_dimension_numbers<[2], [2], [1], [1], [0, 0, 0, 1, 1, 1], [0], [0]>} : vector<4x8x16xbf16>, vector<4x8x16xbf16>, vector<4x8x8xf32> -> vector<4x8x8xf32>
    "tpu.trace_stop"() : () -> ()
    %cst_125 = arith.constant 2.500000e-01 : f32
    %241 = vector.broadcast %cst_125 : f32 to vector<4x8x8xf32>
    %242 = arith.mulf %240, %241 : vector<4x8x8xf32>
    %243 = vector.broadcast %36 : vector<4x1x8xf32> to vector<4x8x8xf32>
    %244 = arith.addf %242, %243 : vector<4x8x8xf32>
    %cst_126 = arith.constant dense<0xFF800000> : vector<4x8xf32>
    %245 = vector.multi_reduction <maximumf>, %244, %cst_126 [2] : vector<4x8x8xf32> to vector<4x8xf32>
    %246 = vector.shape_cast %245 : vector<4x8xf32> to vector<4x8x1xf32>
    %247 = vector.broadcast %246 : vector<4x8x1xf32> to vector<4x8x8xf32>
    %248 = arith.subf %244, %247 : vector<4x8x8xf32>
    %249 = math.exp %248 : vector<4x8x8xf32>
    %cst_127 = arith.constant dense<0.000000e+00> : vector<4x8xf32>
    %250 = vector.multi_reduction <add>, %249, %cst_127 [2] : vector<4x8x8xf32> to vector<4x8xf32>
    %251 = vector.shape_cast %250 : vector<4x8xf32> to vector<4x8x1xf32>
    %252 = tpu.reciprocal %251 {approx = true} : vector<4x8x1xf32> -> vector<4x8x1xf32>
    %253 = vector.broadcast %252 : vector<4x8x1xf32> to vector<4x8x8xf32>
    %254 = arith.mulf %249, %253 : vector<4x8x8xf32>
    %255 = arith.truncf %254 : vector<4x8x8xf32> to vector<4x8x8xbf16>
    %256 = vector.extract_strided_slice %232 {offsets = [0, 0, 0], sizes = [4, 8, 16], strides = [1, 1, 1]} : vector<4x8x32xf32> to vector<4x8x16xf32>
    %257 = arith.truncf %256 : vector<4x8x16xf32> to vector<4x8x16xbf16>
    "tpu.trace_start"() <{level = 10 : i32, message = "bqk,bkd->bqd"}> : () -> ()
    %cst_128 = arith.constant dense<0.000000e+00> : vector<4x8x16xf32>
    %258 = tpu.matmul %255, %257, %cst_128 {dimension_numbers = #tpu.dot_dimension_numbers<[2], [1], [1], [2], [0, 0, 0, 1, 1, 2], [0], [0]>} : vector<4x8x8xbf16>, vector<4x8x16xbf16>, vector<4x8x16xf32> -> vector<4x8x16xf32>
    "tpu.trace_stop"() : () -> ()
    %259 = vector.shape_cast %258 : vector<4x8x16xf32> to vector<32x16xf32>
    %260 = arith.truncf %259 : vector<32x16xf32> to vector<32x16xbf16>
    %261 = vector.extract_strided_slice %234 {offsets = [0, 0], sizes = [16, 32], strides = [1, 1]} : vector<32x32xbf16> to vector<16x32xbf16>
    %cst_129 = arith.constant dense<0.000000e+00> : vector<32x32xf32>
    %262 = tpu.matmul %260, %261, %cst_129 {dimension_numbers = #tpu.dot_dimension_numbers<[1], [0], [0], [1], [0, 0, 1, 1], [], []>} : vector<32x16xbf16>, vector<16x32xbf16>, vector<32x32xf32> -> vector<32x32xf32>
    %263 = arith.addf %235, %262 : vector<32x32xf32>
    %264 = vector.extract_strided_slice %230 {offsets = [0, 0, 16], sizes = [4, 8, 16], strides = [1, 1, 1]} : vector<4x8x32xf32> to vector<4x8x16xf32>
    %265 = arith.truncf %264 : vector<4x8x16xf32> to vector<4x8x16xbf16>
    %266 = vector.extract_strided_slice %231 {offsets = [0, 0, 16], sizes = [4, 8, 16], strides = [1, 1, 1]} : vector<4x8x32xf32> to vector<4x8x16xf32>
    %267 = arith.truncf %266 : vector<4x8x16xf32> to vector<4x8x16xbf16>
    "tpu.trace_start"() <{level = 10 : i32, message = "bqd,bkd->bqk"}> : () -> ()
    %cst_130 = arith.constant dense<0.000000e+00> : vector<4x8x8xf32>
    %268 = tpu.matmul %265, %267, %cst_130 {dimension_numbers = #tpu.dot_dimension_numbers<[2], [2], [1], [1], [0, 0, 0, 1, 1, 1], [0], [0]>} : vector<4x8x16xbf16>, vector<4x8x16xbf16>, vector<4x8x8xf32> -> vector<4x8x8xf32>
    "tpu.trace_stop"() : () -> ()
    %cst_131 = arith.constant 2.500000e-01 : f32
    %269 = vector.broadcast %cst_131 : f32 to vector<4x8x8xf32>
    %270 = arith.mulf %268, %269 : vector<4x8x8xf32>
    %271 = vector.broadcast %36 : vector<4x1x8xf32> to vector<4x8x8xf32>
    %272 = arith.addf %270, %271 : vector<4x8x8xf32>
    %cst_132 = arith.constant dense<0xFF800000> : vector<4x8xf32>
    %273 = vector.multi_reduction <maximumf>, %272, %cst_132 [2] : vector<4x8x8xf32> to vector<4x8xf32>
    %274 = vector.shape_cast %273 : vector<4x8xf32> to vector<4x8x1xf32>
    %275 = vector.broadcast %274 : vector<4x8x1xf32> to vector<4x8x8xf32>
    %276 = arith.subf %272, %275 : vector<4x8x8xf32>
    %277 = math.exp %276 : vector<4x8x8xf32>
    %cst_133 = arith.constant dense<0.000000e+00> : vector<4x8xf32>
    %278 = vector.multi_reduction <add>, %277, %cst_133 [2] : vector<4x8x8xf32> to vector<4x8xf32>
    %279 = vector.shape_cast %278 : vector<4x8xf32> to vector<4x8x1xf32>
    %280 = tpu.reciprocal %279 {approx = true} : vector<4x8x1xf32> -> vector<4x8x1xf32>
    %281 = vector.broadcast %280 : vector<4x8x1xf32> to vector<4x8x8xf32>
    %282 = arith.mulf %277, %281 : vector<4x8x8xf32>
    %283 = arith.truncf %282 : vector<4x8x8xf32> to vector<4x8x8xbf16>
    %284 = vector.extract_strided_slice %232 {offsets = [0, 0, 16], sizes = [4, 8, 16], strides = [1, 1, 1]} : vector<4x8x32xf32> to vector<4x8x16xf32>
    %285 = arith.truncf %284 : vector<4x8x16xf32> to vector<4x8x16xbf16>
    "tpu.trace_start"() <{level = 10 : i32, message = "bqk,bkd->bqd"}> : () -> ()
    %cst_134 = arith.constant dense<0.000000e+00> : vector<4x8x16xf32>
    %286 = tpu.matmul %283, %285, %cst_134 {dimension_numbers = #tpu.dot_dimension_numbers<[2], [1], [1], [2], [0, 0, 0, 1, 1, 2], [0], [0]>} : vector<4x8x8xbf16>, vector<4x8x16xbf16>, vector<4x8x16xf32> -> vector<4x8x16xf32>
    "tpu.trace_stop"() : () -> ()
    %287 = vector.shape_cast %286 : vector<4x8x16xf32> to vector<32x16xf32>
    %288 = arith.truncf %287 : vector<32x16xf32> to vector<32x16xbf16>
    %289 = vector.extract_strided_slice %234 {offsets = [16, 0], sizes = [16, 32], strides = [1, 1]} : vector<32x32xbf16> to vector<16x32xbf16>
    %cst_135 = arith.constant dense<0.000000e+00> : vector<32x32xf32>
    %290 = tpu.matmul %288, %289, %cst_135 {dimension_numbers = #tpu.dot_dimension_numbers<[1], [0], [0], [1], [0, 0, 1, 1], [], []>} : vector<32x16xbf16>, vector<16x32xbf16>, vector<32x32xf32> -> vector<32x32xf32>
    %291 = arith.addf %263, %290 : vector<32x32xf32>
    %c1_136 = arith.constant 1 : index
    %c0_137 = arith.constant 0 : index
    %c0_138 = arith.constant 0 : index
    %292 = vector.load %arg13[%c1_136, %c0_137, %c0_138] : memref<2x1x32xf32, #tpu.memory_space<vmem>>, vector<1x1x32xf32>
    %293 = vector.shape_cast %292 : vector<1x1x32xf32> to vector<1x32xf32>
    %294 = vector.broadcast %293 : vector<1x32xf32> to vector<32x32xf32>
    %295 = arith.addf %291, %294 : vector<32x32xf32>
    %296 = arith.addf %295, %207 : vector<32x32xf32>
    %c1_139 = arith.constant 1 : index
    %c0_140 = arith.constant 0 : index
    %c0_141 = arith.constant 0 : index
    %297 = vector.load %arg14[%c1_139, %c0_140, %c0_141] : memref<2x1x32xf32, #tpu.memory_space<vmem>>, vector<1x1x32xf32>
    %298 = vector.shape_cast %297 : vector<1x1x32xf32> to vector<1x32xf32>
    %c1_142 = arith.constant 1 : index
    %c0_143 = arith.constant 0 : index
    %c0_144 = arith.constant 0 : index
    %299 = vector.load %arg15[%c1_142, %c0_143, %c0_144] : memref<2x1x32xf32, #tpu.memory_space<vmem>>, vector<1x1x32xf32>
    %300 = vector.shape_cast %299 : vector<1x1x32xf32> to vector<1x32xf32>
    %cst_145 = arith.constant dense<0.000000e+00> : vector<32xf32>
    %301 = vector.multi_reduction <add>, %296, %cst_145 [1] : vector<32x32xf32> to vector<32xf32>
    %302 = vector.shape_cast %301 : vector<32xf32> to vector<32x1xf32>
    %cst_146 = arith.constant 3.200000e+01 : f32
    %303 = vector.broadcast %cst_146 : f32 to vector<32x1xf32>
    %304 = arith.divf %302, %303 : vector<32x1xf32>
    %305 = vector.broadcast %304 : vector<32x1xf32> to vector<32x32xf32>
    %306 = arith.subf %296, %305 : vector<32x32xf32>
    %307 = arith.mulf %306, %306 : vector<32x32xf32>
    %cst_147 = arith.constant dense<0.000000e+00> : vector<32xf32>
    %308 = vector.multi_reduction <add>, %307, %cst_147 [1] : vector<32x32xf32> to vector<32xf32>
    %309 = vector.shape_cast %308 : vector<32xf32> to vector<32x1xf32>
    %cst_148 = arith.constant 3.200000e+01 : f32
    %310 = vector.broadcast %cst_148 : f32 to vector<32x1xf32>
    %311 = arith.divf %309, %310 : vector<32x1xf32>
    %312 = vector.broadcast %304 : vector<32x1xf32> to vector<32x32xf32>
    %313 = arith.subf %296, %312 : vector<32x32xf32>
    %cst_149 = arith.constant 9.99999996E-13 : f32
    %314 = vector.broadcast %cst_149 : f32 to vector<32x1xf32>
    %315 = arith.addf %311, %314 : vector<32x1xf32>
    %316 = math.rsqrt %315 : vector<32x1xf32>
    %317 = vector.broadcast %316 : vector<32x1xf32> to vector<32x32xf32>
    %318 = arith.mulf %313, %317 : vector<32x32xf32>
    %319 = vector.broadcast %298 : vector<1x32xf32> to vector<32x32xf32>
    %320 = arith.mulf %318, %319 : vector<32x32xf32>
    %321 = vector.broadcast %300 : vector<1x32xf32> to vector<32x32xf32>
    %322 = arith.addf %320, %321 : vector<32x32xf32>
    %323 = arith.truncf %322 : vector<32x32xf32> to vector<32x32xbf16>
    %c1_150 = arith.constant 1 : index
    %c0_151 = arith.constant 0 : index
    %c0_152 = arith.constant 0 : index
    %324 = vector.load %arg16[%c1_150, %c0_151, %c0_152] : memref<2x32x64xbf16, #tpu.memory_space<vmem>>, vector<1x32x64xbf16>
    %325 = vector.shape_cast %324 : vector<1x32x64xbf16> to vector<32x64xbf16>
    %cst_153 = arith.constant dense<0.000000e+00> : vector<32x64xf32>
    %326 = tpu.matmul %323, %325, %cst_153 {dimension_numbers = #tpu.dot_dimension_numbers<[1], [0], [0], [1], [0, 0, 1, 1], [], []>} : vector<32x32xbf16>, vector<32x64xbf16>, vector<32x64xf32> -> vector<32x64xf32>
    %c1_154 = arith.constant 1 : index
    %c0_155 = arith.constant 0 : index
    %c0_156 = arith.constant 0 : index
    %327 = vector.load %arg17[%c1_154, %c0_155, %c0_156] : memref<2x1x64xf32, #tpu.memory_space<vmem>>, vector<1x1x64xf32>
    %328 = vector.shape_cast %327 : vector<1x1x64xf32> to vector<1x64xf32>
    %329 = vector.broadcast %328 : vector<1x64xf32> to vector<32x64xf32>
    %330 = arith.addf %326, %329 : vector<32x64xf32>
    %cst_157 = arith.constant 5.000000e-01 : f32
    %331 = vector.broadcast %cst_157 : f32 to vector<32x64xf32>
    %332 = arith.mulf %331, %330 : vector<32x64xf32>
    %cst_158 = arith.constant 4.471500e-02 : f32
    %333 = vector.broadcast %cst_158 : f32 to vector<32x64xf32>
    %334 = arith.mulf %333, %330 : vector<32x64xf32>
    %335 = arith.mulf %334, %330 : vector<32x64xf32>
    %336 = arith.mulf %335, %330 : vector<32x64xf32>
    %337 = arith.addf %330, %336 : vector<32x64xf32>
    %cst_159 = arith.constant 0.797884583 : f32
    %338 = vector.broadcast %cst_159 : f32 to vector<32x64xf32>
    %339 = arith.mulf %338, %337 : vector<32x64xf32>
    %340 = math.tanh %339 : vector<32x64xf32>
    %cst_160 = arith.constant 1.000000e+00 : f32
    %341 = vector.broadcast %cst_160 : f32 to vector<32x64xf32>
    %342 = arith.addf %341, %340 : vector<32x64xf32>
    %343 = arith.mulf %332, %342 : vector<32x64xf32>
    %344 = arith.truncf %343 : vector<32x64xf32> to vector<32x64xbf16>
    %c1_161 = arith.constant 1 : index
    %c0_162 = arith.constant 0 : index
    %c0_163 = arith.constant 0 : index
    %345 = vector.load %arg18[%c1_161, %c0_162, %c0_163] : memref<2x64x32xbf16, #tpu.memory_space<vmem>>, vector<1x64x32xbf16>
    %346 = vector.shape_cast %345 : vector<1x64x32xbf16> to vector<64x32xbf16>
    %cst_164 = arith.constant dense<0.000000e+00> : vector<32x32xf32>
    %347 = tpu.matmul %344, %346, %cst_164 {dimension_numbers = #tpu.dot_dimension_numbers<[1], [0], [0], [1], [0, 0, 1, 1], [], []>} : vector<32x64xbf16>, vector<64x32xbf16>, vector<32x32xf32> -> vector<32x32xf32>
    %c1_165 = arith.constant 1 : index
    %c0_166 = arith.constant 0 : index
    %c0_167 = arith.constant 0 : index
    %348 = vector.load %arg19[%c1_165, %c0_166, %c0_167] : memref<2x1x32xf32, #tpu.memory_space<vmem>>, vector<1x1x32xf32>
    %349 = vector.shape_cast %348 : vector<1x1x32xf32> to vector<1x32xf32>
    %350 = vector.broadcast %349 : vector<1x32xf32> to vector<32x32xf32>
    %351 = arith.addf %347, %350 : vector<32x32xf32>
    %352 = arith.addf %351, %322 : vector<32x32xf32>
    %c1_168 = arith.constant 1 : index
    %c0_169 = arith.constant 0 : index
    %c0_170 = arith.constant 0 : index
    %353 = vector.load %arg20[%c1_168, %c0_169, %c0_170] : memref<2x1x32xf32, #tpu.memory_space<vmem>>, vector<1x1x32xf32>
    %354 = vector.shape_cast %353 : vector<1x1x32xf32> to vector<1x32xf32>
    %c1_171 = arith.constant 1 : index
    %c0_172 = arith.constant 0 : index
    %c0_173 = arith.constant 0 : index
    %355 = vector.load %arg21[%c1_171, %c0_172, %c0_173] : memref<2x1x32xf32, #tpu.memory_space<vmem>>, vector<1x1x32xf32>
    %356 = vector.shape_cast %355 : vector<1x1x32xf32> to vector<1x32xf32>
    %cst_174 = arith.constant dense<0.000000e+00> : vector<32xf32>
    %357 = vector.multi_reduction <add>, %352, %cst_174 [1] : vector<32x32xf32> to vector<32xf32>
    %358 = vector.shape_cast %357 : vector<32xf32> to vector<32x1xf32>
    %cst_175 = arith.constant 3.200000e+01 : f32
    %359 = vector.broadcast %cst_175 : f32 to vector<32x1xf32>
    %360 = arith.divf %358, %359 : vector<32x1xf32>
    %361 = vector.broadcast %360 : vector<32x1xf32> to vector<32x32xf32>
    %362 = arith.subf %352, %361 : vector<32x32xf32>
    %363 = arith.mulf %362, %362 : vector<32x32xf32>
    %cst_176 = arith.constant dense<0.000000e+00> : vector<32xf32>
    %364 = vector.multi_reduction <add>, %363, %cst_176 [1] : vector<32x32xf32> to vector<32xf32>
    %365 = vector.shape_cast %364 : vector<32xf32> to vector<32x1xf32>
    %cst_177 = arith.constant 3.200000e+01 : f32
    %366 = vector.broadcast %cst_177 : f32 to vector<32x1xf32>
    %367 = arith.divf %365, %366 : vector<32x1xf32>
    %368 = vector.broadcast %360 : vector<32x1xf32> to vector<32x32xf32>
    %369 = arith.subf %352, %368 : vector<32x32xf32>
    %cst_178 = arith.constant 9.99999996E-13 : f32
    %370 = vector.broadcast %cst_178 : f32 to vector<32x1xf32>
    %371 = arith.addf %367, %370 : vector<32x1xf32>
    %372 = math.rsqrt %371 : vector<32x1xf32>
    %373 = vector.broadcast %372 : vector<32x1xf32> to vector<32x32xf32>
    %374 = arith.mulf %369, %373 : vector<32x32xf32>
    %375 = vector.broadcast %354 : vector<1x32xf32> to vector<32x32xf32>
    %376 = arith.mulf %374, %375 : vector<32x32xf32>
    %377 = vector.broadcast %356 : vector<1x32xf32> to vector<32x32xf32>
    %378 = arith.addf %376, %377 : vector<32x32xf32>
    %379 = vector.shape_cast %378 : vector<32x32xf32> to vector<4x8x32xf32>
    %380 = vector.extract_strided_slice %379 {offsets = [0, 0, 0], sizes = [4, 1, 32], strides = [1, 1, 1]} : vector<4x8x32xf32> to vector<4x1x32xf32>
    %381 = vector.shape_cast %380 : vector<4x1x32xf32> to vector<4x32xf32>
    %382 = arith.truncf %381 : vector<4x32xf32> to vector<4x32xbf16>
    %c0_179 = arith.constant 0 : index
    %c0_180 = arith.constant 0 : index
    %383 = vector.load %arg22[%c0_179, %c0_180] : memref<32x32xbf16, #tpu.memory_space<vmem>>, vector<32x32xbf16>
    %cst_181 = arith.constant dense<0.000000e+00> : vector<4x32xf32>
    %384 = tpu.matmul %382, %383, %cst_181 {dimension_numbers = #tpu.dot_dimension_numbers<[1], [0], [0], [1], [0, 0, 1, 1], [], []>} : vector<4x32xbf16>, vector<32x32xbf16>, vector<4x32xf32> -> vector<4x32xf32>
    %c0_182 = arith.constant 0 : index
    %c0_183 = arith.constant 0 : index
    %385 = vector.load %arg23[%c0_182, %c0_183] : memref<1x32xf32, #tpu.memory_space<vmem>>, vector<1x32xf32>
    %386 = vector.broadcast %385 : vector<1x32xf32> to vector<4x32xf32>
    %387 = arith.addf %384, %386 : vector<4x32xf32>
    %388 = math.tanh %387 : vector<4x32xf32>
    %389 = arith.truncf %388 : vector<4x32xf32> to vector<4x32xbf16>
    %c0_184 = arith.constant 0 : index
    %c0_185 = arith.constant 0 : index
    %390 = vector.load %arg24[%c0_184, %c0_185] : memref<32x2xbf16, #tpu.memory_space<vmem>>, vector<32x2xbf16>
    %cst_186 = arith.constant dense<0.000000e+00> : vector<4x2xf32>
    %391 = tpu.matmul %389, %390, %cst_186 {dimension_numbers = #tpu.dot_dimension_numbers<[1], [0], [0], [1], [0, 0, 1, 1], [], []>} : vector<4x32xbf16>, vector<32x2xbf16>, vector<4x2xf32> -> vector<4x2xf32>
    %c0_187 = arith.constant 0 : index
    %c0_188 = arith.constant 0 : index
    %392 = vector.load %arg25[%c0_187, %c0_188] : memref<1x2xf32, #tpu.memory_space<vmem>>, vector<1x2xf32>
    %393 = vector.broadcast %392 : vector<1x2xf32> to vector<4x2xf32>
    %394 = arith.addf %391, %393 : vector<4x2xf32>
    %395 = tpu.iota {dimensions = array<i32: 1>} : vector<4x2xi32>
    %c1_i32 = arith.constant 1 : i32
    %396 = vector.broadcast %c1_i32 : i32 to vector<4x2xi32>
    %397 = arith.cmpi eq, %395, %396 : vector<4x2xi32>
    %cst_189 = arith.constant 0.000000e+00 : f32
    %398 = vector.broadcast %cst_189 : f32 to vector<4x2xf32>
    %399 = arith.select %397, %394, %398 : vector<4x2xi1>, vector<4x2xf32>
    %cst_190 = arith.constant dense<0.000000e+00> : vector<4xf32>
    %400 = vector.multi_reduction <add>, %399, %cst_190 [1] : vector<4x2xf32> to vector<4xf32>
    %401 = vector.shape_cast %400 : vector<4xf32> to vector<4x1xf32>
    %c0_191 = arith.constant 0 : index
    %c0_192 = arith.constant 0 : index
    %402 = vector.load %arg26[%c0_191, %c0_192] : memref<4x1xf32, #tpu.memory_space<vmem>>, vector<4x1xf32>
    tpu.vector_store %arg26[%c0_191, %c0_192], %401 {strides = array<i32>} : memref<4x1xf32, #tpu.memory_space<vmem>>, vector<4x1xf32>,
    %403 = tpu.iota {dimensions = array<i32: 0>} : vector<2x4xi32>
    %404 = tpu.iota {dimensions = array<i32: 1>} : vector<2x4xi32>
    %c2_i32 = arith.constant 2 : i32
    %405 = vector.broadcast %c2_i32 : i32 to vector<2x4xi32>
    %406 = arith.muli %403, %405 : vector<2x4xi32>
    %c0_i32 = arith.constant 0 : i32
    %407 = vector.broadcast %c0_i32 : i32 to vector<2x4xi32>
    %408 = arith.addi %406, %407 : vector<2x4xi32>
    %409 = arith.cmpi eq, %404, %408 : vector<2x4xi32>
    %410 = arith.extui %409 : vector<2x4xi1> to vector<2x4xi32>
    %411 = arith.sitofp %410 : vector<2x4xi32> to vector<2x4xf32>
    %cst_193 = arith.constant dense<0.000000e+00> : vector<2x1xf32>
    %412 = tpu.matmul %411, %401, %cst_193 {dimension_numbers = #tpu.dot_dimension_numbers<[1], [0], [0], [1], [0, 0, 1, 1], [], []>} : vector<2x4xf32>, vector<4x1xf32>, vector<2x1xf32> -> vector<2x1xf32>
    %c2_i32_194 = arith.constant 2 : i32
    %413 = vector.broadcast %c2_i32_194 : i32 to vector<2x4xi32>
    %414 = arith.muli %403, %413 : vector<2x4xi32>
    %c1_i32_195 = arith.constant 1 : i32
    %415 = vector.broadcast %c1_i32_195 : i32 to vector<2x4xi32>
    %416 = arith.addi %414, %415 : vector<2x4xi32>
    %417 = arith.cmpi eq, %404, %416 : vector<2x4xi32>
    %418 = arith.extui %417 : vector<2x4xi1> to vector<2x4xi32>
    %419 = arith.sitofp %418 : vector<2x4xi32> to vector<2x4xf32>
    %cst_196 = arith.constant dense<0.000000e+00> : vector<2x1xf32>
    %420 = tpu.matmul %419, %401, %cst_196 {dimension_numbers = #tpu.dot_dimension_numbers<[1], [0], [0], [1], [0, 0, 1, 1], [], []>} : vector<2x4xf32>, vector<4x1xf32>, vector<2x1xf32> -> vector<2x1xf32>
    %421 = arith.maximumf %412, %420 : vector<2x1xf32>
    %cst_197 = arith.constant 0.000000e+00 : f32
    %422 = vector.broadcast %cst_197 : f32 to vector<2x1xf32>
    %423 = arith.subf %412, %421 : vector<2x1xf32>
    %424 = math.exp %423 : vector<2x1xf32>
    %425 = arith.addf %422, %424 : vector<2x1xf32>
    %426 = arith.subf %420, %421 : vector<2x1xf32>
    %427 = math.exp %426 : vector<2x1xf32>
    %428 = arith.addf %425, %427 : vector<2x1xf32>
    %429 = math.log %428 : vector<2x1xf32>
    %430 = arith.addf %429, %421 : vector<2x1xf32>
    %431 = arith.subf %430, %412 : vector<2x1xf32>
    %cst_198 = arith.constant dense<0.000000e+00> : vector<1xf32>
    %432 = vector.multi_reduction <add>, %431, %cst_198 [0] : vector<2x1xf32> to vector<1xf32>
    %433 = vector.shape_cast %432 : vector<1xf32> to vector<1x1xf32>
    %cst_199 = arith.constant 2.000000e+00 : f32
    %434 = vector.broadcast %cst_199 : f32 to vector<1x1xf32>
    %435 = arith.divf %433, %434 : vector<1x1xf32>
    %c0_200 = arith.constant 0 : index
    %c0_201 = arith.constant 0 : index
    %436 = vector.load %arg27[%c0_200, %c0_201] : memref<1x1xf32, #tpu.memory_space<vmem>>, vector<1x1xf32>
    tpu.vector_store %arg27[%c0_200, %c0_201], %435 {strides = array<i32>} : memref<1x1xf32, #tpu.memory_space<vmem>>, vector<1x1xf32>,
    return
  }
}

</mosaic_0001>

<bundles_post_ra>
// kernel: tpu_custom_call.1
= control target key start
LH: loop header
LB: loop body
LE: loop exit
PB: predicated region body
PF: predicated region fallthrough
CT: control target
= control target key end

     0   :  { %s6055_s0 = inlined_call_operand.vmem [shape: f32[4,8,32], index: 0, kind: input, shape index: {}]   ;;  %s6056_s1 = inlined_call_operand.vmem [shape: f32[4,8,32], index: 1, kind: input, shape index: {}]   ;;  %s6057_s2 = inlined_call_operand.hbm [shape: f32[8,32], index: 2, kind: input, shape index: {}]   ;;  %s6058_s3 = inlined_call_operand.hbm [shape: f32[4,1,8], index: 3, kind: input, shape index: {}]   ;;  %s6059_s4 = inlined_call_operand.hbm [shape: f32[1,32], index: 4, kind: input, shape index: {}]   ;;  %s6060_s5 = inlined_call_operand.hbm [shape: f32[1,32], index: 5, kind: input, shape index: {}]   ;;  %s6061_s6 = inlined_call_operand.vmem [shape: bf16[2,32,32], index: 6, kind: input, shape index: {}]   ;;  %s6062_s7 = inlined_call_operand.hbm [shape: f32[2,1,32], index: 7, kind: input, shape index: {}]   ;;  %s6063_s8 = inlined_call_operand.hbm [shape: bf16[2,32,32], index: 8, kind: input, shape index: {}]   ;;  %s6064_s9 = inlined_call_operand.hbm [shape: f32[2,1,32], index: 9, kind: input, shape index: {}]   ;;  %s6065_s10 = inlined_call_operand.vmem [shape: bf16[2,32,32], index: 10, kind: input, shape index: {}]   ;;  %s6066_s11 = inlined_call_operand.hbm [shape: f32[2,1,32], index: 11, kind: input, shape index: {}]   ;;  %s6067_s12 = inlined_call_operand.hbm [shape: bf16[2,32,32], index: 12, kind: input, shape index: {}]   ;;  %s6068_s13 = inlined_call_operand.hbm [shape: f32[2,1,32], index: 13, kind: input, shape index: {}]   ;;  %s6069_s14 = inlined_call_operand.hbm [shape: f32[2,1,32], index: 14, kind: input, shape index: {}]   ;;  %s6070_s15 = inlined_call_operand.hbm [shape: f32[2,1,32], index: 15, kind: input, shape index: {}]   ;;  %s6071_s16 = inlined_call_operand.hbm [shape: bf16[2,32,64], index: 16, kind: input, shape index: {}]   ;;  %s6072_s17 = inlined_call_operand.hbm [shape: f32[2,1,64], index: 17, kind: input, shape index: {}]   ;;  %s6073_s18 = inlined_call_operand.vmem [shape: bf16[2,64,32], index: 18, kind: input, shape index: {}]   ;;  %s6074_s19 = inlined_call_operand.vmem [shape: f32[2,1,32], index: 19, kind: input, shape index: {}]   ;;  %s6075_s20 = inlined_call_operand.vmem [shape: f32[2,1,32], index: 20, kind: input, shape index: {}]   ;;  %s6076_s21 = inlined_call_operand.vmem [shape: f32[2,1,32], index: 21, kind: input, shape index: {}]   ;;  %s6077_s22 = inlined_call_operand.vmem [shape: bf16[32,32], index: 22, kind: input, shape index: {}]   ;;  %s6078_s23 = inlined_call_operand.vmem [shape: f32[1,32], index: 23, kind: input, shape index: {}]   ;;  %s6079_s24 = inlined_call_operand.vmem [shape: bf16[32,2], index: 24, kind: input, shape index: {}]   ;;  %s6080_s25 = inlined_call_operand.vmem [shape: f32[1,2], index: 25, kind: input, shape index: {}]   ;;  %s6081_s26 = inlined_call_operand.vmem [shape: f32[4,1], index: 26, kind: output, shape index: {0}]   ;;  %s6082_s27 = inlined_call_operand.hbm [shape: f32[1,1], index: 27, kind: output, shape index: {1}]  }
   0x1   :  { %6087 = sst [smem:[#allocation35_spill]] %s6055_s0 }
   0x2   :  { %6088 = sst [smem:[#allocation36_spill]] %s6056_s1 }
   0x3   :  { %6089 = sst [smem:[#allocation37_spill]] %s6057_s2 }
   0x4   :  { %6090 = sst [smem:[#allocation38_spill]] %s6058_s3 }
   0x5   :  { %6091 = sst [smem:[#allocation39_spill]] %s6059_s4 }
   0x6   :  { %6092 = sst [smem:[#allocation40_spill]] %s6060_s5 }
   0x7   :  { %6093 = sst [smem:[#allocation41_spill]] %s6061_s6 }
   0x8   :  { %6094 = sst [smem:[#allocation42_spill]] %s6062_s7 }
   0x9   :  { %6095 = sst [smem:[#allocation43_spill]] %s6063_s8 }
   0xa   :  { %6096 = sst [smem:[#allocation44_spill]] %s6064_s9 }
   0xb   :  { %6097 = sst [smem:[#allocation45_spill]] %s6065_s10 }
   0xc   :  { %6098 = sst [smem:[#allocation46_spill]] %s6066_s11 }
   0xd   :  { %6099 = sst [smem:[#allocation47_spill]] %s6082_s27 }
   0xe   :  { %33 = vsyncpa [#allocation3], 0 }
   0xf   :  { %34 = vsyncpa [#allocation6], 0 }
  0x10   :  { %35 = vsyncpa [#allocation9], 0 }
  0x11   :  { %36 = vsyncpa [#allocation12], 0 }
  0x12   :  { %37 = vsyncpa [#allocation15], 0 }
  0x13   :  { %38 = vsyncpa [#allocation18], 0 }
  0x14   :  { %39 = vsyncpa [#allocation21], 0 }
  0x15   :  { %40 = vsyncpa [#allocation24], 0 }
  0x16   :  { %41 = vsyncpa [#allocation4], 0  ;;  %s5158_s7 = smov [#allocation5]  }
  0x17   :  { %s61_s4 = sshll.u32 %s5158_s7, 4  ;;  %s62_s4 = int_to_ptr.vmem [resolvable:$true] %s61_s4 }
  0x18   :  { %s4848_s8 = scalar_lea.vmem %s62_s4, 64  ;;  %p4853_p1 = scmp.lt.s32.totalorder %s62_s4, %s62_s4 }
  0x19   :  { %p4849_p0 = scmp.ne.s32.totalorder %s62_s4, %s4848_s8  ;;  %p4854_p2 = scmp.lt.s32.totalorder %s4848_s8, %s4848_s8 }
  0x1b   :  { %p4855_p3 = por %p4854_p2, %p4853_p1 }
  0x1d   :  { %p4856_p4 = pnand %p4855_p3, %p4849_p0 }
  0x1f   :  { %4859 = shalt.err (!%p4856_p4)
}
  0x20   :  { %s5159_s30 = smov 16   ;;  %s5160_s9 = smov 1  }
  0x21   :  { %s6100_s0 = sld [smem:[#allocation38_spill]]  ;;  %s5161_s10 = smov [#allocation8]  }
  0x22   :  { %s84_s29 = sshll.u32 %s5161_s10, 4  ;;  %s5162_s1 = smov [#allocation11]   ;;  %s85_s29 = int_to_ptr.vmem [resolvable:$true] %s84_s29 }
  0x23   :  { %s107_s6 = sshll.u32 %s5162_s1, 4  ;;  %s4868_s11 = scalar_lea.vmem %s85_s29, 16  ;;  %s108_s6 = int_to_ptr.vmem [resolvable:$true] %s107_s6 }
  0x24   :  { %p4869_p5 = scmp.ne.s32.totalorder %s85_s29, %s4868_s11  ;;  %s4872_s2 = scalar_lea.vmem %s85_s29, 32 }
  0x25   :  { %p4873_p6 = scmp.lt.s32.totalorder %s85_s29, %s85_s29  ;;  %p4874_p7 = scmp.lt.s32.totalorder %s4872_s2, %s4868_s11 }
  0x27   :  { %67 = dma.hbm_to_vmem [thread:$0]  %s6100_s0, 64, %s62_s4, [#allocation6], %s5159_s30, %s5159_s30, %s5160_s9  }
  0x28   :  { %p4875_p8 = por %p4874_p7, %p4873_p6 }
  0x2a   :  { %p4876_p9 = pnand %p4875_p8, %p4869_p5 }
  0x2c   :  { %4879 = shalt.err (!%p4876_p9)
}
  0x2d   :  { %s6101_s8 = sld [smem:[#allocation40_spill]]  ;;  %s4888_s5 = scalar_lea.vmem %s108_s6, 512 }
  0x2e   :  { %p4889_p10 = scmp.ne.s32.totalorder %s108_s6, %s4888_s5  ;;  %p4893_p11 = scmp.lt.s32.totalorder %s108_s6, %s108_s6 }
  0x2f   :  { %p4894_p12 = scmp.lt.s32.totalorder %s4888_s5, %s4888_s5 }
  0x31   :  { %p4895_p13 = por %p4894_p12, %p4893_p11 }
  0x33   :  { %87 = dma.hbm_to_vmem [thread:$0]  %s6101_s8, 16, %s85_s29, [#allocation9]  }
  0x34   :  { %p4896_p0 = pnand %p4895_p13, %p4889_p10 }
  0x36   :  { %4899 = shalt.err (!%p4896_p0)
}
  0x37   :  { %s5163_s4 = smov 64   ;;  %s5164_s28 = smov 4  }
  0x38   :  { %s6102_s1 = sld [smem:[#allocation43_spill]]  ;;  %s5165_s11 = smov [#allocation14]  }
  0x39   :  { %s133_s2 = sshll.u32 %s5165_s11, 4  ;;  %s5166_s29 = smov [#allocation17]   ;;  %s134_s2 = int_to_ptr.vmem [resolvable:$true] %s133_s2 }
  0x3a   :  { %s157_s3 = sshll.u32 %s5166_s29, 4  ;;  %s4908_s7 = scalar_lea.vmem %s134_s2, 32  ;;  %s158_s3 = int_to_ptr.vmem [resolvable:$true] %s157_s3 }
  0x3b   :  { %p4909_p1 = scmp.ne.s32.totalorder %s134_s2, %s4908_s7  ;;  %p4913_p2 = scmp.lt.s32.totalorder %s134_s2, %s134_s2 }
  0x3c   :  { %p4914_p3 = scmp.lt.s32.totalorder %s4908_s7, %s4908_s7 }
  0x3e   :  { %113 = dma.hbm_to_vmem [thread:$0]  %s6102_s1, 512, %s108_s6, [#allocation12], %s5163_s4, %s5163_s4, %s5164_s28  }
  0x3f   :  { %p4915_p4 = por %p4914_p3, %p4913_p2 }
  0x41   :  { %p4916_p5 = pnand %p4915_p4, %p4909_p1 }
  0x43   :  { %4919 = shalt.err (!%p4916_p5)
}
  0x44   :  { %s6103_s27 = sld [smem:[#allocation46_spill]]  ;;  %s4928_s6 = scalar_lea.vmem %s158_s3, 32 }
  0x45   :  { %p4929_p6 = scmp.ne.s32.totalorder %s158_s3, %s4928_s6  ;;  %p4933_p7 = scmp.lt.s32.totalorder %s158_s3, %s158_s3 }
  0x46   :  { %p4934_p8 = scmp.lt.s32.totalorder %s4928_s6, %s4928_s6 }
  0x48   :  { %p4935_p9 = por %p4934_p8, %p4933_p7 }
  0x4a   :  { %139 = dma.hbm_to_vmem [thread:$0]  %s6103_s27, 32, %s134_s2, [#allocation15], %s5159_s30, %s5159_s30, %s5160_s9  }
  0x4b   :  { %p4936_p10 = pnand %p4935_p9, %p4929_p6 }
  0x4d   :  { %4939 = shalt.err (!%p4936_p10)
}
  0x4e   :  { %163 = dma.hbm_to_vmem [thread:$0]  %s6068_s13, 32, %s158_s3, [#allocation18], %s5159_s30, %s5159_s30, %s5160_s9  }
  0x4f   :  { %s5167_s1 = smov [#allocation20]   ;;  %s5168_s29 = smov [#allocation2]  }
  0x50   :  { %s181_s11 = sshll.u32 %s5167_s1, 4  ;;  %s52_s27 = sshll.u32 %s5168_s29, 4  ;;  %s182_s11 = int_to_ptr.vmem [resolvable:$true] %s181_s11  ;;  %s53_s27 = int_to_ptr.vmem [resolvable:$true] %s52_s27 }
  0x51   :  { %s4948_s2 = scalar_lea.vmem %s182_s11, 32  ;;  %p4953_p12 = scmp.lt.s32.totalorder %s182_s11, %s182_s11 }
  0x52   :  { %p4949_p11 = scmp.ne.s32.totalorder %s182_s11, %s4948_s2  ;;  %p4954_p13 = scmp.lt.s32.totalorder %s4948_s2, %s4948_s2 }
  0x54   :  { %p4955_p0 = por %p4954_p13, %p4953_p12 }
  0x56   :  { %p4956_p1 = pnand %p4955_p0, %p4949_p11 }
  0x58   :  { %4959 = shalt.err (!%p4956_p1)
}
  0x59   :  { %187 = dma.hbm_to_vmem [thread:$0]  %s6070_s15, 32, %s182_s11, [#allocation21], %s5159_s30, %s5159_s30, %s5160_s9  }
  0x5a   :  { %s4968_s13 = scalar_lea.vmem %s53_s27, 128  ;;  %p4973_p3 = scmp.lt.s32.totalorder %s53_s27, %s53_s27 }
  0x5b   :  { %p4969_p2 = scmp.ne.s32.totalorder %s53_s27, %s4968_s13  ;;  %p4974_p4 = scmp.lt.s32.totalorder %s4968_s13, %s4968_s13 }
  0x5d   :  { %p4975_p5 = por %p4974_p4, %p4973_p3 }
  0x5f   :  { %p4976_p6 = pnand %p4975_p5, %p4969_p2 }
  0x61   :  { %4979 = shalt.err (!%p4976_p6)
}
  0x62   :  { %s6104_s6 = sld [smem:[#allocation37_spill]]  ;;  %s5169_s0 = smov [#allocation7]  }
  0x63   :  { %s74_s10 = sshll.u32 %s5169_s0, 4  ;;  %s5170_s1 = smov [#allocation10]   ;;  %s75_s10 = int_to_ptr.vmem [resolvable:$true] %s74_s10 }
  0x64   :  { %s95_s29 = sshll.u32 %s5170_s1, 4  ;;  %s4988_s2 = scalar_lea.vmem %s75_s10, 16  ;;  %s96_s29 = int_to_ptr.vmem [resolvable:$true] %s95_s29 }
  0x65   :  { %p4989_p7 = scmp.ne.s32.totalorder %s75_s10, %s4988_s2  ;;  %s4992_s15 = scalar_lea.vmem %s75_s10, 32 }
  0x66   :  { %p4993_p8 = scmp.lt.s32.totalorder %s75_s10, %s75_s10  ;;  %p4994_p9 = scmp.lt.s32.totalorder %s4992_s15, %s4988_s2 }
  0x68   :  { %55 = dma.hbm_to_vmem [thread:$0]  %s6104_s6, 128, %s53_s27, [#allocation3]  }
  0x69   :  { %p4995_p10 = por %p4994_p9, %p4993_p8 }
  0x6b   :  { %p4996_p11 = pnand %p4995_p10, %p4989_p7 }
  0x6d   :  { %4999 = shalt.err (!%p4996_p11)
}
  0x6e   :  { %s6105_s8 = sld [smem:[#allocation39_spill]]  ;;  %s5008_s13 = scalar_lea.vmem %s96_s29, 32 }
  0x6f   :  { %p5009_p12 = scmp.ne.s32.totalorder %s96_s29, %s5008_s13  ;;  %p5013_p13 = scmp.lt.s32.totalorder %s96_s29, %s96_s29 }
  0x70   :  { %p5014_p0 = scmp.lt.s32.totalorder %s5008_s13, %s5008_s13 }
  0x72   :  { %p5015_p1 = por %p5014_p0, %p5013_p13 }
  0x74   :  { %77 = dma.hbm_to_vmem [thread:$0]  %s6105_s8, 16, %s75_s10, [#allocation6]  }
  0x75   :  { %p5016_p2 = pnand %p5015_p1, %p5009_p12 }
  0x77   :  { %5019 = shalt.err (!%p5016_p2)
}
  0x78   :  { %s6106_s5 = sld [smem:[#allocation42_spill]]  ;;  %s5171_s6 = smov [#allocation13]  }
  0x79   :  { %s119_s0 = sshll.u32 %s5171_s6, 4  ;;  %s5172_s1 = smov [#allocation16]   ;;  %s120_s0 = int_to_ptr.vmem [resolvable:$true] %s119_s0 }
  0x7a   :  { %s145_s10 = sshll.u32 %s5172_s1, 4  ;;  %s5028_s2 = scalar_lea.vmem %s120_s0, 32  ;;  %s146_s10 = int_to_ptr.vmem [resolvable:$true] %s145_s10 }
  0x7b   :  { %p5029_p3 = scmp.ne.s32.totalorder %s120_s0, %s5028_s2  ;;  %p5033_p4 = scmp.lt.s32.totalorder %s120_s0, %s120_s0 }
  0x7c   :  { %p5034_p5 = scmp.lt.s32.totalorder %s5028_s2, %s5028_s2 }
  0x7e   :  { %101 = dma.hbm_to_vmem [thread:$0]  %s6106_s5, 32, %s96_s29, [#allocation9], %s5159_s30, %s5159_s30, %s5160_s9  }
  0x7f   :  { %p5035_p6 = por %p5034_p5, %p5033_p4 }
  0x81   :  { %p5036_p7 = pnand %p5035_p6, %p5029_p3 }
  0x83   :  { %5039 = shalt.err (!%p5036_p7)
}
  0x84   :  { %s6107_s7 = sld [smem:[#allocation44_spill]]  ;;  %s5048_s29 = scalar_lea.vmem %s146_s10, 512 }
  0x85   :  { %p5049_p8 = scmp.ne.s32.totalorder %s146_s10, %s5048_s29  ;;  %p5053_p9 = scmp.lt.s32.totalorder %s146_s10, %s146_s10 }
  0x86   :  { %p5054_p10 = scmp.lt.s32.totalorder %s5048_s29, %s5048_s29 }
  0x88   :  { %p5055_p11 = por %p5054_p10, %p5053_p9 }
  0x8a   :  { %125 = dma.hbm_to_vmem [thread:$0]  %s6107_s7, 32, %s120_s0, [#allocation12], %s5159_s30, %s5159_s30, %s5160_s9  }
  0x8b   :  { %p5056_p12 = pnand %p5055_p11, %p5049_p8 }
  0x8d   :  { %5059 = shalt.err (!%p5056_p12)
}
  0x8e   :  { %151 = dma.hbm_to_vmem [thread:$0]  %s6067_s12, 512, %s146_s10, [#allocation15], %s5163_s4, %s5163_s4, %s5164_s28  }
  0x8f   :  { %s5173_s27 = smov [#allocation19]   ;;  %s5174_s5 = smov [#allocation22]  }
  0x90   :  { %s169_s3 = sshll.u32 %s5173_s27, 4  ;;  %s193_s6 = sshll.u32 %s5174_s5, 4  ;;  %s170_s3 = int_to_ptr.vmem [resolvable:$true] %s169_s3  ;;  %s194_s6 = int_to_ptr.vmem [resolvable:$true] %s193_s6 }
  0x91   :  { %s5068_s0 = scalar_lea.vmem %s170_s3, 32  ;;  %p5073_p0 = scmp.lt.s32.totalorder %s170_s3, %s170_s3 }
  0x92   :  { %p5069_p13 = scmp.ne.s32.totalorder %s170_s3, %s5068_s0  ;;  %p5074_p1 = scmp.lt.s32.totalorder %s5068_s0, %s5068_s0 }
  0x94   :  { %p5075_p2 = por %p5074_p1, %p5073_p0 }
  0x96   :  { %p5076_p3 = pnand %p5075_p2, %p5069_p13 }
  0x98   :  { %5079 = shalt.err (!%p5076_p3)
}
  0x99   :  { %175 = dma.hbm_to_vmem [thread:$0]  %s6069_s14, 32, %s170_s3, [#allocation18], %s5159_s30, %s5159_s30, %s5160_s9  }
  0x9a   :  { %s5088_s12 = scalar_lea.vmem %s194_s6, 512  ;;  %p5093_p5 = scmp.lt.s32.totalorder %s194_s6, %s194_s6 }
  0x9b   :  { %p5089_p4 = scmp.ne.s32.totalorder %s194_s6, %s5088_s12  ;;  %p5094_p6 = scmp.lt.s32.totalorder %s5088_s12, %s5088_s12 }
  0x9d   :  { %p5095_p7 = por %p5094_p6, %p5093_p5 }
  0x9f   :  { %p5096_p8 = pnand %p5095_p7, %p5089_p4 }
  0xa1   :  { %5099 = shalt.err (!%p5096_p8)
}
  0xa2   :  { %199 = dma.hbm_to_vmem [thread:$0]  %s6071_s16, 512, %s194_s6, [#allocation21], %s5163_s4, %s5163_s4, %s5164_s28  }
  0xa3   :  { %s5175_s11 = smov [#allocation23]  }
  0xa4   :  { %s205_s7 = sshll.u32 %s5175_s11, 4  ;;  %s206_s7 = int_to_ptr.vmem [resolvable:$true] %s205_s7 }
  0xa5   :  { %s5108_s29 = scalar_lea.vmem %s206_s7, 32  ;;  %p5113_p10 = scmp.lt.s32.totalorder %s206_s7, %s206_s7 }
  0xa6   :  { %p5109_p9 = scmp.ne.s32.totalorder %s206_s7, %s5108_s29  ;;  %p5114_p11 = scmp.lt.s32.totalorder %s5108_s29, %s5108_s29 }
  0xa8   :  { %p5115_p12 = por %p5114_p11, %p5113_p10 }
  0xaa   :  { %p5116_p13 = pnand %p5115_p12, %p5109_p9 }
  0xac   :  { %5119 = shalt.err (!%p5116_p13)
}
  0xad   :  { %211 = dma.hbm_to_vmem [thread:$0]  %s6072_s17, 32, %s206_s7, [#allocation24], %s5159_s30, %s5159_s30, %s5160_s9  }
  0xae   :  { %5140 = dma.done.wait [#allocation3], 128  }
  0xaf   :  { %5141 = vsyncadd [#allocation3], 4294967168 }
  0xb0   :  { %5142 = dma.done.wait [#allocation6], 80  }
  0xb1   :  { %5143 = vsyncadd [#allocation6], 4294967216 }
  0xb2   :  { %5144 = dma.done.wait [#allocation9], 48  }
  0xb3   :  { %5145 = vsyncadd [#allocation9], 4294967248 }
  0xb4   :  { %5146 = dma.done.wait [#allocation12], 544  }
  0xb5   :  { %5147 = vsyncadd [#allocation12], 4294966752 }
  0xb6   :  { %5148 = dma.done.wait [#allocation15], 544  }
  0xb7   :  { %5149 = vsyncadd [#allocation15], 4294966752 }
  0xb8   :  { %5150 = dma.done.wait [#allocation18], 64  }
  0xb9   :  { %5151 = vsyncadd [#allocation18], 4294967232 }
  0xba   :  { %5152 = dma.done.wait [#allocation21], 544  }
  0xbb   :  { %5153 = vsyncadd [#allocation21], 4294966752 }
  0xbc   :  { %5154 = dma.done.wait [#allocation24], 32  }
  0xbd   :  { %5155 = vsyncadd [#allocation24], 4294967264  ;;  %s6108_s28 = sld [smem:[#allocation35_spill]]  ;;  %v283_v2 = vld [vmem:[#allocation2] sm:$0xff]  ;;  %vm290_vm0 = vcmask 261120   ;;  %v4683_v44 = vld [vmem:[#allocation11] sm:$0xff]  }
  0xbe   :  { %s6109_s9 = sld [smem:[#allocation36_spill]]  ;;  %v4681_v42 = vld [vmem:[#allocation11 + $0x8] sm:$0xff]   ;;  %v4055_v60 = vld [vmem:[#allocation7] ss:$0 sm:$0xff]  ;;  %vm5177_vm1 = vmmov 0   ;;  %vm612_vm2 = vcmask 130048  }
  0xbf   :  { %s6110_s14 = sld [smem:[#allocation41_spill]]  ;;  %4336 = vmatprep.subr.bf16.mxu1 %v4681_v42  ;;  %vm885_vm3 = vcmask 1043456   ;;  %vm829_vm4 = vcmask 64512   ;;  %s5178_s13 = smov 112   ;;  %vm1899_vm5 = vcmask 523264   ;;  %vm3702_vm6 = vcmask 1041409  }
  0xc0   :  { %4337 = vmatpush3.bf16.msra.mxu1 %v4681_v42  ;;  %s6111_s17 = sld [smem:[#allocation45_spill]]  ;;  %vm3705_vm7 = vcmask 1042434   ;;  %vm3708_vm8 = vcmask 1043459   ;;  %vm3838_vm10 = vcmask 11264   ;;  %vm3842_vm13 = vcmask 3072  }
  0xc1   :  { %4338 = vmatprep.subr.bf16.mxu1 %v4683_v44  ;;  %vm3850_vm14 = vcmask 31744   ;;  %vm4017_vm15 = vcmask 1024  }
  0xc3   :  { %v271_v0 = vld [vmem:[%s6108_s28] sm:$0xff]  ;;  %v273_v4 = vld [vmem:[%s6108_s28 + $0x10] sm:$0xff]  ;;  %v272_v6 = vld [vmem:[%s6108_s28 + $0x8] sm:$0xff] }
  0xc4   :  { %v275_v1 = vld [vmem:[%s6109_s9] sm:$0xff]  ;;  %v277_v5 = vld [vmem:[%s6109_s9 + $0x10] sm:$0xff]  ;;  %v276_v8 = vld [vmem:[%s6109_s9 + $0x8] sm:$0xff]  ;;  %4339 = vmatpush3.bf16.msra.mxu1 %v4683_v44 }
  0xc5   :  { %v279_v3 = vadd.f32 %v275_v1, %v271_v0  ;;  %v281_v7 = vadd.f32 %v277_v5, %v273_v4  ;;  %v274_v9 = vld [vmem:[%s6108_s28 + $0x18] sm:$0xff]  ;;  %v280_v12 = vadd.f32 %v276_v8, %v272_v6  ;;  %v4680_v41 = vld [vmem:[%s6110_s14 + $0x8] sm:$0xff]   ;;  %v4682_v43 = vld [vmem:[%s6110_s14] sm:$0xff]  }
  0xc6   :  { %v278_v10 = vld [vmem:[%s6109_s9 + $0x18] sm:$0xff]  ;;  %4328 = vmatprep.subr.bf16.mxu0 %v4680_v41  ;;  %v4684_v45 = vld [vmem:[%s6111_s17 + $0x8] sm:$0xff]  }
  0xc7   :  { %v284_v11 = vadd.f32 %v283_v2, %v279_v3  ;;  %v282_v13 = vadd.f32 %v278_v10, %v274_v9  ;;  %v286_v14 = vadd.f32 %v283_v2, %v281_v7  ;;  %v285_v16 = vadd.f32 %v283_v2, %v280_v12  ;;  %4329 = vmatpush3.bf16.msra.mxu0 %v4680_v41  ;;  %v4056_v1 = vld [vmem:[#allocation8] ss:$0 sm:$0xff] }
  0xc8   :  { %4330 = vmatprep.subr.bf16.mxu0 %v4682_v43 }
  0xc9   :  { %v291_v15 = vsel %vm290_vm0, %v284_v11, 0.0  ;;  %v287_v17 = vadd.f32 %v283_v2, %v282_v13  ;;  %v297_v18 = vsel %vm290_vm0, %v286_v14, 0.0  ;;  %v294_v19 = vsel %vm290_vm0, %v285_v16, 0.0 }
  0xca   :  { %292 = vadd.xlane.f32.xlu0 %v291_v15  ;;  %298 = vadd.xlane.f32.xlu1 %v297_v18  ;;  %v5176_v15 = vmov 0.0   ;;  %v4062_v18 = vld [vmem:[#allocation13] ss:$0 sm:$0xff] }
  0xcb   :  { %v300_v20 = vsel %vm290_vm0, %v287_v17, 0.0  ;;  %4331 = vmatpush3.bf16.msra.mxu0 %v4682_v43  ;;  %4352 = vmatprep.subr.bf16.mxu1 %v5176_v15 }
  0xcc   :  { %4344 = vmatprep.subr.bf16.mxu0 %v4684_v45 }
  0xce   :  { %295 = vadd.xlane.f32.xlu0 %v294_v19  ;;  %301 = vadd.xlane.f32.xlu1 %v300_v20 }
 0x153   :  { %v293_v21 = vpop.xlane.xlu0 %292  ;;  %v299_v23 = vpop.xlane.xlu1 %298 }
 0x154   :  { %v304_v22 = vmul.f32 0.03125, %v293_v21  ;;  %v306_v24 = vmul.f32 0.03125, %v299_v23 }
 0x156   :  { %v308_v25 = vsub.f32 %v284_v11, %v304_v22  ;;  %v310_v26 = vsub.f32 %v286_v14, %v306_v24  ;;  %v4685_v14 = vld [vmem:[%s6111_s17] sm:$0xff]  }
 0x157   :  { %v296_v27 = vpop.xlane.xlu0 %295  ;;  %v302_v29 = vpop.xlane.xlu1 %301 }
 0x158   :  { %v305_v28 = vmul.f32 0.03125, %v296_v27  ;;  %v312_v30 = vmul.f32 %v308_v25, %v308_v25  ;;  %v307_v31 = vmul.f32 0.03125, %v302_v29  ;;  %v314_v32 = vmul.f32 %v310_v26, %v310_v26  ;;  %v4067_v27 = vld [vmem:[#allocation14] ss:$0 sm:$0xff] }
 0x15a   :  { %v309_v33 = vsub.f32 %v285_v16, %v305_v28  ;;  %v316_v34 = vsel %vm290_vm0, %v312_v30, 0.0  ;;  %v311_v35 = vsub.f32 %v287_v17, %v307_v31  ;;  %v322_v36 = vsel %vm290_vm0, %v314_v32, 0.0  ;;  %v4057_v31 = vld [vmem:[#allocation10] ss:$0 sm:$0xff] }
 0x15b   :  { %317 = vadd.xlane.f32.xlu0 %v316_v34 }
 0x15c   :  { %v313_v37 = vmul.f32 %v309_v33, %v309_v33  ;;  %v315_v38 = vmul.f32 %v311_v35, %v311_v35 }
 0x15e   :  { %v319_v39 = vsel %vm290_vm0, %v313_v37, 0.0  ;;  %v325_v40 = vsel %vm290_vm0, %v315_v38, 0.0 }
 0x15f   :  { %323 = vadd.xlane.f32.xlu0 %v322_v36  ;;  %320 = vadd.xlane.f32.xlu1 %v319_v39 }
 0x163   :  { %326 = vadd.xlane.f32.xlu1 %v325_v40 }
 0x1e4   :  { %v318_v46 = vpop.xlane.xlu0 %317 }
 0x1e5   :  { %v328_v47 = vmul.f32 0.03125, %v318_v46 }
 0x1e7   :  { %v332_v48 = vadd.f32 1e-12, %v328_v47 }
 0x1e8   :  { %v321_v49 = vpop.xlane.xlu1 %320  ;;  %v324_v50 = vpop.xlane.xlu0 %323 }
 0x1e9   :  { %4712 = vrsqrt.f32 %v332_v48  ;;  %v329_v51 = vmul.f32 0.03125, %v321_v49  ;;  %v330_v52 = vmul.f32 0.03125, %v324_v50 }
 0x1eb   :  { %v333_v53 = vadd.f32 1e-12, %v329_v51  ;;  %v334_v54 = vadd.f32 1e-12, %v330_v52 }
 0x1ec   :  { %v327_v55 = vpop.xlane.xlu1 %326 }
 0x1ed   :  { %4714 = vrsqrt.f32 %v333_v53  ;;  %v331_v56 = vmul.f32 0.03125, %v327_v55 }
 0x1ee   :  { %4716 = vrsqrt.f32 %v334_v54 }
 0x1ef   :  { %v335_v57 = vadd.f32 1e-12, %v331_v56 }
 0x1f1   :  { %4718 = vrsqrt.f32 %v335_v57 }
 0x1f6   :  { %v4713_v58 = vpop.eup %4712 }
 0x1f7   :  { %v340_v59 = vmul.f32 %v4713_v58, %v308_v25 }
 0x1f9   :  { %v350_v0 = vmul.f32 %v4055_v60, %v340_v59  ;;  %v805_v59 = vlaneseq }
 0x1fa   :  { %v4715_v61 = vpop.eup %4714 }
 0x1fb   :  { %v4717_v62 = vpop.eup %4716  ;;  %v341_v63 = vmul.f32 %v4715_v61, %v309_v33  ;;  %v5436_v5 = vadd.f32 %v4056_v1, %v350_v0 }
 0x1fc   :  { %v342_v2 = vmul.f32 %v4717_v62, %v310_v26  ;;  %v5522_v62 = vshrl.u32 %v805_v59, 7 }
 0x1fd   :  { %v351_v3 = vmul.f32 %v4055_v60, %v341_v63  ;;  %v365_v63 = vld [vmem:[#allocation5 + $0x1] sm:$0x1] }
 0x1fe   :  { %v4719_v4 = vpop.eup %4718  ;;  %v352_v8 = vmul.f32 %v4055_v60, %v342_v2  ;;  %v369_v2 = vsub.f32 1.0, %v365_v63 }
 0x1ff   :  { %v5438_v6 = vadd.f32 %v4056_v1, %v351_v3  ;;  %v343_v7 = vmul.f32 %v4719_v4, %v311_v35  ;;  %v366_v3 = vld [vmem:[#allocation5 + $0x2] sm:$0x1] }
 0x200   :  { %v5444_v11 = vadd.f32 %v4056_v1, %v352_v8  ;;  %v370_v8 = vsub.f32 1.0, %v366_v3 }
 0x201   :  { %v376_v9 = vpack.c.bf16 %v5438_v6, %v5436_v5  ;;  %v353_v10 = vmul.f32 %v4055_v60, %v343_v7  ;;  %v364_v60 = vld [vmem:[#allocation5] sm:$0x1]  ;;  %v373_v7 = vmul.f32 -1e+09, %v369_v2 }
 0x202   :  { %v368_v61 = vsub.f32 1.0, %v364_v60 }
 0x203   :  { %4332 = vmatprep.mubr.msk.bf16.mxu0 %vm290_vm0, %v376_v9  ;;  %4340 = vmatprep.mubr.msk.bf16.mxu1 %vm290_vm0, %v376_v9  ;;  %v5446_v12 = vadd.f32 %v4056_v1, %v353_v10  ;;  %v807_v1 = vsub.s32 0, %v5522_v62  ;;  %v367_v10 = vld [vmem:[#allocation5 + $0x3] sm:$0x1] }
 0x204   :  { %v372_v0 = vmul.f32 -1e+09, %v368_v61 }
 0x205   :  { %v377_v13 = vpack.c.bf16 %v5446_v12, %v5444_v11 }
 0x206   :  { %v5525_v4 = vrot.slane %v372_v0, %v807_v1 }
 0x207   :  { %4333 = vmatmul.mubr.msk.bf16.vlgmr.msra.gmra.mxu0 %vm290_vm0, %v377_v13  ;;  %4341 = vmatmul.mubr.msk.bf16.vlgmr.msra.gmra.mxu1 %vm290_vm0, %v377_v13 }
 0x208   :  { %4345 = vmatpush3.bf16.msra.mxu0 %v4684_v45  ;;  %4348 = vmatprep.mubr.msk.bf16.mxu0 %vm290_vm0, %v376_v9 }
 0x209   :  { %4346 = vmatprep.subr.bf16.mxu0 %v4685_v14  ;;  %4354 = vmatprep.mubr.msk.bf16.mxu1 %vm5177_vm1, %v5176_v15 }
 0x20c   :  { %4347 = vmatpush3.bf16.msra.mxu0 %v4685_v14 }
 0x20d   :  { %4358 = vmatprep.subr.bf16.mxu0 %v5176_v15 }
 0x20f   :  { %4349 = vmatmul.mubr.msk.bf16.vlgmr.msra.gmra.mxu0 %vm290_vm0, %v377_v13 }
 0x210   :  { %4360 = vmatprep.mubr.msk.bf16.mxu0 %vm5177_vm1, %v5176_v15 }
 0x2c7   :  { %v4334_v16 = vpop.f32.mrf.mxu0  ;;  %v4342_v17 = vpop.f32.mrf.mxu1 }
 0x2c8   :  { %v522_v28 = vadd.f32 %v4342_v17, %v4062_v18  ;;  %v450_v48 = vadd.f32 %v4334_v16, %v4057_v31  ;;  %v5528_v17 = vrot.slane %v373_v7, %v807_v1 }
 0x2c9   :  { %v441_v19 = vpop.f32.mrf.mxu0  ;;  %v513_v20 = vpop.f32.mrf.mxu1 }
 0x2ca   :  { %v514_v21 = vadd.f32 %v4062_v18, %v513_v20  ;;  %v442_v33 = vadd.f32 %v4057_v31, %v441_v19  ;;  %v5472_v37 = vpack.c.bf16 %v522_v28, %v522_v28  ;;  %v5500_v53 = vpack.c.bf16 %v450_v48, %v450_v48 }
 0x2cb   :  { %v4335_v22 = vpop.f32.mrf.mxu0  ;;  %v4343_v23 = vpop.f32.mrf.mxu1  ;;  %v371_v19 = vsub.f32 1.0, %v367_v10 }
 0x2cc   :  { %v5463_v24 = vpack.c.bf16 %v514_v21, %v514_v21  ;;  %v525_v38 = vadd.f32 %v4343_v23, %v4062_v18  ;;  %v5476_v41 = vpack.c.bf16 %v442_v33, %v442_v33  ;;  %v709_v44 = vsel %vm612_vm2, %v5472_v37, 0 }
 0x2cd   :  { %v444_v25 = vpop.f32.mrf.mxu0  ;;  %v516_v26 = vpop.f32.mrf.mxu1  ;;  %v453_v54 = vadd.f32 %v4335_v22, %v4057_v31 }
 0x2ce   :  { %v617_v29 = vsel %vm612_vm2, %v5463_v24, 0  ;;  %v517_v30 = vadd.f32 %v4062_v18, %v516_v26  ;;  %v445_v42 = vadd.f32 %v4057_v31, %v444_v25  ;;  %v5483_v45 = vpack.c.bf16 %v525_v38, %v525_v38 }
 0x2cf   :  { %v4350_v32 = vpop.f32.mrf.mxu0  ;;  %4353 = vmatpush3.bf16.xpose.msra.mxu1 %v617_v29  ;;  %v5511_v57 = vpack.c.bf16 %v453_v54, %v453_v54  ;;  %v374_v18 = vmul.f32 -1e+09, %v370_v8  ;;  %v375_v29 = vmul.f32 -1e+09, %v371_v19 }
 0x2d0   :  { %v5467_v34 = vpack.c.bf16 %v517_v30, %v517_v30  ;;  %v5469_v35 = vadd.f32 %v4350_v32, %v4067_v27  ;;  %4364 = vmatprep.subr.bf16.mxu1 %v5176_v15  ;;  %v5489_v49 = vpack.c.bf16 %v445_v42, %v445_v42  ;;  %v755_v50 = vsel %vm612_vm2, %v5483_v45, 0 }
 0x2d1   :  { %v585_v36 = vpop.f32.mrf.mxu0  ;;  %v5532_v28 = vrot.slane %v374_v18, %v807_v1 }
 0x2d2   :  { %v663_v39 = vsel %vm612_vm2, %v5467_v34, 0  ;;  %v586_v46 = vadd.f32 %v4067_v27, %v585_v36 }
 0x2d3   :  { %v4351_v40 = vpop.f32.mrf.mxu0  ;;  %4359 = vmatpush3.bf16.xpose.msra.mxu0 %v663_v39 }
 0x2d4   :  { %v5478_v43 = vadd.f32 %v4351_v40, %v4067_v27  ;;  %4370 = vmatprep.subr.bf16.mxu0 %v5176_v15  ;;  %v5494_v51 = vpack.c.bf16 %v586_v46, %v586_v46  ;;  %v5536_v40 = vrot.slane %v375_v29, %v807_v1 }
 0x2d5   :  { %v588_v47 = vpop.f32.mrf.mxu0 }
 0x2d6   :  { %4355 = vmatmul.mubr.msk.bf16.vlgmr.msra.gmra.mxu1 %vm612_vm2, %v5476_v41  ;;  %v589_v52 = vadd.f32 %v4067_v27, %v588_v47  ;;  %v887_v55 = vsel %vm885_vm3, %v5494_v51, 0 }
 0x2d7   :  { %4365 = vmatpush3.bf16.xpose.msra.mxu1 %v709_v44  ;;  %4366 = vmatprep.mubr.msk.bf16.mxu1 %vm5177_vm1, %v5176_v15 }
 0x2d8   :  { %4376 = vmatprep.subr.bf16.mxu1 %v5176_v15  ;;  %v5505_v56 = vpack.c.bf16 %v589_v52, %v589_v52 }
 0x2da   :  { %4361 = vmatmul.mubr.msk.bf16.vlgmr.msra.gmra.mxu0 %vm612_vm2, %v5489_v49  ;;  %v933_v58 = vsel %vm885_vm3, %v5505_v56, 0 }
 0x2db   :  { %4371 = vmatpush3.bf16.xpose.msra.mxu0 %v755_v50  ;;  %4372 = vmatprep.mubr.msk.bf16.mxu0 %vm5177_vm1, %v5176_v15 }
 0x2dc   :  { %4382 = vmatprep.subr.bf16.mxu0 %v5176_v15 }
 0x2de   :  { %4367 = vmatmul.mubr.msk.bf16.vlgmr.msra.gmra.mxu1 %vm612_vm2, %v5500_v53 }
 0x2df   :  { %4377 = vmatpush3.bf16.msra.mxu1 %v887_v55  ;;  %4378 = vmatprep.mubr.msk.bf16.mxu1 %vm5177_vm1, %v5176_v15 }
 0x2e0   :  { %4388 = vmatprep.subr.bf16.mxu1 %v5176_v15 }
 0x2e2   :  { %4373 = vmatmul.mubr.msk.bf16.vlgmr.msra.gmra.mxu0 %vm612_vm2, %v5511_v57 }
 0x2e3   :  { %4383 = vmatpush3.bf16.msra.mxu0 %v933_v58  ;;  %4384 = vmatprep.mubr.msk.bf16.mxu0 %vm5177_vm1, %v5176_v15 }
 0x2e4   :  { %4394 = vmatprep.subr.bf16.mxu0 %v5176_v15 }
 0x396   :  { %v653_v9 = vpop.f32.mrf.mxu1 }
 0x397   :  { %v797_v13 = vmul.f32 0.25, %v653_v9 }
 0x398   :  { %v4356_v14 = vpop.f32.mrf.mxu1 }
 0x399   :  { %v825_v16 = vadd.f32 %v5525_v4, %v797_v13 }
 0x39a   :  { %v656_v20 = vpop.f32.mrf.mxu1  ;;  %v699_v21 = vpop.f32.mrf.mxu0 }
 0x39b   :  { %v798_v22 = vmul.f32 0.25, %v699_v21  ;;  %v830_v23 = vsel %vm829_vm4, %v825_v16, -inf }
 0x39c   :  { %v4362_v25 = vpop.f32.mrf.mxu0  ;;  %831 = vmax.xlane.f32.xlu0 %v830_v23  ;;  %v4357_v26 = vpop.f32.mrf.mxu1 }
 0x39d   :  { %v826_v27 = vadd.f32 %v5528_v17, %v798_v22 }
 0x39e   :  { %v702_v30 = vpop.f32.mrf.mxu0  ;;  %v745_v31 = vpop.f32.mrf.mxu1 }
 0x39f   :  { %v799_v32 = vmul.f32 0.25, %v745_v31  ;;  %v833_v33 = vsel %vm829_vm4, %v826_v27, -inf }
 0x3a0   :  { %834 = vmax.xlane.f32.xlu1 %v833_v33  ;;  %v4363_v36 = vpop.f32.mrf.mxu0  ;;  %v4368_v38 = vpop.f32.mrf.mxu1 }
 0x3a1   :  { %v827_v39 = vadd.f32 %v5532_v28, %v799_v32 }
 0x3a2   :  { %v748_v42 = vpop.f32.mrf.mxu1  ;;  %v791_v44 = vpop.f32.mrf.mxu0 }
 0x3a3   :  { %v800_v46 = vmul.f32 0.25, %v791_v44  ;;  %v836_v47 = vsel %vm829_vm4, %v827_v39, -inf }
 0x3a4   :  { %v4374_v48 = vpop.f32.mrf.mxu0  ;;  %837 = vmax.xlane.f32.xlu0 %v836_v47  ;;  %v4369_v50 = vpop.f32.mrf.mxu1 }
 0x3a5   :  { %v828_v52 = vadd.f32 %v5536_v40, %v800_v46 }
 0x3a6   :  { %v794_v54 = vpop.f32.mrf.mxu0 }
 0x3a7   :  { %v839_v55 = vsel %vm829_vm4, %v828_v52, -inf }
 0x3a8   :  { %840 = vmax.xlane.f32.xlu1 %v839_v55  ;;  %v4375_v58 = vpop.f32.mrf.mxu0 }
 0x425   :  { %v832_v60 = vpop.xlane.xlu0 %831 }
 0x426   :  { %v842_v61 = vsub.f32 %v825_v16, %v832_v60 }
 0x428   :  { %v846_v63 = vmul.f32 1.442695, %v842_v61 }
 0x429   :  { %v835_v0 = vpop.xlane.xlu1 %834 }
 0x42a   :  { %4720 = vpow2.f32 %v846_v63  ;;  %v843_v1 = vsub.f32 %v826_v27, %v835_v0 }
 0x42c   :  { %v848_v2 = vmul.f32 1.442695, %v843_v1 }
 0x42d   :  { %v838_v3 = vpop.xlane.xlu0 %837 }
 0x42e   :  { %4722 = vpow2.f32 %v848_v2  ;;  %v844_v7 = vsub.f32 %v827_v39, %v838_v3 }
 0x430   :  { %v850_v8 = vmul.f32 1.442695, %v844_v7 }
 0x431   :  { %v841_v19 = vpop.xlane.xlu1 %840 }
 0x432   :  { %4724 = vpow2.f32 %v850_v8  ;;  %v845_v20 = vsub.f32 %v828_v52, %v841_v19 }
 0x434   :  { %v852_v21 = vmul.f32 1.442695, %v845_v20 }
 0x436   :  { %4726 = vpow2.f32 %v852_v21 }
 0x437   :  { %v4721_v9 = vpop.eup %4720 }
 0x438   :  { %v854_v10 = vsel %vm829_vm4, %v4721_v9, 0.0 }
 0x439   :  { %855 = vadd.xlane.f32.xlu0 %v854_v10 }
 0x43b   :  { %v4723_v13 = vpop.eup %4722 }
 0x43c   :  { %v857_v14 = vsel %vm829_vm4, %v4723_v13, 0.0 }
 0x43d   :  { %858 = vadd.xlane.f32.xlu1 %v857_v14 }
 0x43f   :  { %v4725_v18 = vpop.eup %4724 }
 0x440   :  { %v860_v16 = vsel %vm829_vm4, %v4725_v18, 0.0 }
 0x441   :  { %861 = vadd.xlane.f32.xlu0 %v860_v16 }
 0x443   :  { %v4727_v22 = vpop.eup %4726 }
 0x444   :  { %v863_v23 = vsel %vm829_vm4, %v4727_v22, 0.0 }
 0x44e   :  { %1125 = vrot.lane.b32.xlu1 %v5467_v34, %s5178_s13 }
 0x452   :  { %1070 = vrot.lane.b32.xlu1 %v5476_v41, %s5178_s13 }
 0x457   :  { %1073 = vrot.lane.b32.xlu0 %v5463_v24, %s5178_s13 }
 0x45b   :  { %1177 = vrot.lane.b32.xlu0 %v5472_v37, %s5178_s13 }
 0x45f   :  { %1174 = vrot.lane.b32.xlu0 %v5500_v53, %s5178_s13  ;;  %v5563_v53 = vpack.c.bf16 %v5469_v35, %v5469_v35 }
 0x476   :  { %864 = vadd.xlane.f32.xlu1 %v863_v23 }
 0x487   :  { %1122 = vrot.lane.b32.xlu1 %v5489_v49, %s5178_s13 }
 0x48b   :  { %1229 = vrot.lane.b32.xlu1 %v5483_v45, %s5178_s13  ;;  %v979_v45 = vsel %vm885_vm3, %v5563_v53, 0 }
 0x48f   :  { %1226 = vrot.lane.b32.xlu1 %v5511_v57, %s5178_s13  ;;  %v5569_v57 = vpack.c.bf16 %v5478_v43, %v5478_v43 }
 0x491   :  { %v1025_v30 = vsel %vm885_vm3, %v5569_v57, 0 }
 0x4c2   :  { %v856_v24 = vpop.xlane.xlu0 %855 }
 0x4c3   :  { %4728 = vrcp.f32 %v856_v24 }
 0x4c6   :  { %v859_v34 = vpop.xlane.xlu1 %858 }
 0x4c7   :  { %4730 = vrcp.f32 %v859_v34 }
 0x4ca   :  { %v862_v37 = vpop.xlane.xlu0 %861  ;;  %v1126_v36 = vpop.permute.xlu1 %1125 }
 0x4cb   :  { %4732 = vrcp.f32 %v862_v37  ;;  %v1131_v54 = vsel %vm612_vm2, %v1126_v36, 0 }
 0x4ce   :  { %v1074_v32 = vpop.permute.xlu0 %1073  ;;  %v1071_v39 = vpop.permute.xlu1 %1070 }
 0x4cf   :  { %v1079_v33 = vsel %vm612_vm2, %v1074_v32, 0 }
 0x4d0   :  { %v4729_v41 = vpop.eup %4728 }
 0x4d1   :  { %v870_v25 = vmul.f32 %v4729_v41, %v4721_v9 }
 0x4d2   :  { %v1178_v38 = vpop.permute.xlu0 %1177 }
 0x4d3   :  { %v874_v26 = vpack.c.bf16 %v870_v25, %v870_v25  ;;  %v1183_v42 = vsel %vm612_vm2, %v1178_v38, 0 }
 0x4d4   :  { %v4731_v49 = vpop.eup %4730 }
 0x4d5   :  { %4379 = vmatmul.mubr.msk.bf16.vlgmr.msra.gmra.mxu1 %vm829_vm4, %v874_v26  ;;  %v871_v27 = vmul.f32 %v4731_v49, %v4723_v13 }
 0x4d6   :  { %4389 = vmatpush3.bf16.msra.mxu1 %v979_v45  ;;  %4390 = vmatprep.mubr.msk.bf16.mxu1 %vm5177_vm1, %v5176_v15  ;;  %v1175_v44 = vpop.permute.xlu0 %1174 }
 0x4d7   :  { %v875_v29 = vpack.c.bf16 %v871_v27, %v871_v27  ;;  %4400 = vmatprep.subr.bf16.mxu1 %v5176_v15 }
 0x4d8   :  { %v4733_v35 = vpop.eup %4732 }
 0x4d9   :  { %4385 = vmatmul.mubr.msk.bf16.vlgmr.msra.gmra.mxu0 %vm829_vm4, %v875_v29  ;;  %v872_v31 = vmul.f32 %v4733_v35, %v4725_v18 }
 0x4da   :  { %4395 = vmatpush3.bf16.msra.mxu0 %v1025_v30  ;;  %4396 = vmatprep.mubr.msk.bf16.mxu0 %vm5177_vm1, %v5176_v15 }
 0x4db   :  { %v876_v43 = vpack.c.bf16 %v872_v31, %v872_v31  ;;  %4406 = vmatprep.subr.bf16.mxu0 %v5176_v15 }
 0x4dd   :  { %4391 = vmatmul.mubr.msk.bf16.vlgmr.msra.gmra.mxu1 %vm829_vm4, %v876_v43 }
 0x4de   :  { %4401 = vmatpush3.bf16.xpose.msra.mxu1 %v1079_v33  ;;  %4402 = vmatprep.mubr.msk.bf16.mxu1 %vm5177_vm1, %v5176_v15 }
 0x4df   :  { %4412 = vmatprep.subr.bf16.mxu1 %v5176_v15 }
 0x4e5   :  { %4403 = vmatmul.mubr.msk.bf16.vlgmr.msra.gmra.mxu1 %vm612_vm2, %v1071_v39 }
 0x4e6   :  { %4413 = vmatpush3.bf16.xpose.msra.mxu1 %v1183_v42  ;;  %4414 = vmatprep.mubr.msk.bf16.mxu1 %vm5177_vm1, %v5176_v15 }
 0x4e7   :  { %4424 = vmatprep.subr.bf16.mxu1 %v5176_v15 }
 0x4ed   :  { %4415 = vmatmul.mubr.msk.bf16.vlgmr.msra.gmra.mxu1 %vm612_vm2, %v1175_v44 }
 0x4ee   :  { %4426 = vmatprep.mubr.msk.bf16.mxu1 %vm5177_vm1, %v5176_v15 }
 0x4ff   :  { %v865_v46 = vpop.xlane.xlu1 %864 }
 0x500   :  { %4734 = vrcp.f32 %v865_v46 }
 0x503   :  { %v1123_v52 = vpop.permute.xlu1 %1122 }
 0x507   :  { %v1230_v55 = vpop.permute.xlu1 %1229 }
 0x508   :  { %v1235_v58 = vsel %vm612_vm2, %v1230_v55, 0 }
 0x50b   :  { %v1227_v60 = vpop.permute.xlu1 %1226 }
 0x50d   :  { %v4735_v47 = vpop.eup %4734 }
 0x50e   :  { %v873_v48 = vmul.f32 %v4735_v47, %v4727_v22 }
 0x510   :  { %v877_v50 = vpack.c.bf16 %v873_v48, %v873_v48 }
 0x512   :  { %4397 = vmatmul.mubr.msk.bf16.vlgmr.msra.gmra.mxu0 %vm829_vm4, %v877_v50 }
 0x513   :  { %4407 = vmatpush3.bf16.xpose.msra.mxu0 %v1131_v54  ;;  %4408 = vmatprep.mubr.msk.bf16.mxu0 %vm5177_vm1, %v5176_v15 }
 0x514   :  { %4418 = vmatprep.subr.bf16.mxu0 %v5176_v15 }
 0x51a   :  { %4409 = vmatmul.mubr.msk.bf16.vlgmr.msra.gmra.mxu0 %vm612_vm2, %v1123_v52 }
 0x51b   :  { %4419 = vmatpush3.bf16.xpose.msra.mxu0 %v1235_v58  ;;  %4420 = vmatprep.mubr.msk.bf16.mxu0 %vm5177_vm1, %v5176_v15 }
 0x51c   :  { %4430 = vmatprep.subr.bf16.mxu0 %v5176_v15 }
 0x522   :  { %4421 = vmatmul.mubr.msk.bf16.vlgmr.msra.gmra.mxu0 %vm612_vm2, %v1227_v60 }
 0x523   :  { %4432 = vmatprep.mubr.msk.bf16.mxu0 %vm5177_vm1, %v5176_v15 }
 0x595   :  { %v5607_v61 = vpop.f32.mrf.mxu1 }
 0x597   :  { %v4380_v63 = vpop.f32.mrf.mxu1 }
 0x599   :  { %v926_v0 = vpop.f32.mrf.mxu1  ;;  %v5609_v1 = vpop.f32.mrf.mxu0 }
 0x59a   :  { %v1067_v2 = vpack.c.bf16 %v5609_v1, %v5607_v61 }
 0x59b   :  { %v4381_v3 = vpop.f32.mrf.mxu1  ;;  %v4386_v7 = vpop.f32.mrf.mxu0 }
 0x59d   :  { %v972_v8 = vpop.f32.mrf.mxu0  ;;  %v5613_v9 = vpop.f32.mrf.mxu1 }
 0x59f   :  { %v4387_v10 = vpop.f32.mrf.mxu0  ;;  %v4392_v13 = vpop.f32.mrf.mxu1 }
 0x5a1   :  { %v1018_v14 = vpop.f32.mrf.mxu1 }
 0x5a3   :  { %v4393_v18 = vpop.f32.mrf.mxu1 }
 0x5a5   :  { %v1115_v16 = vpop.f32.mrf.mxu1 }
 0x5a6   :  { %v1277_v19 = vmul.f32 0.25, %v1115_v16 }
 0x5a7   :  { %v4404_v20 = vpop.f32.mrf.mxu1 }
 0x5a8   :  { %v1281_v21 = vadd.f32 %v1277_v19, %v5525_v4 }
 0x5a9   :  { %v1118_v22 = vpop.f32.mrf.mxu1 }
 0x5aa   :  { %v1285_v23 = vsel %vm829_vm4, %v1281_v21, -inf }
 0x5ab   :  { %1286 = vmax.xlane.f32.xlu0 %v1285_v23  ;;  %v4405_v24 = vpop.f32.mrf.mxu1 }
 0x5ad   :  { %v1219_v34 = vpop.f32.mrf.mxu1 }
 0x5ae   :  { %v1279_v37 = vmul.f32 0.25, %v1219_v34 }
 0x5af   :  { %v4416_v41 = vpop.f32.mrf.mxu1 }
 0x5b0   :  { %v1283_v25 = vadd.f32 %v1279_v37, %v5532_v28 }
 0x5b1   :  { %v1222_v26 = vpop.f32.mrf.mxu1 }
 0x5b2   :  { %v1291_v49 = vsel %vm829_vm4, %v1283_v25, -inf }
 0x5b3   :  { %1292 = vmax.xlane.f32.xlu0 %v1291_v49  ;;  %v4417_v45 = vpop.f32.mrf.mxu1 }
 0x5d2   :  { %v5619_v27 = vpop.f32.mrf.mxu0 }
 0x5d3   :  { %v1068_v29 = vpack.c.bf16 %v5619_v27, %v5613_v9 }
 0x5d4   :  { %v4398_v35 = vpop.f32.mrf.mxu0 }
 0x5d6   :  { %v1064_v30 = vpop.f32.mrf.mxu0 }
 0x5d8   :  { %v4399_v31 = vpop.f32.mrf.mxu0 }
 0x5da   :  { %v1167_v32 = vpop.f32.mrf.mxu0 }
 0x5db   :  { %v1278_v43 = vmul.f32 0.25, %v1167_v32 }
 0x5dc   :  { %v4410_v33 = vpop.f32.mrf.mxu0 }
 0x5dd   :  { %v1282_v36 = vadd.f32 %v1278_v43, %v5528_v17 }
 0x5de   :  { %v1170_v38 = vpop.f32.mrf.mxu0 }
 0x5df   :  { %v1288_v39 = vsel %vm829_vm4, %v1282_v36, -inf }
 0x5e0   :  { %1289 = vmax.xlane.f32.xlu1 %v1288_v39  ;;  %v4411_v42 = vpop.f32.mrf.mxu0 }
 0x5e1   :  { %v4686_v42 = vld [vmem:[#allocation16] sm:$0xff]  }
 0x5e2   :  { %v1271_v44 = vpop.f32.mrf.mxu0 }
 0x5e3   :  { %v1280_v46 = vmul.f32 0.25, %v1271_v44 }
 0x5e4   :  { %v4422_v47 = vpop.f32.mrf.mxu0 }
 0x5e5   :  { %v1284_v48 = vadd.f32 %v1280_v46, %v5536_v40 }
 0x5e6   :  { %v1274_v50 = vpop.f32.mrf.mxu0 }
 0x5e7   :  { %v1294_v52 = vsel %vm829_vm4, %v1284_v48, -inf }
 0x5e8   :  { %v4423_v54 = vpop.f32.mrf.mxu0  ;;  %1295 = vmax.xlane.f32.xlu0 %v1294_v52  ;;  %v4687_v52 = vld [vmem:[#allocation16 + $0x8] sm:$0xff]  }
 0x634   :  { %v1287_v55 = vpop.xlane.xlu0 %1286 }
 0x635   :  { %v1297_v58 = vsub.f32 %v1281_v21, %v1287_v55 }
 0x637   :  { %v1301_v60 = vmul.f32 1.442695, %v1297_v58 }
 0x639   :  { %4736 = vpow2.f32 %v1301_v60 }
 0x63c   :  { %v1293_v63 = vpop.xlane.xlu0 %1292 }
 0x63d   :  { %v1299_v0 = vsub.f32 %v1283_v25, %v1293_v63 }
 0x63f   :  { %v1305_v3 = vmul.f32 1.442695, %v1299_v0 }
 0x641   :  { %4738 = vpow2.f32 %v1305_v3 }
 0x646   :  { %v4737_v7 = vpop.eup %4736 }
 0x647   :  { %v1309_v8 = vsel %vm829_vm4, %v4737_v7, 0.0 }
 0x648   :  { %1310 = vadd.xlane.f32.xlu0 %v1309_v8 }
 0x64e   :  { %v4739_v10 = vpop.eup %4738 }
 0x64f   :  { %v1315_v13 = vsel %vm829_vm4, %v4739_v10, 0.0 }
 0x650   :  { %1316 = vadd.xlane.f32.xlu0 %v1315_v13 }
 0x666   :  { %1334 = vrot.lane.b32.xlu0 %v5494_v51, %s5178_s13 }
 0x669   :  { %v1290_v14 = vpop.xlane.xlu1 %1289 }
 0x66a   :  { %v1298_v18 = vsub.f32 %v1282_v36, %v1290_v14 }
 0x66c   :  { %v1303_v16 = vmul.f32 1.442695, %v1298_v18 }
 0x66e   :  { %4740 = vpow2.f32 %v1303_v16 }
 0x671   :  { %v1296_v21 = vpop.xlane.xlu0 %1295 }
 0x672   :  { %v1300_v22 = vsub.f32 %v1284_v48, %v1296_v21 }
 0x674   :  { %v1307_v23 = vmul.f32 1.442695, %v1300_v22  ;;  %v4094_v22 = vld [vmem:[#allocation17] ss:$0 sm:$0xff] }
 0x676   :  { %4742 = vpow2.f32 %v1307_v23 }
 0x67b   :  { %v4741_v19 = vpop.eup %4740 }
 0x67c   :  { %v1312_v20 = vsel %vm829_vm4, %v4741_v19, 0.0 }
 0x67d   :  { %1313 = vadd.xlane.f32.xlu1 %v1312_v20 }
 0x683   :  { %v4743_v24 = vpop.eup %4742 }
 0x684   :  { %v1318_v51 = vsel %vm829_vm4, %v4743_v24, 0.0 }
 0x68e   :  { %1383 = vrot.lane.b32.xlu1 %v5505_v56, %s5178_s13 }
 0x692   :  { %1432 = vrot.lane.b32.xlu1 %v5563_v53, %s5178_s13 }
 0x6b6   :  { %1319 = vadd.xlane.f32.xlu1 %v1318_v51 }
 0x6c7   :  { %1481 = vrot.lane.b32.xlu1 %v5569_v57, %s5178_s13 }
 0x6d1   :  { %v1311_v34 = vpop.xlane.xlu0 %1310 }
 0x6d2   :  { %4744 = vrcp.f32 %v1311_v34 }
 0x6d9   :  { %v1317_v37 = vpop.xlane.xlu0 %1316 }
 0x6da   :  { %4746 = vrcp.f32 %v1317_v37 }
 0x6dd   :  { %v1335_v41 = vpop.permute.xlu0 %1334 }
 0x6de   :  { %v1340_v56 = vsel %vm885_vm3, %v1335_v41, 0 }
 0x6df   :  { %v4745_v25 = vpop.eup %4744  ;;  %4425 = vmatpush3.bf16.msra.mxu1 %v1340_v56 }
 0x6e0   :  { %v1325_v53 = vmul.f32 %v4745_v25, %v4737_v7  ;;  %4436 = vmatprep.subr.bf16.mxu1 %v5176_v15 }
 0x6e2   :  { %v1329_v26 = vpack.c.bf16 %v1325_v53, %v1325_v53 }
 0x6e4   :  { %4427 = vmatmul.mubr.msk.bf16.vlgmr.msra.gmra.mxu1 %vm829_vm4, %v1329_v26 }
 0x6e5   :  { %4438 = vmatprep.mubr.msk.bf16.mxu1 %vm5177_vm1, %v5176_v15 }
 0x6e7   :  { %v4747_v57 = vpop.eup %4746 }
 0x6e8   :  { %v1327_v30 = vmul.f32 %v4747_v57, %v4739_v10 }
 0x6ea   :  { %v1331_v43 = vpack.c.bf16 %v1327_v30, %v1327_v30 }
 0x706   :  { %v1314_v49 = vpop.xlane.xlu1 %1313 }
 0x707   :  { %4748 = vrcp.f32 %v1314_v49 }
 0x70a   :  { %v1384_v45 = vpop.permute.xlu1 %1383 }
 0x70b   :  { %v1389_v35 = vsel %vm885_vm3, %v1384_v45, 0 }
 0x70c   :  { %4431 = vmatpush3.bf16.msra.mxu0 %v1389_v35 }
 0x70d   :  { %4442 = vmatprep.subr.bf16.mxu0 %v5176_v15 }
 0x70e   :  { %v1433_v31 = vpop.permute.xlu1 %1432 }
 0x70f   :  { %v1438_v32 = vsel %vm885_vm3, %v1433_v31, 0 }
 0x710   :  { %4437 = vmatpush3.bf16.msra.mxu1 %v1438_v32 }
 0x711   :  { %4448 = vmatprep.subr.bf16.mxu1 %v4687_v52 }
 0x713   :  { %4439 = vmatmul.mubr.msk.bf16.vlgmr.msra.gmra.mxu1 %vm829_vm4, %v1331_v43 }
 0x714   :  { %v4749_v33 = vpop.eup %4748  ;;  %4449 = vmatpush3.bf16.msra.mxu1 %v4687_v52 }
 0x715   :  { %v1326_v36 = vmul.f32 %v4749_v33, %v4741_v19 }
 0x717   :  { %v1330_v38 = vpack.c.bf16 %v1326_v36, %v1326_v36 }
 0x719   :  { %4433 = vmatmul.mubr.msk.bf16.vlgmr.msra.gmra.mxu0 %vm829_vm4, %v1330_v38 }
 0x71a   :  { %4444 = vmatprep.mubr.msk.bf16.mxu0 %vm5177_vm1, %v5176_v15 }
 0x73f   :  { %v1320_v39 = vpop.xlane.xlu1 %1319 }
 0x740   :  { %4750 = vrcp.f32 %v1320_v39 }
 0x743   :  { %v1482_v44 = vpop.permute.xlu1 %1481 }
 0x744   :  { %v1487_v46 = vsel %vm885_vm3, %v1482_v44, 0 }
 0x745   :  { %4443 = vmatpush3.bf16.msra.mxu0 %v1487_v46 }
 0x746   :  { %4454 = vmatprep.subr.bf16.mxu0 %v4686_v42 }
 0x74d   :  { %v4751_v47 = vpop.eup %4750 }
 0x74e   :  { %v1328_v48 = vmul.f32 %v4751_v47, %v4743_v24 }
 0x750   :  { %v1332_v50 = vpack.c.bf16 %v1328_v48, %v1328_v48 }
 0x752   :  { %4445 = vmatmul.mubr.msk.bf16.vlgmr.msra.gmra.mxu0 %vm829_vm4, %v1332_v50 }
 0x753   :  { %4456 = vmatprep.mubr.msk.bf16.mxu0 %vm612_vm2, %v1067_v2  ;;  %4455 = vmatpush3.bf16.msra.mxu0 %v4686_v42 }
 0x75a   :  { %4457 = vmatmul.mubr.msk.bf16.vlgmr.msra.gmra.mxu0 %vm612_vm2, %v1068_v29 }
 0x7a4   :  { %v1376_v54 = vpop.f32.mrf.mxu1 }
 0x7a6   :  { %v4428_v55 = vpop.f32.mrf.mxu1 }
 0x7a8   :  { %v1379_v58 = vpop.f32.mrf.mxu1 }
 0x7aa   :  { %v4429_v60 = vpop.f32.mrf.mxu1 }
 0x7d3   :  { %v1474_v63 = vpop.f32.mrf.mxu1 }
 0x7d5   :  { %v4440_v0 = vpop.f32.mrf.mxu1 }
 0x7d7   :  { %v1477_v3 = vpop.f32.mrf.mxu1 }
 0x7d8   :  { %v4688_v3 = vld [vmem:[#allocation22 + $0x8] sm:$0xff]  }
 0x7d9   :  { %v1425_v7 = vpop.f32.mrf.mxu0  ;;  %v4441_v61 = vpop.f32.mrf.mxu1  ;;  %4460 = vmatprep.subr.bf16.mxu1 %v4688_v3 }
 0x7da   :  { %v1529_v1 = vpack.c.bf16 %v1425_v7, %v1376_v54  ;;  %v4689_v7 = vld [vmem:[#allocation22] sm:$0xff]  }
 0x7db   :  { %v4434_v2 = vpop.f32.mrf.mxu0 }
 0x7dc   :  { %4450 = vmatprep.mubr.msk.bf16.mxu1 %vm612_vm2, %v1529_v1 }
 0x7dd   :  { %v1428_v8 = vpop.f32.mrf.mxu0 }
 0x7df   :  { %v4435_v9 = vpop.f32.mrf.mxu0 }
 0x812   :  { %v1523_v27 = vpop.f32.mrf.mxu0 }
 0x813   :  { %v1530_v29 = vpack.c.bf16 %v1523_v27, %v1474_v63 }
 0x814   :  { %v4446_v10 = vpop.f32.mrf.mxu0 }
 0x815   :  { %4451 = vmatmul.mubr.msk.bf16.vlgmr.msra.gmra.mxu1 %vm612_vm2, %v1530_v29 }
 0x816   :  { %v1526_v13 = vpop.f32.mrf.mxu0  ;;  %4461 = vmatpush3.bf16.msra.mxu1 %v4688_v3 }
 0x817   :  { %4462 = vmatprep.subr.bf16.mxu1 %v4689_v7 }
 0x818   :  { %v4447_v14 = vpop.f32.mrf.mxu0 }
 0x81a   :  { %v4458_v18 = vpop.f32.mrf.mxu0  ;;  %4463 = vmatpush3.bf16.msra.mxu1 %v4689_v7 }
 0x81c   :  { %v1638_v16 = vpop.f32.mrf.mxu0 }
 0x81e   :  { %v4459_v21 = vpop.f32.mrf.mxu0 }
 0x820   :  { %v1641_v56 = vpop.f32.mrf.mxu0 }
 0x8d5   :  { %v4452_v19 = vpop.f32.mrf.mxu1 }
 0x8d6   :  { %v1647_v20 = vadd.f32 %v4458_v18, %v4452_v19 }
 0x8d7   :  { %v1577_v23 = vpop.f32.mrf.mxu1 }
 0x8d8   :  { %v1639_v24 = vadd.f32 %v1638_v16, %v1577_v23  ;;  %v1662_v34 = vadd.f32 %v4094_v22, %v1647_v20 }
 0x8d9   :  { %v4453_v51 = vpop.f32.mrf.mxu1 }
 0x8da   :  { %v1660_v37 = vadd.f32 %v4094_v22, %v1639_v24  ;;  %v1650_v41 = vadd.f32 %v4459_v21, %v4453_v51  ;;  %v1666_v35 = vadd.f32 %v1662_v34, %v5444_v11  ;;  %v4095_v21 = vld [vmem:[#allocation19] ss:$0 sm:$0xff] }
 0x8db   :  { %v1580_v25 = vpop.f32.mrf.mxu1 }
 0x8dc   :  { %v1642_v53 = vadd.f32 %v1641_v56, %v1580_v25  ;;  %v1664_v26 = vadd.f32 %v1660_v37, %v5436_v5  ;;  %v1663_v49 = vadd.f32 %v4094_v22, %v1650_v41  ;;  %v1676_v31 = vsel %vm290_vm0, %v1666_v35, 0.0  ;;  %v4096_v37 = vld [vmem:[#allocation20] ss:$0 sm:$0xff] }
 0x8de   :  { %v1661_v57 = vadd.f32 %v4094_v22, %v1642_v53  ;;  %v1670_v45 = vsel %vm290_vm0, %v1664_v26, 0.0  ;;  %v1667_v43 = vadd.f32 %v1663_v49, %v5446_v12 }
 0x8df   :  { %1671 = vadd.xlane.f32.xlu0 %v1670_v45 }
 0x8e0   :  { %v1665_v30 = vadd.f32 %v1661_v57, %v5438_v6  ;;  %v1679_v33 = vsel %vm290_vm0, %v1667_v43, 0.0 }
 0x8e2   :  { %v1673_v32 = vsel %vm290_vm0, %v1665_v30, 0.0 }
 0x8e3   :  { %1677 = vadd.xlane.f32.xlu0 %v1676_v31  ;;  %1674 = vadd.xlane.f32.xlu1 %v1673_v32  ;;  %v4690_v32 = vld [vmem:[%s6073_s18 + $0x18] sm:$0xff]  }
 0x8e4   :  { %4468 = vmatprep.subr.bf16.mxu0 %v4690_v32 }
 0x8e5   :  { %4469 = vmatpush3.bf16.msra.mxu0 %v4690_v32 }
 0x8e7   :  { %1680 = vadd.xlane.f32.xlu0 %v1679_v33  ;;  %v4692_v33 = vld [vmem:[%s6073_s18 + $0x8] sm:$0xff]  }
 0x968   :  { %v1672_v5 = vpop.xlane.xlu0 %1671 }
 0x969   :  { %v1682_v36 = vmul.f32 0.03125, %v1672_v5  ;;  %v4693_v5 = vld [vmem:[%s6073_s18] sm:$0xff]  }
 0x96b   :  { %v1686_v38 = vsub.f32 %v1664_v26, %v1682_v36  ;;  %v4097_v36 = vld [vmem:[#allocation23] ss:$0 sm:$0xff] }
 0x96c   :  { %v1678_v39 = vpop.xlane.xlu0 %1677  ;;  %v1675_v42 = vpop.xlane.xlu1 %1674 }
 0x96d   :  { %v1684_v11 = vmul.f32 0.03125, %v1678_v39  ;;  %v1683_v44 = vmul.f32 0.03125, %v1675_v42  ;;  %v1690_v46 = vmul.f32 %v1686_v38, %v1686_v38 }
 0x96f   :  { %v1688_v6 = vsub.f32 %v1666_v35, %v1684_v11  ;;  %v1687_v47 = vsub.f32 %v1665_v30, %v1683_v44  ;;  %v1694_v48 = vsel %vm290_vm0, %v1690_v46, 0.0 }
 0x970   :  { %1695 = vadd.xlane.f32.xlu0 %v1694_v48  ;;  %v1681_v50 = vpop.xlane.xlu0 %1680 }
 0x971   :  { %v1685_v12 = vmul.f32 0.03125, %v1681_v50  ;;  %v1692_v52 = vmul.f32 %v1688_v6, %v1688_v6  ;;  %v1691_v54 = vmul.f32 %v1687_v47, %v1687_v47 }
 0x973   :  { %v1689_v55 = vsub.f32 %v1667_v43, %v1685_v12  ;;  %v1700_v58 = vsel %vm290_vm0, %v1692_v52, 0.0  ;;  %v1697_v60 = vsel %vm290_vm0, %v1691_v54, 0.0  ;;  %v4691_v43 = vld [vmem:[%s6073_s18 + $0x10] sm:$0xff]  }
 0x974   :  { %1701 = vadd.xlane.f32.xlu0 %v1700_v58  ;;  %1698 = vadd.xlane.f32.xlu1 %v1697_v60 }
 0x975   :  { %v1693_v63 = vmul.f32 %v1689_v55, %v1689_v55  ;;  %4470 = vmatprep.subr.bf16.mxu0 %v4691_v43 }
 0x976   :  { %4471 = vmatpush3.bf16.msra.mxu0 %v4691_v43 }
 0x977   :  { %v1703_v0 = vsel %vm290_vm0, %v1693_v63, 0.0  ;;  %4472 = vmatprep.subr.bf16.mxu0 %v4692_v33 }
 0x978   :  { %1704 = vadd.xlane.f32.xlu1 %v1703_v0 }
 0x97a   :  { %4473 = vmatpush3.bf16.msra.mxu0 %v4692_v33 }
 0x97b   :  { %4474 = vmatprep.subr.bf16.mxu0 %v4693_v5 }
 0x97e   :  { %4475 = vmatpush3.bf16.msra.mxu0 %v4693_v5 }
 0x9f9   :  { %v1696_v61 = vpop.xlane.xlu0 %1695 }
 0x9fa   :  { %v1706_v1 = vmul.f32 0.03125, %v1696_v61 }
 0x9fc   :  { %v1710_v2 = vadd.f32 1e-12, %v1706_v1 }
 0x9fd   :  { %v1702_v8 = vpop.xlane.xlu0 %1701  ;;  %v1699_v9 = vpop.xlane.xlu1 %1698 }
 0x9fe   :  { %4752 = vrsqrt.f32 %v1710_v2  ;;  %v1708_v27 = vmul.f32 0.03125, %v1702_v8  ;;  %v1707_v29 = vmul.f32 0.03125, %v1699_v9 }
 0xa00   :  { %v1712_v10 = vadd.f32 1e-12, %v1708_v27  ;;  %v1711_v13 = vadd.f32 1e-12, %v1707_v29 }
 0xa01   :  { %v1705_v14 = vpop.xlane.xlu1 %1704 }
 0xa02   :  { %4754 = vrsqrt.f32 %v1712_v10  ;;  %v1709_v18 = vmul.f32 0.03125, %v1705_v14 }
 0xa03   :  { %4756 = vrsqrt.f32 %v1711_v13 }
 0xa04   :  { %v1713_v16 = vadd.f32 1e-12, %v1709_v18 }
 0xa06   :  { %4758 = vrsqrt.f32 %v1713_v16 }
 0xa0b   :  { %v4753_v19 = vpop.eup %4752 }
 0xa0c   :  { %v1718_v20 = vmul.f32 %v4753_v19, %v1686_v38 }
 0xa0e   :  { %v1728_v34 = vmul.f32 %v4095_v21, %v1718_v20 }
 0xa0f   :  { %v4755_v22 = vpop.eup %4754 }
 0xa10   :  { %v4757_v23 = vpop.eup %4756  ;;  %v1720_v24 = vmul.f32 %v4755_v22, %v1688_v6  ;;  %v5675_v26 = vadd.f32 %v4096_v37, %v1728_v34 }
 0xa11   :  { %v1719_v51 = vmul.f32 %v4757_v23, %v1687_v47 }
 0xa12   :  { %v1730_v53 = vmul.f32 %v4095_v21, %v1720_v24 }
 0xa13   :  { %v4759_v41 = vpop.eup %4758  ;;  %v1729_v56 = vmul.f32 %v4095_v21, %v1719_v51 }
 0xa14   :  { %v1721_v25 = vmul.f32 %v4759_v41, %v1689_v55  ;;  %v5681_v35 = vadd.f32 %v4096_v37, %v1730_v53 }
 0xa15   :  { %v5677_v49 = vadd.f32 %v4096_v37, %v1729_v56 }
 0xa16   :  { %v1731_v57 = vmul.f32 %v4095_v21, %v1721_v25 }
 0xa17   :  { %v1742_v45 = vpack.c.bf16 %v5677_v49, %v5675_v26 }
 0xa18   :  { %v5683_v30 = vadd.f32 %v4096_v37, %v1731_v57 }
 0xa19   :  { %4464 = vmatprep.mubr.msk.bf16.mxu1 %vm290_vm0, %v1742_v45 }
 0xa1a   :  { %v1743_v31 = vpack.c.bf16 %v5683_v30, %v5681_v35 }
 0xa1c   :  { %4465 = vmatmul.mubr.msk.bf16.vlgmr.msra.gmra.mxu1 %vm290_vm0, %v1743_v31  ;;  %v4102_v31 = vld [vmem:[%s6074_s19] ss:$0 sm:$0xff] }
 0xadc   :  { %v4466_v38 = vpop.f32.mrf.mxu1 }
 0xadd   :  { %v1816_v39 = vadd.f32 %v4466_v38, %v4097_v36 }
 0xade   :  { %v1807_v42 = vpop.f32.mrf.mxu1 }
 0xadf   :  { %v1828_v11 = vmul.f32 0.044715, %v1816_v39  ;;  %v1808_v44 = vadd.f32 %v4097_v36, %v1807_v42  ;;  %v1824_v34 = vmul.f32 0.5, %v1816_v39 }
 0xae0   :  { %v4467_v46 = vpop.f32.mrf.mxu1 }
 0xae1   :  { %v1832_v6 = vmul.f32 %v1828_v11, %v1816_v39  ;;  %v1826_v47 = vmul.f32 0.044715, %v1808_v44  ;;  %v1819_v48 = vadd.f32 %v4467_v46, %v4097_v36  ;;  %v1822_v23 = vmul.f32 0.5, %v1808_v44 }
 0xae2   :  { %v1810_v50 = vpop.f32.mrf.mxu1 }
 0xae3   :  { %v1836_v12 = vmul.f32 %v1832_v6, %v1816_v39  ;;  %v1830_v52 = vmul.f32 %v1826_v47, %v1808_v44  ;;  %v1829_v54 = vmul.f32 0.044715, %v1819_v48  ;;  %v1811_v55 = vadd.f32 %v4097_v36, %v1810_v50 }
 0xae4   :  { %v1825_v21 = vmul.f32 0.5, %v1819_v48 }
 0xae5   :  { %v1840_v58 = vadd.f32 %v1836_v12, %v1816_v39  ;;  %v1834_v60 = vmul.f32 %v1830_v52, %v1808_v44  ;;  %v1833_v63 = vmul.f32 %v1829_v54, %v1819_v48  ;;  %v1827_v0 = vmul.f32 0.044715, %v1811_v55 }
 0xae6   :  { %v1823_v24 = vmul.f32 0.5, %v1811_v55 }
 0xae7   :  { %v1844_v3 = vmul.f32 0.7978846, %v1840_v58  ;;  %v1838_v7 = vadd.f32 %v1834_v60, %v1808_v44  ;;  %v1837_v61 = vmul.f32 %v1833_v63, %v1819_v48  ;;  %v1831_v1 = vmul.f32 %v1827_v0, %v1811_v55 }
 0xae9   :  { %v1842_v2 = vmul.f32 0.7978846, %v1838_v7  ;;  %v1841_v8 = vadd.f32 %v1837_v61, %v1819_v48  ;;  %v1835_v9 = vmul.f32 %v1831_v1, %v1811_v55  ;;  %4760 = vtanh.f32 %v1844_v3 }
 0xaeb   :  { %v1845_v27 = vmul.f32 0.7978846, %v1841_v8  ;;  %4762 = vtanh.f32 %v1842_v2  ;;  %v1839_v29 = vadd.f32 %v1835_v9, %v1811_v55 }
 0xaed   :  { %4764 = vtanh.f32 %v1845_v27  ;;  %v1843_v10 = vmul.f32 0.7978846, %v1839_v29  ;;  %v4694_v29 = vld [vmem:[%s6110_s14 + $0x18] sm:$0xff]  }
 0xaee   :  { %4480 = vmatprep.subr.bf16.mxu1 %v4694_v29 }
 0xaef   :  { %4766 = vtanh.f32 %v1843_v10  ;;  %v4695_v10 = vld [vmem:[%s6111_s17 + $0x18] sm:$0xff]   ;;  %4481 = vmatpush3.bf16.msra.mxu1 %v4694_v29 }
 0xaf0   :  { %4496 = vmatprep.subr.bf16.mxu0 %v4695_v10 }
 0xaf6   :  { %v4761_v13 = vpop.eup %4760 }
 0xaf7   :  { %v1852_v22 = vadd.f32 1.0, %v4761_v13  ;;  %v4696_v13 = vld [vmem:[%s6110_s14 + $0x10] sm:$0xff]  }
 0xaf8   :  { %v4763_v14 = vpop.eup %4762  ;;  %4482 = vmatprep.subr.bf16.mxu1 %v4696_v13 }
 0xaf9   :  { %v1850_v19 = vadd.f32 1.0, %v4763_v14  ;;  %v1856_v25 = vmul.f32 %v1852_v22, %v1824_v34  ;;  %v4697_v14 = vld [vmem:[%s6111_s17 + $0x10] sm:$0xff]   ;;  %4483 = vmatpush3.bf16.msra.mxu1 %v4696_v13 }
 0xafa   :  { %v4765_v18 = vpop.eup %4764 }
 0xafb   :  { %v1853_v16 = vadd.f32 1.0, %v4765_v18  ;;  %v1854_v41 = vmul.f32 %v1850_v19, %v1822_v23  ;;  %v4698_v18 = vld [vmem:[#allocation11 + $0x18] sm:$0xff]  }
 0xafc   :  { %v4767_v20 = vpop.eup %4766  ;;  %4488 = vmatprep.subr.bf16.mxu1 %v4698_v18 }
 0xafd   :  { %v1851_v51 = vadd.f32 1.0, %v4767_v20  ;;  %v1857_v37 = vmul.f32 %v1853_v16, %v1825_v21 }
 0xaff   :  { %v1855_v56 = vmul.f32 %v1851_v51, %v1823_v24  ;;  %v1859_v57 = vpack.c.bf16 %v1857_v37, %v1856_v25 }
 0xb01   :  { %v1858_v53 = vpack.c.bf16 %v1855_v56, %v1854_v41 }
 0xb03   :  { %4476 = vmatprep.mubr.msk.bf16.mxu0 %vm1899_vm5, %v1858_v53 }
 0xb04   :  { %4477 = vmatmul.mubr.msk.bf16.vlgmr.msra.gmra.mxu0 %vm1899_vm5, %v1859_v57  ;;  %v4109_v57 = vld [vmem:[%s6075_s20] ss:$0 sm:$0xff] }
 0xb05   :  { %4497 = vmatpush3.bf16.msra.mxu0 %v4695_v10  ;;  %v4115_v10 = vld [vmem:[#allocation10 + $0x1] ss:$0 sm:$0xff] }
 0xb06   :  { %4498 = vmatprep.subr.bf16.mxu0 %v4697_v14 }
 0xb09   :  { %4499 = vmatpush3.bf16.msra.mxu0 %v4697_v14 }
 0xb0a   :  { %4510 = vmatprep.subr.bf16.mxu0 %v5176_v15 }
 0xbc4   :  { %v4478_v45 = vpop.f32.mrf.mxu0 }
 0xbc5   :  { %v1949_v43 = vadd.f32 %v4478_v45, %v4102_v31 }
 0xbc6   :  { %v1940_v32 = vpop.f32.mrf.mxu0 }
 0xbc7   :  { %v1941_v33 = vadd.f32 %v4102_v31, %v1940_v32  ;;  %v1957_v44 = vadd.f32 %v1949_v43, %v5681_v35 }
 0xbc8   :  { %v4479_v5 = vpop.f32.mrf.mxu0 }
 0xbc9   :  { %v1955_v36 = vadd.f32 %v1941_v33, %v5675_v26  ;;  %v1952_v39 = vadd.f32 %v4479_v5, %v4102_v31  ;;  %v1967_v47 = vsel %vm290_vm0, %v1957_v44, 0.0  ;;  %v4110_v5 = vld [vmem:[%s6076_s21] ss:$0 sm:$0xff] }
 0xbca   :  { %v1943_v38 = vpop.f32.mrf.mxu0 }
 0xbcb   :  { %v1944_v42 = vadd.f32 %v4102_v31, %v1943_v38  ;;  %v1961_v11 = vsel %vm290_vm0, %v1955_v36, 0.0  ;;  %v1958_v48 = vadd.f32 %v1952_v39, %v5683_v30 }
 0xbcc   :  { %1962 = vadd.xlane.f32.xlu0 %v1961_v11 }
 0xbcd   :  { %v1956_v46 = vadd.f32 %v1944_v42, %v5677_v49  ;;  %v1970_v26 = vsel %vm290_vm0, %v1958_v48, 0.0 }
 0xbcf   :  { %v1964_v6 = vsel %vm290_vm0, %v1956_v46, 0.0 }
 0xbd0   :  { %1965 = vadd.xlane.f32.xlu1 %v1964_v6  ;;  %1968 = vadd.xlane.f32.xlu0 %v1967_v47 }
 0xbd4   :  { %1971 = vadd.xlane.f32.xlu1 %v1970_v26 }
 0xc55   :  { %v1963_v50 = vpop.xlane.xlu0 %1962 }
 0xc56   :  { %v1973_v12 = vmul.f32 0.03125, %v1963_v50  ;;  %v4699_v50 = vld [vmem:[#allocation11 + $0x10] sm:$0xff]  }
 0xc58   :  { %v1977_v52 = vsub.f32 %v1955_v36, %v1973_v12  ;;  %v4129_v12 = vld [vmem:[#allocation14 + $0x1] ss:$0 sm:$0xff] }
 0xc59   :  { %v1966_v54 = vpop.xlane.xlu1 %1965  ;;  %v1969_v55 = vpop.xlane.xlu0 %1968 }
 0xc5a   :  { %v1974_v35 = vmul.f32 0.03125, %v1966_v54  ;;  %v1975_v58 = vmul.f32 0.03125, %v1969_v55  ;;  %v1981_v60 = vmul.f32 %v1977_v52, %v1977_v52 }
 0xc5c   :  { %v1978_v49 = vsub.f32 %v1956_v46, %v1974_v35  ;;  %v1979_v63 = vsub.f32 %v1957_v44, %v1975_v58  ;;  %v1985_v0 = vsel %vm290_vm0, %v1981_v60, 0.0 }
 0xc5d   :  { %v1972_v3 = vpop.xlane.xlu1 %1971  ;;  %1986 = vadd.xlane.f32.xlu0 %v1985_v0 }
 0xc5e   :  { %v1976_v30 = vmul.f32 0.03125, %v1972_v3  ;;  %v1982_v7 = vmul.f32 %v1978_v49, %v1978_v49  ;;  %v1983_v61 = vmul.f32 %v1979_v63, %v1979_v63 }
 0xc60   :  { %v1980_v1 = vsub.f32 %v1958_v48, %v1976_v30  ;;  %v1988_v2 = vsel %vm290_vm0, %v1982_v7, 0.0  ;;  %v1991_v8 = vsel %vm290_vm0, %v1983_v61, 0.0  ;;  %v4120_v30 = vld [vmem:[#allocation13 + $0x1] ss:$0 sm:$0xff] }
 0xc61   :  { %1989 = vadd.xlane.f32.xlu1 %v1988_v2  ;;  %1992 = vadd.xlane.f32.xlu0 %v1991_v8 }
 0xc62   :  { %v1984_v9 = vmul.f32 %v1980_v1, %v1980_v1 }
 0xc64   :  { %v1994_v27 = vsel %vm290_vm0, %v1984_v9, 0.0 }
 0xc65   :  { %1995 = vadd.xlane.f32.xlu1 %v1994_v27 }
 0xce6   :  { %v1987_v16 = vpop.xlane.xlu0 %1986 }
 0xce7   :  { %v1997_v19 = vmul.f32 0.03125, %v1987_v16 }
 0xce9   :  { %v2001_v20 = vadd.f32 1e-12, %v1997_v19 }
 0xcea   :  { %v1990_v21 = vpop.xlane.xlu1 %1989  ;;  %v1993_v22 = vpop.xlane.xlu0 %1992 }
 0xceb   :  { %4768 = vrsqrt.f32 %v2001_v20  ;;  %v1998_v23 = vmul.f32 0.03125, %v1990_v21  ;;  %v1999_v24 = vmul.f32 0.03125, %v1993_v22 }
 0xced   :  { %v2002_v51 = vadd.f32 1e-12, %v1998_v23  ;;  %v2003_v34 = vadd.f32 1e-12, %v1999_v24 }
 0xcee   :  { %v1996_v37 = vpop.xlane.xlu1 %1995 }
 0xcef   :  { %4770 = vrsqrt.f32 %v2002_v51  ;;  %v2000_v41 = vmul.f32 0.03125, %v1996_v37 }
 0xcf0   :  { %4772 = vrsqrt.f32 %v2003_v34 }
 0xcf1   :  { %v2004_v56 = vadd.f32 1e-12, %v2000_v41 }
 0xcf3   :  { %4774 = vrsqrt.f32 %v2004_v56 }
 0xcf8   :  { %v4769_v25 = vpop.eup %4768 }
 0xcf9   :  { %v2009_v53 = vmul.f32 %v4769_v25, %v1977_v52 }
 0xcfb   :  { %v2019_v43 = vmul.f32 %v4109_v57, %v2009_v53 }
 0xcfc   :  { %v4771_v45 = vpop.eup %4770 }
 0xcfd   :  { %v4773_v31 = vpop.eup %4772  ;;  %v2010_v32 = vmul.f32 %v4771_v45, %v1978_v49  ;;  %v5737_v42 = vadd.f32 %v4110_v5, %v2019_v43 }
 0xcfe   :  { %v2011_v33 = vmul.f32 %v4773_v31, %v1979_v63 }
 0xcff   :  { %v2020_v36 = vmul.f32 %v4109_v57, %v2010_v32 }
 0xd00   :  { %v4775_v38 = vpop.eup %4774  ;;  %v2021_v44 = vmul.f32 %v4109_v57, %v2011_v33 }
 0xd01   :  { %v2012_v39 = vmul.f32 %v4775_v38, %v1980_v1  ;;  %v5739_v11 = vadd.f32 %v4110_v5, %v2020_v36 }
 0xd02   :  { %v5745_v47 = vadd.f32 %v4110_v5, %v2021_v44 }
 0xd03   :  { %v2033_v46 = vpack.c.bf16 %v5739_v11, %v5737_v42  ;;  %v2022_v6 = vmul.f32 %v4109_v57, %v2012_v39 }
 0xd05   :  { %4484 = vmatprep.mubr.msk.bf16.mxu1 %vm290_vm0, %v2033_v46  ;;  %4500 = vmatprep.mubr.msk.bf16.mxu0 %vm290_vm0, %v2033_v46  ;;  %v5747_v48 = vadd.f32 %v4110_v5, %v2022_v6 }
 0xd07   :  { %v2034_v26 = vpack.c.bf16 %v5747_v48, %v5745_v47 }
 0xd09   :  { %4485 = vmatmul.mubr.msk.bf16.vlgmr.msra.gmra.mxu1 %vm290_vm0, %v2034_v26  ;;  %4501 = vmatmul.mubr.msk.bf16.vlgmr.msra.gmra.mxu0 %vm290_vm0, %v2034_v26 }
 0xd0a   :  { %4489 = vmatpush3.bf16.msra.mxu1 %v4698_v18  ;;  %4492 = vmatprep.mubr.msk.bf16.mxu1 %vm290_vm0, %v2033_v46 }
 0xd0b   :  { %4490 = vmatprep.subr.bf16.mxu1 %v4699_v50  ;;  %4512 = vmatprep.mubr.msk.bf16.mxu0 %vm5177_vm1, %v5176_v15 }
 0xd0e   :  { %4491 = vmatpush3.bf16.msra.mxu1 %v4699_v50 }
 0xd0f   :  { %4504 = vmatprep.subr.bf16.mxu1 %v5176_v15 }
 0xd11   :  { %4493 = vmatmul.mubr.msk.bf16.vlgmr.msra.gmra.mxu1 %vm290_vm0, %v2034_v26 }
 0xd12   :  { %4506 = vmatprep.mubr.msk.bf16.mxu1 %vm5177_vm1, %v5176_v15 }
 0xdc9   :  { %v4486_v52 = vpop.f32.mrf.mxu1  ;;  %v4502_v54 = vpop.f32.mrf.mxu0 }
 0xdca   :  { %v5760_v55 = vadd.f32 %v4502_v54, %v4129_v12  ;;  %v2109_v34 = vadd.f32 %v4486_v52, %v4115_v10 }
 0xdcb   :  { %v2100_v35 = vpop.f32.mrf.mxu1  ;;  %v2248_v58 = vpop.f32.mrf.mxu0 }
 0xdcc   :  { %v2101_v13 = vadd.f32 %v4115_v10, %v2100_v35  ;;  %v2249_v22 = vadd.f32 %v4129_v12, %v2248_v58  ;;  %v5797_v53 = vpack.c.bf16 %v2109_v34, %v2109_v34 }
 0xdcd   :  { %v4487_v60 = vpop.f32.mrf.mxu1  ;;  %v4503_v49 = vpop.f32.mrf.mxu0 }
 0xdce   :  { %v5762_v63 = vadd.f32 %v4503_v49, %v4129_v12  ;;  %v5775_v20 = vpack.c.bf16 %v2101_v13, %v2101_v13  ;;  %v5789_v41 = vpack.c.bf16 %v2249_v22, %v2249_v22  ;;  %v2112_v57 = vadd.f32 %v4487_v60, %v4115_v10 }
 0xdcf   :  { %v2103_v0 = vpop.f32.mrf.mxu1  ;;  %v2251_v51 = vpop.f32.mrf.mxu0 }
 0xdd0   :  { %v2104_v21 = vadd.f32 %v4115_v10, %v2103_v0  ;;  %v2252_v56 = vadd.f32 %v4129_v12, %v2251_v51  ;;  %v2524_v45 = vsel %vm885_vm3, %v5789_v41, 0  ;;  %v5808_v32 = vpack.c.bf16 %v2112_v57, %v2112_v57 }
 0xdd1   :  { %v4494_v3 = vpop.f32.mrf.mxu1 }
 0xdd2   :  { %v2183_v9 = vadd.f32 %v4494_v3, %v4120_v30  ;;  %v5786_v37 = vpack.c.bf16 %v2104_v21, %v2104_v21  ;;  %v5802_v31 = vpack.c.bf16 %v2252_v56, %v2252_v56 }
 0xdd3   :  { %v2174_v7 = vpop.f32.mrf.mxu1 }
 0xdd4   :  { %v2175_v61 = vadd.f32 %v4120_v30, %v2174_v7  ;;  %v5771_v18 = vpack.c.bf16 %v2183_v9, %v2183_v9  ;;  %v2570_v43 = vsel %vm885_vm3, %v5802_v31, 0 }
 0xdd5   :  { %v4495_v1 = vpop.f32.mrf.mxu1 }
 0xdd6   :  { %v5764_v2 = vpack.c.bf16 %v2175_v61, %v2175_v61  ;;  %v2186_v16 = vadd.f32 %v4495_v1, %v4120_v30  ;;  %v2372_v23 = vsel %vm612_vm2, %v5771_v18, 0 }
 0xdd7   :  { %v2177_v8 = vpop.f32.mrf.mxu1 }
 0xdd8   :  { %v2280_v27 = vsel %vm612_vm2, %v5764_v2, 0  ;;  %v2178_v29 = vadd.f32 %v4120_v30, %v2177_v8  ;;  %v5780_v24 = vpack.c.bf16 %v2186_v16, %v2186_v16 }
 0xdd9   :  { %4505 = vmatpush3.bf16.xpose.msra.mxu1 %v2280_v27 }
 0xdda   :  { %v5768_v14 = vpack.c.bf16 %v2178_v29, %v2178_v29  ;;  %4516 = vmatprep.subr.bf16.mxu1 %v5176_v15  ;;  %v2418_v25 = vsel %vm612_vm2, %v5780_v24, 0 }
 0xddc   :  { %v2326_v19 = vsel %vm612_vm2, %v5768_v14, 0 }
 0xddd   :  { %4511 = vmatpush3.bf16.xpose.msra.mxu0 %v2326_v19 }
 0xdde   :  { %4522 = vmatprep.subr.bf16.mxu0 %v5176_v15 }
 0xde0   :  { %4507 = vmatmul.mubr.msk.bf16.vlgmr.msra.gmra.mxu1 %vm612_vm2, %v5775_v20 }
 0xde1   :  { %4517 = vmatpush3.bf16.xpose.msra.mxu1 %v2372_v23  ;;  %4518 = vmatprep.mubr.msk.bf16.mxu1 %vm5177_vm1, %v5176_v15 }
 0xde2   :  { %4528 = vmatprep.subr.bf16.mxu1 %v5176_v15 }
 0xde4   :  { %4513 = vmatmul.mubr.msk.bf16.vlgmr.msra.gmra.mxu0 %vm612_vm2, %v5786_v37 }
 0xde5   :  { %4523 = vmatpush3.bf16.xpose.msra.mxu0 %v2418_v25  ;;  %4524 = vmatprep.mubr.msk.bf16.mxu0 %vm5177_vm1, %v5176_v15 }
 0xde6   :  { %4534 = vmatprep.subr.bf16.mxu0 %v5176_v15 }
 0xde8   :  { %4519 = vmatmul.mubr.msk.bf16.vlgmr.msra.gmra.mxu1 %vm612_vm2, %v5797_v53 }
 0xde9   :  { %4529 = vmatpush3.bf16.msra.mxu1 %v2524_v45  ;;  %4530 = vmatprep.mubr.msk.bf16.mxu1 %vm5177_vm1, %v5176_v15 }
 0xdea   :  { %4540 = vmatprep.subr.bf16.mxu1 %v5176_v15 }
 0xdec   :  { %4525 = vmatmul.mubr.msk.bf16.vlgmr.msra.gmra.mxu0 %vm612_vm2, %v5808_v32 }
 0xded   :  { %4535 = vmatpush3.bf16.msra.mxu0 %v2570_v43  ;;  %4536 = vmatprep.mubr.msk.bf16.mxu0 %vm5177_vm1, %v5176_v15 }
 0xdee   :  { %4546 = vmatprep.subr.bf16.mxu0 %v5176_v15 }
 0xea0   :  { %v2316_v33 = vpop.f32.mrf.mxu1 }
 0xea1   :  { %v2460_v5 = vmul.f32 0.25, %v2316_v33 }
 0xea2   :  { %v4508_v36 = vpop.f32.mrf.mxu1 }
 0xea3   :  { %v2464_v38 = vadd.f32 %v2460_v5, %v5525_v4 }
 0xea4   :  { %v2319_v39 = vpop.f32.mrf.mxu1  ;;  %v2362_v44 = vpop.f32.mrf.mxu0 }
 0xea5   :  { %v2461_v46 = vmul.f32 0.25, %v2362_v44  ;;  %v2468_v6 = vsel %vm829_vm4, %v2464_v38, -inf }
 0xea6   :  { %v4514_v26 = vpop.f32.mrf.mxu0  ;;  %2469 = vmax.xlane.f32.xlu0 %v2468_v6  ;;  %v4509_v50 = vpop.f32.mrf.mxu1 }
 0xea7   :  { %v2465_v12 = vadd.f32 %v2461_v46, %v5528_v17 }
 0xea8   :  { %v2365_v52 = vpop.f32.mrf.mxu0  ;;  %v2408_v54 = vpop.f32.mrf.mxu1 }
 0xea9   :  { %v2462_v35 = vmul.f32 0.25, %v2408_v54  ;;  %v2471_v58 = vsel %vm829_vm4, %v2465_v12, -inf }
 0xeaa   :  { %2472 = vmax.xlane.f32.xlu1 %v2471_v58  ;;  %v4515_v60 = vpop.f32.mrf.mxu0  ;;  %v4520_v49 = vpop.f32.mrf.mxu1 }
 0xeab   :  { %v2466_v0 = vadd.f32 %v2462_v35, %v5532_v28 }
 0xeac   :  { %v2411_v3 = vpop.f32.mrf.mxu1  ;;  %v2454_v30 = vpop.f32.mrf.mxu0 }
 0xead   :  { %v2463_v7 = vmul.f32 0.25, %v2454_v30  ;;  %v2474_v61 = vsel %vm829_vm4, %v2466_v0, -inf }
 0xeae   :  { %v4526_v1 = vpop.f32.mrf.mxu0  ;;  %2475 = vmax.xlane.f32.xlu0 %v2474_v61  ;;  %v4521_v8 = vpop.f32.mrf.mxu1 }
 0xeaf   :  { %v2467_v9 = vadd.f32 %v2463_v7, %v5536_v40 }
 0xeb0   :  { %v2457_v27 = vpop.f32.mrf.mxu0 }
 0xeb1   :  { %v2477_v29 = vsel %vm829_vm4, %v2467_v9, -inf }
 0xeb2   :  { %2478 = vmax.xlane.f32.xlu1 %v2477_v29  ;;  %v4527_v10 = vpop.f32.mrf.mxu0 }
 0xf2f   :  { %v2470_v13 = vpop.xlane.xlu0 %2469 }
 0xf30   :  { %v2480_v16 = vsub.f32 %v2464_v38, %v2470_v13 }
 0xf32   :  { %v2484_v19 = vmul.f32 1.442695, %v2480_v16 }
 0xf33   :  { %v2473_v21 = vpop.xlane.xlu1 %2472 }
 0xf34   :  { %4776 = vpow2.f32 %v2484_v19  ;;  %v2481_v22 = vsub.f32 %v2465_v12, %v2473_v21 }
 0xf36   :  { %v2486_v23 = vmul.f32 1.442695, %v2481_v22 }
 0xf37   :  { %v2476_v51 = vpop.xlane.xlu0 %2475 }
 0xf38   :  { %4778 = vpow2.f32 %v2486_v23  ;;  %v2482_v34 = vsub.f32 %v2466_v0, %v2476_v51 }
 0xf3a   :  { %v2488_v56 = vmul.f32 1.442695, %v2482_v34 }
 0xf3b   :  { %v2479_v36 = vpop.xlane.xlu1 %2478 }
 0xf3c   :  { %4780 = vpow2.f32 %v2488_v56  ;;  %v2483_v38 = vsub.f32 %v2467_v9, %v2479_v36 }
 0xf3e   :  { %v2490_v39 = vmul.f32 1.442695, %v2483_v38 }
 0xf40   :  { %4782 = vpow2.f32 %v2490_v39 }
 0xf41   :  { %v4777_v25 = vpop.eup %4776 }
 0xf42   :  { %v2492_v57 = vsel %vm829_vm4, %v4777_v25, 0.0 }
 0xf43   :  { %2493 = vadd.xlane.f32.xlu0 %v2492_v57 }
 0xf45   :  { %v4779_v45 = vpop.eup %4778 }
 0xf46   :  { %v2495_v43 = vsel %vm829_vm4, %v4779_v45, 0.0 }
 0xf47   :  { %2496 = vadd.xlane.f32.xlu1 %v2495_v43 }
 0xf49   :  { %v4781_v33 = vpop.eup %4780 }
 0xf4a   :  { %v2498_v5 = vsel %vm829_vm4, %v4781_v33, 0.0 }
 0xf4b   :  { %2499 = vadd.xlane.f32.xlu0 %v2498_v5 }
 0xf4d   :  { %v4783_v44 = vpop.eup %4782 }
 0xf4e   :  { %v2501_v46 = vsel %vm829_vm4, %v4783_v44, 0.0 }
 0xf58   :  { %2762 = vrot.lane.b32.xlu1 %v5768_v14, %s5178_s13 }
 0xf5c   :  { %2707 = vrot.lane.b32.xlu1 %v5775_v20, %s5178_s13 }
 0xf61   :  { %2710 = vrot.lane.b32.xlu0 %v5764_v2, %s5178_s13 }
 0xf65   :  { %2814 = vrot.lane.b32.xlu0 %v5771_v18, %s5178_s13 }
 0xf69   :  { %2811 = vrot.lane.b32.xlu0 %v5797_v53, %s5178_s13  ;;  %v5848_v53 = vpack.c.bf16 %v5760_v55, %v5760_v55 }
 0xf80   :  { %2502 = vadd.xlane.f32.xlu1 %v2501_v46 }
 0xf91   :  { %2759 = vrot.lane.b32.xlu1 %v5786_v37, %s5178_s13 }
 0xf95   :  { %2866 = vrot.lane.b32.xlu1 %v5780_v24, %s5178_s13  ;;  %v2616_v24 = vsel %vm885_vm3, %v5848_v53, 0 }
 0xf99   :  { %2863 = vrot.lane.b32.xlu1 %v5808_v32, %s5178_s13  ;;  %v5854_v32 = vpack.c.bf16 %v5762_v63, %v5762_v63 }
 0xf9b   :  { %v2662_v52 = vsel %vm885_vm3, %v5854_v32, 0 }
 0xfcc   :  { %v2494_v2 = vpop.xlane.xlu0 %2493 }
 0xfcd   :  { %4784 = vrcp.f32 %v2494_v2 }
 0xfd0   :  { %v2497_v14 = vpop.xlane.xlu1 %2496 }
 0xfd1   :  { %4786 = vrcp.f32 %v2497_v14 }
 0xfd4   :  { %v2500_v18 = vpop.xlane.xlu0 %2499  ;;  %v2763_v60 = vpop.permute.xlu1 %2762 }
 0xfd5   :  { %4788 = vrcp.f32 %v2500_v18  ;;  %v2768_v27 = vsel %vm612_vm2, %v2763_v60, 0 }
 0xfd8   :  { %v2711_v35 = vpop.permute.xlu0 %2710  ;;  %v2708_v0 = vpop.permute.xlu1 %2707 }
 0xfd9   :  { %v2716_v58 = vsel %vm612_vm2, %v2711_v35, 0 }
 0xfda   :  { %v4785_v20 = vpop.eup %4784 }
 0xfdb   :  { %v2508_v6 = vmul.f32 %v4785_v20, %v4777_v25 }
 0xfdc   :  { %v2815_v49 = vpop.permute.xlu0 %2814 }
 0xfdd   :  { %v2512_v26 = vpack.c.bf16 %v2508_v6, %v2508_v6  ;;  %v2820_v3 = vsel %vm612_vm2, %v2815_v49, 0 }
 0xfde   :  { %v4787_v37 = vpop.eup %4786 }
 0xfdf   :  { %4531 = vmatmul.mubr.msk.bf16.vlgmr.msra.gmra.mxu1 %vm829_vm4, %v2512_v26  ;;  %v2509_v50 = vmul.f32 %v4787_v37, %v4779_v45 }
 0xfe0   :  { %4541 = vmatpush3.bf16.msra.mxu1 %v2616_v24  ;;  %4542 = vmatprep.mubr.msk.bf16.mxu1 %vm5177_vm1, %v5176_v15  ;;  %v2812_v30 = vpop.permute.xlu0 %2811 }
 0xfe1   :  { %v2513_v12 = vpack.c.bf16 %v2509_v50, %v2509_v50  ;;  %4552 = vmatprep.subr.bf16.mxu1 %v5176_v15 }
 0xfe2   :  { %v4789_v55 = vpop.eup %4788 }
 0xfe3   :  { %4537 = vmatmul.mubr.msk.bf16.vlgmr.msra.gmra.mxu0 %vm829_vm4, %v2513_v12  ;;  %v2510_v54 = vmul.f32 %v4789_v55, %v4781_v33 }
 0xfe4   :  { %4547 = vmatpush3.bf16.msra.mxu0 %v2662_v52  ;;  %4548 = vmatprep.mubr.msk.bf16.mxu0 %vm5177_vm1, %v5176_v15 }
 0xfe5   :  { %v2514_v63 = vpack.c.bf16 %v2510_v54, %v2510_v54  ;;  %4558 = vmatprep.subr.bf16.mxu0 %v5176_v15 }
 0xfe7   :  { %4543 = vmatmul.mubr.msk.bf16.vlgmr.msra.gmra.mxu1 %vm829_vm4, %v2514_v63 }
 0xfe8   :  { %4553 = vmatpush3.bf16.xpose.msra.mxu1 %v2716_v58  ;;  %4554 = vmatprep.mubr.msk.bf16.mxu1 %vm5177_vm1, %v5176_v15 }
 0xfe9   :  { %4564 = vmatprep.subr.bf16.mxu1 %v5176_v15 }
 0xfef   :  { %4555 = vmatmul.mubr.msk.bf16.vlgmr.msra.gmra.mxu1 %vm612_vm2, %v2708_v0 }
 0xff0   :  { %4565 = vmatpush3.bf16.xpose.msra.mxu1 %v2820_v3  ;;  %4566 = vmatprep.mubr.msk.bf16.mxu1 %vm5177_vm1, %v5176_v15 }
 0xff1   :  { %4576 = vmatprep.subr.bf16.mxu1 %v5176_v15 }
 0xff7   :  { %4567 = vmatmul.mubr.msk.bf16.vlgmr.msra.gmra.mxu1 %vm612_vm2, %v2812_v30 }
 0xff8   :  { %4578 = vmatprep.mubr.msk.bf16.mxu1 %vm5177_vm1, %v5176_v15 }
0x1009   :  { %v2503_v7 = vpop.xlane.xlu1 %2502 }
0x100a   :  { %4790 = vrcp.f32 %v2503_v7 }
0x100d   :  { %v2760_v9 = vpop.permute.xlu1 %2759 }
0x1011   :  { %v2867_v29 = vpop.permute.xlu1 %2866 }
0x1012   :  { %v2872_v10 = vsel %vm612_vm2, %v2867_v29, 0 }
0x1015   :  { %v2864_v13 = vpop.permute.xlu1 %2863 }
0x1017   :  { %v4791_v61 = vpop.eup %4790 }
0x1018   :  { %v2511_v1 = vmul.f32 %v4791_v61, %v4783_v44 }
0x101a   :  { %v2515_v8 = vpack.c.bf16 %v2511_v1, %v2511_v1 }
0x101c   :  { %4549 = vmatmul.mubr.msk.bf16.vlgmr.msra.gmra.mxu0 %vm829_vm4, %v2515_v8 }
0x101d   :  { %4559 = vmatpush3.bf16.xpose.msra.mxu0 %v2768_v27  ;;  %4560 = vmatprep.mubr.msk.bf16.mxu0 %vm5177_vm1, %v5176_v15 }
0x101e   :  { %4570 = vmatprep.subr.bf16.mxu0 %v5176_v15 }
0x1024   :  { %4561 = vmatmul.mubr.msk.bf16.vlgmr.msra.gmra.mxu0 %vm612_vm2, %v2760_v9 }
0x1025   :  { %4571 = vmatpush3.bf16.xpose.msra.mxu0 %v2872_v10  ;;  %4572 = vmatprep.mubr.msk.bf16.mxu0 %vm5177_vm1, %v5176_v15 }
0x1026   :  { %4582 = vmatprep.subr.bf16.mxu0 %v5176_v15 }
0x102c   :  { %4573 = vmatmul.mubr.msk.bf16.vlgmr.msra.gmra.mxu0 %vm612_vm2, %v2864_v13 }
0x102d   :  { %4584 = vmatprep.mubr.msk.bf16.mxu0 %vm5177_vm1, %v5176_v15 }
0x109f   :  { %v5892_v16 = vpop.f32.mrf.mxu1 }
0x10a1   :  { %v4532_v19 = vpop.f32.mrf.mxu1 }
0x10a3   :  { %v2563_v21 = vpop.f32.mrf.mxu1  ;;  %v5894_v22 = vpop.f32.mrf.mxu0 }
0x10a4   :  { %v2704_v23 = vpack.c.bf16 %v5894_v22, %v5892_v16 }
0x10a5   :  { %v4533_v51 = vpop.f32.mrf.mxu1  ;;  %v4538_v34 = vpop.f32.mrf.mxu0 }
0x10a7   :  { %v2609_v56 = vpop.f32.mrf.mxu0  ;;  %v5898_v25 = vpop.f32.mrf.mxu1 }
0x10a9   :  { %v4539_v57 = vpop.f32.mrf.mxu0  ;;  %v4544_v45 = vpop.f32.mrf.mxu1 }
0x10ab   :  { %v2655_v43 = vpop.f32.mrf.mxu1 }
0x10ad   :  { %v4545_v33 = vpop.f32.mrf.mxu1 }
0x10af   :  { %v2752_v5 = vpop.f32.mrf.mxu1 }
0x10b0   :  { %v2914_v36 = vmul.f32 0.25, %v2752_v5 }
0x10b1   :  { %v4556_v38 = vpop.f32.mrf.mxu1 }
0x10b2   :  { %v2918_v39 = vadd.f32 %v2914_v36, %v5525_v4 }
0x10b3   :  { %v2755_v44 = vpop.f32.mrf.mxu1 }
0x10b4   :  { %v2922_v46 = vsel %vm829_vm4, %v2918_v39, -inf }
0x10b5   :  { %2923 = vmax.xlane.f32.xlu0 %v2922_v46  ;;  %v4557_v2 = vpop.f32.mrf.mxu1 }
0x10b7   :  { %v2856_v14 = vpop.f32.mrf.mxu1 }
0x10b8   :  { %v2916_v18 = vmul.f32 0.25, %v2856_v14 }
0x10b9   :  { %v4568_v20 = vpop.f32.mrf.mxu1 }
0x10ba   :  { %v2920_v6 = vadd.f32 %v2916_v18, %v5532_v28 }
0x10bb   :  { %v2859_v26 = vpop.f32.mrf.mxu1 }
0x10bc   :  { %v2928_v37 = vsel %vm829_vm4, %v2920_v6, -inf }
0x10bd   :  { %2929 = vmax.xlane.f32.xlu0 %v2928_v37  ;;  %v4569_v24 = vpop.f32.mrf.mxu1 }
0x10dc   :  { %v5904_v50 = vpop.f32.mrf.mxu0 }
0x10dd   :  { %v2705_v4 = vpack.c.bf16 %v5904_v50, %v5898_v25 }
0x10de   :  { %v4550_v12 = vpop.f32.mrf.mxu0 }
0x10e0   :  { %v2701_v55 = vpop.f32.mrf.mxu0 }
0x10e2   :  { %v4551_v52 = vpop.f32.mrf.mxu0 }
0x10e4   :  { %v2804_v54 = vpop.f32.mrf.mxu0 }
0x10e5   :  { %v2915_v35 = vmul.f32 0.25, %v2804_v54 }
0x10e6   :  { %v4562_v63 = vpop.f32.mrf.mxu0 }
0x10e7   :  { %v2919_v58 = vadd.f32 %v2915_v35, %v5528_v17  ;;  %v4700_v63 = vld [vmem:[#allocation16 + $0x10] sm:$0xff]  }
0x10e8   :  { %v2807_v60 = vpop.f32.mrf.mxu0 }
0x10e9   :  { %v2925_v28 = vsel %vm829_vm4, %v2919_v58, -inf }
0x10ea   :  { %2926 = vmax.xlane.f32.xlu1 %v2925_v28  ;;  %v4563_v49 = vpop.f32.mrf.mxu0 }
0x10ec   :  { %v2908_v0 = vpop.f32.mrf.mxu0 }
0x10ed   :  { %v2917_v3 = vmul.f32 0.25, %v2908_v0 }
0x10ee   :  { %v4574_v30 = vpop.f32.mrf.mxu0 }
0x10ef   :  { %v2921_v7 = vadd.f32 %v2917_v3, %v5536_v40  ;;  %v4701_v3 = vld [vmem:[#allocation16 + $0x18] sm:$0xff]  }
0x10f0   :  { %v2911_v61 = vpop.f32.mrf.mxu0 }
0x10f1   :  { %v2931_v1 = vsel %vm829_vm4, %v2921_v7, -inf }
0x10f2   :  { %v4575_v8 = vpop.f32.mrf.mxu0  ;;  %2932 = vmax.xlane.f32.xlu0 %v2931_v1 }
0x113e   :  { %v2924_v9 = vpop.xlane.xlu0 %2923 }
0x113f   :  { %v2934_v27 = vsub.f32 %v2918_v39, %v2924_v9 }
0x1141   :  { %v2938_v29 = vmul.f32 1.442695, %v2934_v27 }
0x1143   :  { %4792 = vpow2.f32 %v2938_v29 }
0x1146   :  { %v2930_v17 = vpop.xlane.xlu0 %2929 }
0x1147   :  { %v2936_v10 = vsub.f32 %v2920_v6, %v2930_v17 }
0x1149   :  { %v2942_v13 = vmul.f32 1.442695, %v2936_v10 }
0x114b   :  { %4794 = vpow2.f32 %v2942_v13 }
0x1150   :  { %v4793_v19 = vpop.eup %4792 }
0x1151   :  { %v2946_v21 = vsel %vm829_vm4, %v4793_v19, 0.0 }
0x1152   :  { %2947 = vadd.xlane.f32.xlu0 %v2946_v21 }
0x1158   :  { %v4795_v51 = vpop.eup %4794 }
0x1159   :  { %v2952_v40 = vsel %vm829_vm4, %v4795_v51, 0.0 }
0x115a   :  { %2953 = vadd.xlane.f32.xlu0 %v2952_v40 }
0x1170   :  { %2971 = vrot.lane.b32.xlu0 %v5789_v41, %s5178_s13 }
0x1173   :  { %v2927_v34 = vpop.xlane.xlu1 %2926 }
0x1174   :  { %v2935_v56 = vsub.f32 %v2919_v58, %v2927_v34 }
0x1176   :  { %v2940_v57 = vmul.f32 1.442695, %v2935_v56 }
0x1178   :  { %4796 = vpow2.f32 %v2940_v57  ;;  %v4156_v57 = vld [vmem:[#allocation17 + $0x1] ss:$0 sm:$0xff] }
0x117b   :  { %v2933_v33 = vpop.xlane.xlu0 %2932 }
0x117c   :  { %v2937_v5 = vsub.f32 %v2921_v7, %v2933_v33 }
0x117e   :  { %v2944_v36 = vmul.f32 1.442695, %v2937_v5 }
0x1180   :  { %4798 = vpow2.f32 %v2944_v36 }
0x1185   :  { %v4797_v45 = vpop.eup %4796 }
0x1186   :  { %v2949_v43 = vsel %vm829_vm4, %v4797_v45, 0.0 }
0x1187   :  { %2950 = vadd.xlane.f32.xlu1 %v2949_v43 }
0x118d   :  { %v4799_v38 = vpop.eup %4798 }
0x118e   :  { %v2955_v41 = vsel %vm829_vm4, %v4799_v38, 0.0 }
0x1198   :  { %3020 = vrot.lane.b32.xlu1 %v5802_v31, %s5178_s13 }
0x119c   :  { %3069 = vrot.lane.b32.xlu1 %v5848_v53, %s5178_s13 }
0x11c0   :  { %2956 = vadd.xlane.f32.xlu1 %v2955_v41 }
0x11d1   :  { %3118 = vrot.lane.b32.xlu1 %v5854_v32, %s5178_s13 }
0x11db   :  { %v2948_v39 = vpop.xlane.xlu0 %2947 }
0x11dc   :  { %4800 = vrcp.f32 %v2948_v39 }
0x11e3   :  { %v2954_v44 = vpop.xlane.xlu0 %2953 }
0x11e4   :  { %4802 = vrcp.f32 %v2954_v44 }
0x11e7   :  { %v2972_v46 = vpop.permute.xlu0 %2971 }
0x11e8   :  { %v2977_v31 = vsel %vm885_vm3, %v2972_v46, 0 }
0x11e9   :  { %v4801_v2 = vpop.eup %4800  ;;  %4577 = vmatpush3.bf16.msra.mxu1 %v2977_v31 }
0x11ea   :  { %v2962_v53 = vmul.f32 %v4801_v2, %v4793_v19  ;;  %4588 = vmatprep.subr.bf16.mxu1 %v5176_v15 }
0x11ec   :  { %v2966_v14 = vpack.c.bf16 %v2962_v53, %v2962_v53 }
0x11ee   :  { %4579 = vmatmul.mubr.msk.bf16.vlgmr.msra.gmra.mxu1 %vm829_vm4, %v2966_v14 }
0x11ef   :  { %4590 = vmatprep.mubr.msk.bf16.mxu1 %vm5177_vm1, %v5176_v15 }
0x11f1   :  { %v4803_v32 = vpop.eup %4802 }
0x11f2   :  { %v2964_v26 = vmul.f32 %v4803_v32, %v4795_v51 }
0x11f4   :  { %v2968_v12 = vpack.c.bf16 %v2964_v26, %v2964_v26 }
0x1210   :  { %v2951_v18 = vpop.xlane.xlu1 %2950 }
0x1211   :  { %4804 = vrcp.f32 %v2951_v18 }
0x1214   :  { %v3021_v20 = vpop.permute.xlu1 %3020 }
0x1215   :  { %v3026_v6 = vsel %vm885_vm3, %v3021_v20, 0 }
0x1216   :  { %4583 = vmatpush3.bf16.msra.mxu0 %v3026_v6 }
0x1217   :  { %4594 = vmatprep.subr.bf16.mxu0 %v5176_v15 }
0x1218   :  { %v3070_v37 = vpop.permute.xlu1 %3069 }
0x1219   :  { %v3075_v24 = vsel %vm885_vm3, %v3070_v37, 0 }
0x121a   :  { %4589 = vmatpush3.bf16.msra.mxu1 %v3075_v24 }
0x121b   :  { %4600 = vmatprep.subr.bf16.mxu1 %v4701_v3 }
0x121d   :  { %4591 = vmatmul.mubr.msk.bf16.vlgmr.msra.gmra.mxu1 %vm829_vm4, %v2968_v12 }
0x121e   :  { %v4805_v55 = vpop.eup %4804  ;;  %4601 = vmatpush3.bf16.msra.mxu1 %v4701_v3 }
0x121f   :  { %v2963_v52 = vmul.f32 %v4805_v55, %v4797_v45 }
0x1221   :  { %v2967_v54 = vpack.c.bf16 %v2963_v52, %v2963_v52 }
0x1223   :  { %4585 = vmatmul.mubr.msk.bf16.vlgmr.msra.gmra.mxu0 %vm829_vm4, %v2967_v54 }
0x1224   :  { %4596 = vmatprep.mubr.msk.bf16.mxu0 %vm5177_vm1, %v5176_v15 }
0x1249   :  { %v2957_v35 = vpop.xlane.xlu1 %2956 }
0x124a   :  { %4806 = vrcp.f32 %v2957_v35 }
0x124d   :  { %v3119_v58 = vpop.permute.xlu1 %3118 }
0x124e   :  { %v3124_v60 = vsel %vm885_vm3, %v3119_v58, 0 }
0x124f   :  { %4595 = vmatpush3.bf16.msra.mxu0 %v3124_v60 }
0x1250   :  { %4606 = vmatprep.subr.bf16.mxu0 %v4700_v63 }
0x1257   :  { %v4807_v28 = vpop.eup %4806 }
0x1258   :  { %v2965_v49 = vmul.f32 %v4807_v28, %v4799_v38 }
0x125a   :  { %v2969_v0 = vpack.c.bf16 %v2965_v49, %v2965_v49 }
0x125c   :  { %4597 = vmatmul.mubr.msk.bf16.vlgmr.msra.gmra.mxu0 %vm829_vm4, %v2969_v0 }
0x125d   :  { %4608 = vmatprep.mubr.msk.bf16.mxu0 %vm612_vm2, %v2704_v23  ;;  %4607 = vmatpush3.bf16.msra.mxu0 %v4700_v63 }
0x1264   :  { %4609 = vmatmul.mubr.msk.bf16.vlgmr.msra.gmra.mxu0 %vm612_vm2, %v2705_v4 }
0x12ae   :  { %v3013_v30 = vpop.f32.mrf.mxu1 }
0x12b0   :  { %v4580_v7 = vpop.f32.mrf.mxu1 }
0x12b2   :  { %v3016_v61 = vpop.f32.mrf.mxu1 }
0x12b3   :  { %v4702_v61 = vld [vmem:[#allocation22 + $0x18] sm:$0xff]  }
0x12b4   :  { %v4581_v1 = vpop.f32.mrf.mxu1  ;;  %4612 = vmatprep.subr.bf16.mxu1 %v4702_v61 }
0x12b5   :  { %v4703_v1 = vld [vmem:[#allocation22 + $0x10] sm:$0xff]  }
0x12dd   :  { %v3111_v8 = vpop.f32.mrf.mxu1 }
0x12df   :  { %v4592_v9 = vpop.f32.mrf.mxu1 }
0x12e1   :  { %v3114_v27 = vpop.f32.mrf.mxu1 }
0x12e3   :  { %v3062_v29 = vpop.f32.mrf.mxu0  ;;  %v4593_v16 = vpop.f32.mrf.mxu1 }
0x12e4   :  { %v3166_v22 = vpack.c.bf16 %v3062_v29, %v3013_v30 }
0x12e5   :  { %v4586_v23 = vpop.f32.mrf.mxu0 }
0x12e6   :  { %4602 = vmatprep.mubr.msk.bf16.mxu1 %vm612_vm2, %v3166_v22 }
0x12e7   :  { %v3065_v17 = vpop.f32.mrf.mxu0 }
0x12e9   :  { %v4587_v25 = vpop.f32.mrf.mxu0 }
0x131c   :  { %v3160_v50 = vpop.f32.mrf.mxu0 }
0x131d   :  { %v3167_v4 = vpack.c.bf16 %v3160_v50, %v3111_v8 }
0x131e   :  { %v4598_v10 = vpop.f32.mrf.mxu0 }
0x131f   :  { %4603 = vmatmul.mubr.msk.bf16.vlgmr.msra.gmra.mxu1 %vm612_vm2, %v3167_v4 }
0x1320   :  { %v3163_v13 = vpop.f32.mrf.mxu0  ;;  %4613 = vmatpush3.bf16.msra.mxu1 %v4702_v61 }
0x1321   :  { %4614 = vmatprep.subr.bf16.mxu1 %v4703_v1 }
0x1322   :  { %v4599_v19 = vpop.f32.mrf.mxu0 }
0x1324   :  { %v4610_v21 = vpop.f32.mrf.mxu0  ;;  %4615 = vmatpush3.bf16.msra.mxu1 %v4703_v1 }
0x1325   :  { %4632 = vmatprep.subr.bf16.mxu1 %v5176_v15 }
0x1326   :  { %v3275_v51 = vpop.f32.mrf.mxu0 }
0x1328   :  { %v4611_v56 = vpop.f32.mrf.mxu0 }
0x132a   :  { %v3278_v41 = vpop.f32.mrf.mxu0 }
0x13df   :  { %v4604_v40 = vpop.f32.mrf.mxu1 }
0x13e0   :  { %v3284_v34 = vadd.f32 %v4610_v21, %v4604_v40  ;;  %v4157_v21 = vld [vmem:[#allocation19 + $0x1] ss:$0 sm:$0xff] }
0x13e1   :  { %v3214_v45 = vpop.f32.mrf.mxu1 }
0x13e2   :  { %v3276_v43 = vadd.f32 %v3275_v51, %v3214_v45  ;;  %v3300_v5 = vadd.f32 %v4156_v57, %v3284_v34  ;;  %v4158_v45 = vld [vmem:[#allocation20 + $0x1] ss:$0 sm:$0xff] }
0x13e3   :  { %v4605_v33 = vpop.f32.mrf.mxu1 }
0x13e4   :  { %v3298_v36 = vadd.f32 %v4156_v57, %v3276_v43  ;;  %v3287_v38 = vadd.f32 %v4611_v56, %v4605_v33  ;;  %v3304_v14 = vadd.f32 %v3300_v5, %v5745_v47 }
0x13e5   :  { %v3217_v39 = vpop.f32.mrf.mxu1 }
0x13e6   :  { %v3279_v44 = vadd.f32 %v3278_v41, %v3217_v39  ;;  %v3302_v46 = vadd.f32 %v3298_v36, %v5737_v42  ;;  %v3301_v31 = vadd.f32 %v4156_v57, %v3287_v38  ;;  %v3316_v32 = vsel %vm290_vm0, %v3304_v14, 0.0 }
0x13e8   :  { %v3299_v2 = vadd.f32 %v4156_v57, %v3279_v44  ;;  %v3310_v53 = vsel %vm290_vm0, %v3302_v46, 0.0  ;;  %v3305_v6 = vadd.f32 %v3301_v31, %v5747_v48 }
0x13e9   :  { %3311 = vadd.xlane.f32.xlu0 %v3310_v53  ;;  %v4704_v53 = vld [vmem:[%s6073_s18 + $0x38] sm:$0xff]  }
0x13ea   :  { %v3303_v18 = vadd.f32 %v3299_v2, %v5739_v11  ;;  %v3319_v26 = vsel %vm290_vm0, %v3305_v6, 0.0  ;;  %4620 = vmatprep.subr.bf16.mxu0 %v4704_v53 }
0x13eb   :  { %4621 = vmatpush3.bf16.msra.mxu0 %v4704_v53 }
0x13ec   :  { %v3313_v20 = vsel %vm290_vm0, %v3303_v18, 0.0 }
0x13ed   :  { %3317 = vadd.xlane.f32.xlu0 %v3316_v32  ;;  %3314 = vadd.xlane.f32.xlu1 %v3313_v20  ;;  %v4707_v32 = vld [vmem:[%s6073_s18 + $0x20] sm:$0xff]   ;;  %v4159_v20 = vld [vmem:[#allocation23 + $0x1] ss:$0 sm:$0xff] }
0x13f1   :  { %3320 = vadd.xlane.f32.xlu0 %v3319_v26 }
0x1472   :  { %v3312_v42 = vpop.xlane.xlu0 %3311 }
0x1473   :  { %v3322_v37 = vmul.f32 0.03125, %v3312_v42 }
0x1475   :  { %v3326_v24 = vsub.f32 %v3302_v46, %v3322_v37 }
0x1476   :  { %v3318_v12 = vpop.xlane.xlu0 %3317  ;;  %v3315_v55 = vpop.xlane.xlu1 %3314 }
0x1477   :  { %v3324_v47 = vmul.f32 0.03125, %v3318_v12  ;;  %v3323_v52 = vmul.f32 0.03125, %v3315_v55  ;;  %v3330_v54 = vmul.f32 %v3326_v24, %v3326_v24 }
0x1479   :  { %v3328_v11 = vsub.f32 %v3304_v14, %v3324_v47  ;;  %v3327_v35 = vsub.f32 %v3303_v18, %v3323_v52  ;;  %v3334_v63 = vsel %vm290_vm0, %v3330_v54, 0.0  ;;  %v4705_v14 = vld [vmem:[%s6073_s18 + $0x30] sm:$0xff]   ;;  %v4706_v18 = vld [vmem:[%s6073_s18 + $0x28] sm:$0xff]  }
0x147a   :  { %3335 = vadd.xlane.f32.xlu0 %v3334_v63  ;;  %v3321_v58 = vpop.xlane.xlu0 %3320  ;;  %4622 = vmatprep.subr.bf16.mxu0 %v4705_v14 }
0x147b   :  { %v3325_v48 = vmul.f32 0.03125, %v3321_v58  ;;  %v3332_v60 = vmul.f32 %v3328_v11, %v3328_v11  ;;  %v3331_v28 = vmul.f32 %v3327_v35, %v3327_v35  ;;  %4623 = vmatpush3.bf16.msra.mxu0 %v4705_v14 }
0x147c   :  { %4624 = vmatprep.subr.bf16.mxu0 %v4706_v18 }
0x147d   :  { %v3329_v49 = vsub.f32 %v3305_v6, %v3325_v48  ;;  %v3340_v0 = vsel %vm290_vm0, %v3332_v60, 0.0  ;;  %v3337_v3 = vsel %vm290_vm0, %v3331_v28, 0.0 }
0x147e   :  { %3341 = vadd.xlane.f32.xlu0 %v3340_v0  ;;  %3338 = vadd.xlane.f32.xlu1 %v3337_v3 }
0x147f   :  { %v3333_v30 = vmul.f32 %v3329_v49, %v3329_v49  ;;  %4625 = vmatpush3.bf16.msra.mxu0 %v4706_v18 }
0x1480   :  { %4626 = vmatprep.subr.bf16.mxu0 %v4707_v32 }
0x1481   :  { %v3343_v7 = vsel %vm290_vm0, %v3333_v30, 0.0 }
0x1482   :  { %3344 = vadd.xlane.f32.xlu1 %v3343_v7 }
0x1483   :  { %4627 = vmatpush3.bf16.msra.mxu0 %v4707_v32 }
0x1484   :  { %4648 = vmatprep.subr.mxu0 %v5176_v15 }
0x1503   :  { %v3336_v8 = vpop.xlane.xlu0 %3335 }
0x1504   :  { %v3346_v9 = vmul.f32 0.03125, %v3336_v8 }
0x1506   :  { %v3350_v27 = vadd.f32 1e-12, %v3346_v9 }
0x1507   :  { %v3342_v29 = vpop.xlane.xlu0 %3341  ;;  %v3339_v16 = vpop.xlane.xlu1 %3338 }
0x1508   :  { %4808 = vrsqrt.f32 %v3350_v27  ;;  %v3348_v22 = vmul.f32 0.03125, %v3342_v29  ;;  %v3347_v23 = vmul.f32 0.03125, %v3339_v16 }
0x150a   :  { %v3352_v17 = vadd.f32 1e-12, %v3348_v22  ;;  %v3351_v25 = vadd.f32 1e-12, %v3347_v23 }
0x150b   :  { %v3345_v50 = vpop.xlane.xlu1 %3344 }
0x150c   :  { %4810 = vrsqrt.f32 %v3352_v17  ;;  %v3349_v4 = vmul.f32 0.03125, %v3345_v50 }
0x150d   :  { %4812 = vrsqrt.f32 %v3351_v25 }
0x150e   :  { %v3353_v10 = vadd.f32 1e-12, %v3349_v4 }
0x1510   :  { %4814 = vrsqrt.f32 %v3353_v10 }
0x1515   :  { %v4809_v13 = vpop.eup %4808 }
0x1516   :  { %v3358_v19 = vmul.f32 %v4809_v13, %v3326_v24 }
0x1518   :  { %v3368_v57 = vmul.f32 %v4157_v21, %v3358_v19 }
0x1519   :  { %v4811_v51 = vpop.eup %4810 }
0x151a   :  { %v4813_v40 = vpop.eup %4812  ;;  %v3360_v34 = vmul.f32 %v4811_v51, %v3328_v11  ;;  %v5961_v38 = vadd.f32 %v4158_v45, %v3368_v57 }
0x151b   :  { %v3359_v56 = vmul.f32 %v4813_v40, %v3327_v35 }
0x151c   :  { %v3370_v36 = vmul.f32 %v4157_v21, %v3360_v34 }
0x151d   :  { %v4815_v43 = vpop.eup %4814  ;;  %v3369_v33 = vmul.f32 %v4157_v21, %v3359_v56 }
0x151e   :  { %v3361_v5 = vmul.f32 %v4815_v43, %v3329_v49  ;;  %v5967_v46 = vadd.f32 %v4158_v45, %v3370_v36 }
0x151f   :  { %v5963_v41 = vadd.f32 %v4158_v45, %v3369_v33  ;;  %v4173_v33 = vld [vmem:[%s6074_s19 + $0x1] ss:$0 sm:$0xff] }
0x1520   :  { %v3371_v39 = vmul.f32 %v4157_v21, %v3361_v5 }
0x1521   :  { %v3382_v44 = vpack.c.bf16 %v5963_v41, %v5961_v38 }
0x1522   :  { %v5969_v31 = vadd.f32 %v4158_v45, %v3371_v39 }
0x1523   :  { %4616 = vmatprep.mubr.msk.bf16.mxu1 %vm290_vm0, %v3382_v44 }
0x1524   :  { %v3383_v2 = vpack.c.bf16 %v5969_v31, %v5967_v46 }
0x1526   :  { %4617 = vmatmul.mubr.msk.bf16.vlgmr.msra.gmra.mxu1 %vm290_vm0, %v3383_v2 }
0x1527   :  { %4636 = vmatprep.mubr.msk.bf16.mxu1 %vm5177_vm1, %v5176_v15 }
0x15e6   :  { %v4618_v6 = vpop.f32.mrf.mxu1 }
0x15e7   :  { %v3458_v26 = vadd.f32 %v4618_v6, %v4159_v20 }
0x15e8   :  { %v3449_v42 = vpop.f32.mrf.mxu1 }
0x15e9   :  { %v3470_v37 = vmul.f32 0.044715, %v3458_v26  ;;  %v3450_v24 = vadd.f32 %v4159_v20, %v3449_v42  ;;  %v3466_v51 = vmul.f32 0.5, %v3458_v26 }
0x15ea   :  { %v4619_v12 = vpop.f32.mrf.mxu1 }
0x15eb   :  { %v3474_v55 = vmul.f32 %v3470_v37, %v3458_v26  ;;  %v3468_v47 = vmul.f32 0.044715, %v3450_v24  ;;  %v3461_v52 = vadd.f32 %v4619_v12, %v4159_v20  ;;  %v3464_v13 = vmul.f32 0.5, %v3450_v24 }
0x15ec   :  { %v3452_v54 = vpop.f32.mrf.mxu1 }
0x15ed   :  { %v3478_v11 = vmul.f32 %v3474_v55, %v3458_v26  ;;  %v3472_v35 = vmul.f32 %v3468_v47, %v3450_v24  ;;  %v3471_v63 = vmul.f32 0.044715, %v3461_v52  ;;  %v3453_v58 = vadd.f32 %v4159_v20, %v3452_v54 }
0x15ee   :  { %v3467_v4 = vmul.f32 0.5, %v3461_v52 }
0x15ef   :  { %v3482_v48 = vadd.f32 %v3478_v11, %v3458_v26  ;;  %v3476_v60 = vmul.f32 %v3472_v35, %v3450_v24  ;;  %v3475_v28 = vmul.f32 %v3471_v63, %v3461_v52  ;;  %v3469_v49 = vmul.f32 0.044715, %v3453_v58 }
0x15f0   :  { %v3465_v19 = vmul.f32 0.5, %v3453_v58 }
0x15f1   :  { %v3486_v0 = vmul.f32 0.7978846, %v3482_v48  ;;  %v3480_v3 = vadd.f32 %v3476_v60, %v3450_v24  ;;  %v3479_v30 = vmul.f32 %v3475_v28, %v3461_v52  ;;  %v3473_v7 = vmul.f32 %v3469_v49, %v3453_v58 }
0x15f3   :  { %v3484_v61 = vmul.f32 0.7978846, %v3480_v3  ;;  %v3483_v1 = vadd.f32 %v3479_v30, %v3461_v52  ;;  %v3477_v8 = vmul.f32 %v3473_v7, %v3453_v58  ;;  %4816 = vtanh.f32 %v3486_v0 }
0x15f5   :  { %v3487_v9 = vmul.f32 0.7978846, %v3483_v1  ;;  %4818 = vtanh.f32 %v3484_v61  ;;  %v3481_v27 = vadd.f32 %v3477_v8, %v3453_v58  ;;  %v4708_v61 = vld [vmem:[%s6077_s22 + $0x8] sm:$0xff]   ;;  %v4709_v1 = vld [vmem:[%s6077_s22] sm:$0xff]  }
0x15f6   :  { %4633 = vmatpush3.bf16.msra.mxu1 %v4708_v61 }
0x15f7   :  { %4820 = vtanh.f32 %v3487_v9  ;;  %v3485_v29 = vmul.f32 0.7978846, %v3481_v27  ;;  %4634 = vmatprep.subr.bf16.mxu1 %v5176_v15 }
0x15f9   :  { %4822 = vtanh.f32 %v3485_v29 }
0x15fa   :  { %4635 = vmatpush3.bf16.msra.mxu1 %v4709_v1 }
0x15fb   :  { %4640 = vmatprep.subr.bf16.mxu1 %v5176_v15 }
0x1600   :  { %v4817_v16 = vpop.eup %4816 }
0x1601   :  { %v3494_v10 = vadd.f32 1.0, %v4817_v16 }
0x1602   :  { %v4819_v22 = vpop.eup %4818 }
0x1603   :  { %v3492_v25 = vadd.f32 1.0, %v4819_v22  ;;  %v3498_v57 = vmul.f32 %v3494_v10, %v3466_v51 }
0x1604   :  { %v4821_v23 = vpop.eup %4820 }
0x1605   :  { %v3495_v17 = vadd.f32 1.0, %v4821_v23  ;;  %v3496_v34 = vmul.f32 %v3492_v25, %v3464_v13 }
0x1606   :  { %v4823_v50 = vpop.eup %4822 }
0x1607   :  { %v3493_v21 = vadd.f32 1.0, %v4823_v50  ;;  %v3499_v40 = vmul.f32 %v3495_v17, %v3467_v4 }
0x1609   :  { %v3497_v56 = vmul.f32 %v3493_v21, %v3465_v19  ;;  %v3501_v43 = vpack.c.bf16 %v3499_v40, %v3498_v57  ;;  %v4182_v19 = vld [vmem:[%s6075_s20 + $0x1] ss:$0 sm:$0xff] }
0x160b   :  { %v3500_v45 = vpack.c.bf16 %v3497_v56, %v3496_v34  ;;  %v4183_v34 = vld [vmem:[%s6076_s21 + $0x1] ss:$0 sm:$0xff] }
0x160d   :  { %4628 = vmatprep.mubr.msk.bf16.mxu0 %vm1899_vm5, %v3500_v45 }
0x160e   :  { %4629 = vmatmul.mubr.msk.bf16.vlgmr.msra.gmra.mxu0 %vm1899_vm5, %v3501_v43 }
0x160f   :  { %4650 = vmatprep.mubr.msk.f32.mxu0 %vm5177_vm1, %v5176_v15 }
0x16ce   :  { %v4630_v5 = vpop.f32.mrf.mxu0 }
0x16cf   :  { %v3592_v36 = vadd.f32 %v4630_v5, %v4173_v33 }
0x16d0   :  { %v3583_v39 = vpop.f32.mrf.mxu0 }
0x16d1   :  { %v3600_v44 = vadd.f32 %v3592_v36, %v5967_v46  ;;  %v3584_v32 = vadd.f32 %v4173_v33, %v3583_v39 }
0x16d2   :  { %v4631_v2 = vpop.f32.mrf.mxu0 }
0x16d3   :  { %v3595_v53 = vadd.f32 %v4631_v2, %v4173_v33  ;;  %v3612_v14 = vsel %vm290_vm0, %v3600_v44, 0.0  ;;  %v3598_v24 = vadd.f32 %v3584_v32, %v5961_v38 }
0x16d4   :  { %3613 = vadd.xlane.f32.xlu1 %v3612_v14  ;;  %v3586_v18 = vpop.f32.mrf.mxu0 }
0x16d5   :  { %v3587_v20 = vadd.f32 %v4173_v33, %v3586_v18  ;;  %v3601_v6 = vadd.f32 %v3595_v53, %v5969_v31  ;;  %v3606_v46 = vsel %vm290_vm0, %v3598_v24, 0.0 }
0x16d7   :  { %v3615_v26 = vsel %vm290_vm0, %v3601_v6, 0.0  ;;  %v3599_v42 = vadd.f32 %v3587_v20, %v5963_v41 }
0x16d8   :  { %3616 = vadd.xlane.f32.xlu1 %v3615_v26 }
0x16d9   :  { %v3609_v37 = vsel %vm290_vm0, %v3599_v42, 0.0 }
0x16da   :  { %3610 = vadd.xlane.f32.xlu0 %v3609_v37 }
0x16de   :  { %3607 = vadd.xlane.f32.xlu0 %v3606_v46 }
0x175d   :  { %v3614_v12 = vpop.xlane.xlu1 %3613 }
0x175e   :  { %v3620_v55 = vmul.f32 0.03125, %v3614_v12 }
0x1760   :  { %v3624_v47 = vsub.f32 %v3600_v44, %v3620_v55 }
0x1761   :  { %v3617_v52 = vpop.xlane.xlu1 %3616 }
0x1762   :  { %v3621_v54 = vmul.f32 0.03125, %v3617_v52  ;;  %v3628_v11 = vmul.f32 %v3624_v47, %v3624_v47 }
0x1763   :  { %v3611_v31 = vpop.xlane.xlu0 %3610 }
0x1764   :  { %v3625_v35 = vsub.f32 %v3601_v6, %v3621_v54  ;;  %v3619_v63 = vmul.f32 0.03125, %v3611_v31  ;;  %v3636_v41 = vsel %vm290_vm0, %v3628_v11, 0.0  ;;  %v4710_v31 = vld [vmem:[%s6079_s24 + $0x8] sm:$0xff]  }
0x1765   :  { %3637 = vadd.xlane.f32.xlu1 %v3636_v41 }
0x1766   :  { %v3623_v58 = vsub.f32 %v3599_v42, %v3619_v63  ;;  %v3629_v48 = vmul.f32 %v3625_v35, %v3625_v35  ;;  %v4184_v63 = vld [vmem:[%s6078_s23] ss:$0 sm:$0xff] }
0x1767   :  { %v3608_v60 = vpop.xlane.xlu0 %3607 }
0x1768   :  { %v3618_v38 = vmul.f32 0.03125, %v3608_v60  ;;  %v3639_v28 = vsel %vm290_vm0, %v3629_v48, 0.0  ;;  %v3627_v49 = vmul.f32 %v3623_v58, %v3623_v58 }
0x1769   :  { %3640 = vadd.xlane.f32.xlu1 %v3639_v28 }
0x176a   :  { %v3622_v0 = vsub.f32 %v3598_v24, %v3618_v38  ;;  %v3633_v3 = vsel %vm290_vm0, %v3627_v49, 0.0 }
0x176b   :  { %3634 = vadd.xlane.f32.xlu0 %v3633_v3  ;;  %v4188_v3 = vld [vmem:[%s6080_s25] ss:$0 sm:$0xff] }
0x176c   :  { %v3626_v30 = vmul.f32 %v3622_v0, %v3622_v0 }
0x176e   :  { %v3630_v7 = vsel %vm290_vm0, %v3626_v30, 0.0 }
0x176f   :  { %3631 = vadd.xlane.f32.xlu0 %v3630_v7 }
0x17ee   :  { %v3638_v8 = vpop.xlane.xlu1 %3637 }
0x17ef   :  { %v3644_v9 = vmul.f32 0.03125, %v3638_v8 }
0x17f1   :  { %v3648_v27 = vadd.f32 1e-12, %v3644_v9 }
0x17f2   :  { %v3641_v29 = vpop.xlane.xlu1 %3640 }
0x17f3   :  { %4824 = vrsqrt.f32 %v3648_v27  ;;  %v3645_v16 = vmul.f32 0.03125, %v3641_v29  ;;  %v3846_v29 = vmul.u32 2, %v5522_v62 }
0x17f4   :  { %v3635_v22 = vpop.xlane.xlu0 %3634 }
0x17f5   :  { %v3649_v23 = vadd.f32 1e-12, %v3645_v16  ;;  %v3643_v17 = vmul.f32 0.03125, %v3635_v22  ;;  %v3927_v16 = vadd.s32 1, %v3846_v29 }
0x17f7   :  { %4826 = vrsqrt.f32 %v3649_v23  ;;  %v3647_v25 = vadd.f32 1e-12, %v3643_v17 }
0x17f8   :  { %v3632_v50 = vpop.xlane.xlu0 %3631 }
0x17f9   :  { %4828 = vrsqrt.f32 %v3647_v25  ;;  %v3642_v4 = vmul.f32 0.03125, %v3632_v50 }
0x17fb   :  { %v3646_v10 = vadd.f32 1e-12, %v3642_v4 }
0x17fd   :  { %4830 = vrsqrt.f32 %v3646_v10 }
0x1800   :  { %v4825_v13 = vpop.eup %4824 }
0x1801   :  { %v3656_v21 = vmul.f32 %v4825_v13, %v3624_v47 }
0x1803   :  { %v3666_v40 = vmul.f32 %v4182_v19, %v3656_v21 }
0x1804   :  { %v4827_v51 = vpop.eup %4826 }
0x1805   :  { %v3657_v56 = vmul.f32 %v4827_v51, %v3625_v35  ;;  %v3676_v33 = vadd.f32 %v4183_v34, %v3666_v40  ;;  %v4711_v35 = vld [vmem:[%s6079_s24] sm:$0xff]  }
0x1806   :  { %v4829_v57 = vpop.eup %4828 }
0x1807   :  { %v3667_v45 = vmul.f32 %v4182_v19, %v3657_v56  ;;  %v3655_v43 = vmul.f32 %v4829_v57, %v3623_v58  ;;  %v3680_v53 = vpack.c.bf16 %v3676_v33, %v3676_v33 }
0x1809   :  { %v3665_v5 = vmul.f32 %v4182_v19, %v3655_v43  ;;  %v3677_v36 = vadd.f32 %v4183_v34, %v3667_v45  ;;  %v3699_v26 = vunpack.c.l.b16 %v3680_v53 }
0x180a   :  { %v4831_v39 = vpop.eup %4830 }
0x180b   :  { %v3675_v44 = vadd.f32 %v4183_v34, %v3665_v5  ;;  %v3654_v2 = vmul.f32 %v4831_v39, %v3622_v0  ;;  %v3681_v32 = vpack.c.bf16 %v3677_v36, %v3677_v36  ;;  %v3704_v12 = vrot.slane %v3699_v26, 6 }
0x180c   :  { %v3835_v0 = vand.u32 127, %v805_v59 }
0x180d   :  { %v3679_v14 = vpack.c.bf16 %v3675_v44, %v3675_v44  ;;  %v3664_v18 = vmul.f32 %v4182_v19, %v3654_v2  ;;  %v3700_v37 = vunpack.c.l.b16 %v3681_v32 }
0x180e   :  { %vm3836_vm9 = vcmp.eq.s32.totalorder %v3835_v0, 1  ;;  %vm3847_vm11 = vcmp.eq.s32.totalorder %v3835_v0, %v3846_v29  ;;  %vm3928_vm12 = vcmp.eq.s32.totalorder %v3835_v0, %v3927_v16 }
0x180f   :  { %v3698_v20 = vunpack.c.l.b16 %v3679_v14  ;;  %v3674_v6 = vadd.f32 %v4183_v34, %v3664_v18  ;;  %v3707_v47 = vrot.slane %v3700_v37, 5  ;;  %v4192_v59 = vsel %vm3847_vm11, 1.0, %v5176_v15 }
0x1810   :  { %v4195_v22 = vsel %vm3928_vm12, 1.0, %v5176_v15 }
0x1811   :  { %v3678_v42 = vpack.c.bf16 %v3674_v6, %v3674_v6  ;;  %v3701_v24 = vrot.slane %v3698_v20, 7 }
0x1813   :  { %v3697_v46 = vunpack.c.l.b16 %v3678_v42 }
0x1815   :  { %v3703_v55 = vsel %vm3702_vm6, %v3701_v24, %v3697_v46 }
0x1816   :  { %v3706_v52 = vsel %vm3705_vm7, %v3704_v12, %v3703_v55 }
0x1817   :  { %v3709_v54 = vsel %vm3708_vm8, %v3707_v47, %v3706_v52 }
0x1818   :  { %v3710_v11 = vpack.c.b16 %v3709_v54, %v3709_v54 }
0x181a   :  { %4637 = vmatmul.mubr.msk.bf16.vlgmr.msra.gmra.mxu1 %vm290_vm0, %v3710_v11 }
0x181b   :  { %4644 = vmatprep.mubr.msk.bf16.mxu1 %vm5177_vm1, %v5176_v15  ;;  %4641 = vmatpush3.bf16.msra.mxu1 %v4710_v31 }
0x181c   :  { %4642 = vmatprep.subr.bf16.mxu1 %v5176_v15 }
0x181f   :  { %4643 = vmatpush3.bf16.msra.mxu1 %v4711_v35 }
0x1820   :  { %4653 = vmatprep.subr.mxu1 %v5176_v15 }
0x18da   :  { %v3760_v41 = vpop.f32.mrf.mxu1 }
0x18db   :  { %v3761_v58 = vadd.f32 %v4184_v63, %v3760_v41 }
0x18dc   :  { %v4638_v48 = vpop.f32.mrf.mxu1 }
0x18dd   :  { %4832 = vtanh.f32 %v3761_v58 }
0x18de   :  { %v3763_v60 = vpop.f32.mrf.mxu1 }
0x18e0   :  { %v4639_v38 = vpop.f32.mrf.mxu1 }
0x18ea   :  { %v4833_v28 = vpop.eup %4832 }
0x18eb   :  { %v3767_v49 = vpack.c.bf16 %v4833_v28, %v4833_v28 }
0x18ed   :  { %4645 = vmatmul.mubr.msk.bf16.vlgmr.msra.gmra.mxu1 %vm290_vm0, %v3767_v49  ;;  %vm4027_vm0 = vcmask 0  }
0x18ee   :  { %4655 = vmatprep.mubr.msk.f32.mxu1 %vm5177_vm1, %v5176_v15 }
0x19ad   :  { %v3828_v30 = vpop.f32.mrf.mxu1 }
0x19ae   :  { %v3829_v7 = vadd.f32 %v4188_v3, %v3828_v30 }
0x19af   :  { %v4646_v61 = vpop.f32.mrf.mxu1 }
0x19b0   :  { %v3837_v1 = vsel %vm3836_vm9, %v3829_v7, 0.0 }
0x19b1   :  { %v3831_v8 = vpop.f32.mrf.mxu1  ;;  %v3839_v9 = vsel %vm3838_vm10, %v3837_v1, 0.0 }
0x19b2   :  { %3840 = vadd.xlane.f32.xlu0 %v3839_v9 }
0x19b3   :  { %v4647_v27 = vpop.f32.mrf.mxu1 }
0x1a3b   :  { %v3841_v23 = vpop.xlane.xlu0 %3840 }
0x1a3c   :  { %3843 = vst.msk [vmem:[%s6081_s26] sm:$0xf] %vm3842_vm13, %v3841_v23  ;;  %4649 = vmatpush3.msk.msra.mxu0 %vm885_vm3, %v3841_v23  ;;  %4654 = vmatpush3.msk.msra.mxu1 %vm885_vm3, %v3841_v23  ;;  %s5179_s26 = smov [#allocation25]  }
0x1a3d   :  { %4651 = vmatmul.mubr.msk.f32.vlgmr.msra.gmra.mxu0 %vm3850_vm14, %v4192_v59  ;;  %4656 = vmatmul.mubr.msk.f32.vlgmr.msra.gmra.mxu1 %vm3850_vm14, %v4195_v22  ;;  %s4037_s9 = sshll.u32 %s5179_s26, 4  ;;  %s4038_s9 = int_to_ptr.vmem [resolvable:$true] %s4037_s9 }
0x1a3e   :  { %s5120_s27 = scalar_lea.vmem %s4038_s9, 16  ;;  %s5124_s13 = scalar_lea.vmem %s4038_s9, 32 }
0x1a3f   :  { %p5121_p0 = scmp.ne.s32.totalorder %s4038_s9, %s5120_s27  ;;  %p5125_p1 = scmp.lt.s32.totalorder %s4038_s9, %s4038_s9 }
0x1a40   :  { %p5126_p2 = scmp.lt.s32.totalorder %s5124_s13, %s5120_s27 }
0x1a42   :  { %p5127_p3 = por %p5126_p2, %p5125_p1 }
0x1a44   :  { %p5128_p4 = pnand %p5127_p3, %p5121_p0 }
0x1afd   :  { %v3923_v62 = vpop.f32.mrf.mxu0  ;;  %v4000_v17 = vpop.f32.mrf.mxu1 }
0x1afe   :  { %v4004_v25 = vmax.f32 %v3923_v62, %v4000_v17 }
0x1aff   :  { %v4652_v50 = vpop.f32.mrf.mxu0  ;;  %v4657_v4 = vpop.f32.mrf.mxu1 }
0x1b00   :  { %v4005_v10 = vsub.f32 %v3923_v62, %v4004_v25  ;;  %v4009_v13 = vsub.f32 %v4000_v17, %v4004_v25 }
0x1b02   :  { %v4006_v19 = vmul.f32 1.442695, %v4005_v10  ;;  %v4010_v15 = vmul.f32 1.442695, %v4009_v13 }
0x1b04   :  { %4834 = vpow2.f32 %v4006_v19 }
0x1b05   :  { %4836 = vpow2.f32 %v4010_v15 }
0x1b11   :  { %v4835_v21 = vpop.eup %4834 }
0x1b12   :  { %v4837_v51 = vpop.eup %4836 }
0x1b13   :  { %v4012_v40 = vadd.f32 %v4837_v51, %v4835_v21 }
0x1b15   :  { %4838 = vlog2.f32 %v4012_v40 }
0x1b22   :  { %v4839_v34 = vpop.eup %4838 }
0x1b23   :  { %v4014_v56 = vmul.f32 0.6931472, %v4839_v34 }
0x1b25   :  { %v4015_v57 = vadd.f32 %v4014_v56, %v4004_v25 }
0x1b27   :  { %v4016_v45 = vsub.f32 %v4015_v57, %v3923_v62 }
0x1b29   :  { %v4018_v43 = vsel %vm4017_vm15, %v4016_v45, 0.0 }
0x1b2a   :  { %v4019_v33 = vrot.slane %v4018_v43, 4 }
0x1b2c   :  { %v4020_v5 = vadd.f32 %v4019_v33, %v4018_v43 }
0x1b2e   :  { %v4021_v36 = vrot.slane %v4020_v5, 2 }
0x1b30   :  { %v4022_v39 = vadd.f32 %v4021_v36, %v4020_v5 }
0x1b32   :  { %v4023_v44 = vrot.slane %v4022_v39, 1 }
0x1b34   :  { %v4024_v2 = vadd.f32 %v4023_v44, %v4022_v39 }
0x1b36   :  { %v4026_v53 = vmul.f32 0.5, %v4024_v2 }
0x1b38   :  { %4028 = vst.msk [vmem:[#allocation25] sm:$0x1] %vm4027_vm0, %v4026_v53 }
0x1b39   :  { %5131 = shalt.err (!%p5128_p4)
}
0x1b3a   :  { %s6112_s6 = sld [smem:[#allocation47_spill]] }
0x1b40   :  { %4040 = dma.vmem_to_hbm [thread:$0]  %s4038_s9, 16, %s6112_s6, [#allocation4]  }
0x1b41   :  { %5156 = dma.done.wait [#allocation4], 16  }
0x1b42   :  { %5157 = vsyncadd [#allocation4], 4294967280 }
0x1b43   :  { %4046 = vsyncpa [#allocation3], 1 }
0x1b44   :  { %4047 = vsyncpa [#allocation6], 1 }
0x1b45   :  { %4048 = vsyncpa [#allocation9], 1 }
0x1b46   :  { %4049 = vsyncpa [#allocation12], 1 }
0x1b47   :  { %4050 = vsyncpa [#allocation15], 1 }
0x1b48   :  { %4051 = vsyncpa [#allocation18], 1 }
0x1b49   :  { %4052 = vsyncpa [#allocation21], 1 }
0x1b4a   :  { %4053 = vsyncpa [#allocation24], 1 }
0x1b4b   :  { %4054 = vsyncpa [#allocation4], 1 }

</bundles_post_ra>
